<compile_context>
chip_gen: v7x
topology: tpu7x:2x2x1
jax: 0.10.0
libtpu: 0.0.40
codegen_flags: <defaults>
</compile_context>

<pallas_src>
import jax
import jax.numpy as jnp
from jax.experimental import pallas as pl
from jax.experimental.pallas import tpu as pltpu

IN_DIM = 32 * 32 * 3      # 3072
HIDDEN = 1024             # `channel`
OUT_DIM = 10
OUT_PAD = 128             # lane-dense padded classifier width

TN = 512                  # N-tile of HIDDEN; grid=(HIDDEN//TN,) = (2,) "parallel"


def _fused_kernel(x_ref, w1_ref, b1_ref, w2_ref, feat_ref, logit_ref):
    """One j tile: feat = ReLU(x @ W1[:, jTN] + b1[jTN]); partial logits = feat @ W2[jTN, :]."""
    # Full-K bf16 matmul, f32 accumulation on the MXU.
    feat = jnp.dot(x_ref[...], w1_ref[...], preferred_element_type=jnp.float32)
    feat = jnp.maximum(feat + b1_ref[...], 0.0)          # bias + ReLU (VPU, f32)
    feat_ref[...] = feat

    # Fused classifier contribution for this hidden tile (lane-dense 128-wide).
    logit_ref[...] = jnp.dot(feat.astype(jnp.bfloat16), w2_ref[...],
                             preferred_element_type=jnp.float32)[None]


def prepare_params(w1, b1, w2, b2):
    """One-time parameter prep: bf16 W1, 2-D f32 b1, bf16 lane-padded W2."""
    w1_bf = w1.astype(jnp.bfloat16)                                   # (3072, 1024)
    b1_2d = b1.reshape(1, HIDDEN).astype(jnp.float32)                 # (1, 1024)
    w2_pad = (jnp.zeros((HIDDEN, OUT_PAD), jnp.bfloat16)
              .at[:, :OUT_DIM].set(w2.astype(jnp.bfloat16)))          # (1024, 128)
    b2_f32 = b2.astype(jnp.float32)                                   # (10,)
    return w1_bf, b1_2d, w2_pad, b2_f32


def mlp_forward(x_nchw, w1_bf, b1_2d, w2_pad, b2):
    """x_nchw: (B, 3, 32, 32) f32. Returns (logits (B,10), features (B,1024))."""
    B = x_nchw.shape[0]
    # Flatten exactly like torch's x.view(x.size(0), -1); stream x as bf16.
    x = x_nchw.reshape(B, -1).astype(jnp.bfloat16)                    # (B, 3072)
    NJ = HIDDEN // TN

    features, logits_partial = pl.pallas_call(
        _fused_kernel,
        out_shape=(jax.ShapeDtypeStruct((B, HIDDEN), jnp.float32),
                   jax.ShapeDtypeStruct((NJ, B, OUT_PAD), jnp.float32)),
        grid_spec=pltpu.PrefetchScalarGridSpec(
            num_scalar_prefetch=0,
            grid=(NJ,),                                                # parallel j
            in_specs=[
                pl.BlockSpec((B, IN_DIM), lambda j: (0, 0)),           # x, resident
                pl.BlockSpec((IN_DIM, TN), lambda j: (0, j)),          # W1 slab (bf16)
                pl.BlockSpec((1, TN), lambda j: (0, j)),               # b1 slab
                pl.BlockSpec((TN, OUT_PAD), lambda j: (j, 0)),         # W2 slab (bf16)
            ],
            out_specs=[
                pl.BlockSpec((B, TN), lambda j: (0, j)),               # features tile
                pl.BlockSpec((1, B, OUT_PAD), lambda j: (j, 0, 0)),    # per-j logits
            ],
        ),
        compiler_params=pltpu.CompilerParams(
            dimension_semantics=("parallel",)),
    )(x, w1_bf, b1_2d, w2_pad)

    # Tiny reduction of the per-tile partial logits + bias + un-pad (cheap XLA ops).
    logits = logits_partial.sum(axis=0)[:, :OUT_DIM] + b2
    return logits, features


def init_params(key):
    """Deterministic init mimicking nn.Linear defaults (U[-1/sqrt(fan_in), +])."""
    k1, k2, k3, k4 = jax.random.split(key, 4)
    bound1 = 1.0 / (IN_DIM ** 0.5)
    bound2 = 1.0 / (HIDDEN ** 0.5)
    # Stored as (in_features, out_features) so kernels compute x @ W + b,
    # which equals torch's x @ W_torch.T + b.
    w1 = jax.random.uniform(k1, (IN_DIM, HIDDEN), jnp.float32, -bound1, bound1)
    b1 = jax.random.uniform(k2, (HIDDEN,), jnp.float32, -bound1, bound1)
    w2 = jax.random.uniform(k3, (HIDDEN, OUT_DIM), jnp.float32, -bound2, bound2)
    b2 = jax.random.uniform(k4, (OUT_DIM,), jnp.float32, -bound2, bound2)
    return w1, b1, w2, b2


if __name__ == "__main__":
    key = jax.random.PRNGKey(0)
    kx, kp = jax.random.split(key)

    B = 2
    x = jax.random.normal(kx, (B, 3, 32, 32), jnp.float32)   # NCHW like PyTorch
    w1, b1, w2, b2 = init_params(kp)

    params = prepare_params(w1, b1, w2, b2)                  # one-time cast/pad
    logits, features = jax.jit(mlp_forward)(x, *params)
    jax.block_until_ready((logits, features))

    # Reference 1 (tight): same bf16-cast operands, f32 accumulation.
    xf = x.reshape(B, -1)
    xbf = xf.astype(jnp.bfloat16).astype(jnp.float32)
    w1bf = w1.astype(jnp.bfloat16).astype(jnp.float32)
    feat_ref = jnp.maximum(xbf @ w1bf + b1, 0.0)
    w2bf = w2.astype(jnp.bfloat16).astype(jnp.float32)
    # Classifier reference built from the kernel's own features (same bf16 path).
    logit_ref = features.astype(jnp.bfloat16).astype(jnp.float32) @ w2bf + b2
    assert jnp.allclose(features, feat_ref, atol=2e-3, rtol=2e-3)
    assert jnp.allclose(logits, logit_ref, atol=2e-3, rtol=2e-3)

    # Reference 2 (loose): full-f32 module semantics (bf16 weight streaming error).
    feat_full = jnp.maximum(xf @ w1 + b1, 0.0)
    logit_full = feat_full @ w2 + b2
    assert jnp.allclose(features, feat_full, atol=5e-2, rtol=5e-2)
    assert jnp.allclose(logits, logit_full, atol=5e-2, rtol=5e-2)

    assert logits.shape == (B, OUT_DIM) and features.shape == (B, HIDDEN)
    print("KERNEL_OK")
</pallas_src>

<mosaic_0001>
module attributes {stable_mosaic.version = 11 : i64} {
  func.func @_fused_kernel(%arg0: i32, %arg1: memref<2x3072xbf16, #tpu.memory_space<vmem>>, %arg2: memref<3072x512xbf16, #tpu.memory_space<vmem>>, %arg3: memref<1x512xf32, #tpu.memory_space<vmem>>, %arg4: memref<512x128xbf16, #tpu.memory_space<vmem>>, %arg5: memref<2x512xf32, #tpu.memory_space<vmem>>, %arg6: memref<1x2x128xf32, #tpu.memory_space<vmem>>) attributes {dimension_semantics = [#tpu.dimension_semantics<parallel>], iteration_bounds = array<i64: 2>, scalar_prefetch = 0 : i64, scratch_operands = 0 : i64, tpu.core_type = #tpu.core_type<tc>, window_params = [{pipeline_mode = #tpu.pipeline_mode<synchronous>, transform_indices = @transform_0, window_bounds = array<i64: 2, 3072>}, {transform_indices = @transform_1, window_bounds = array<i64: 3072, 512>}, {transform_indices = @transform_2, window_bounds = array<i64: 1, 512>}, {transform_indices = @transform_3, window_bounds = array<i64: 512, 128>}, {transform_indices = @transform_4, window_bounds = array<i64: 2, 512>}, {transform_indices = @transform_5, window_bounds = array<i64: 1, 2, 128>}]} {
    %c0 = arith.constant 0 : index
    %c0_0 = arith.constant 0 : index
    %0 = vector.load %arg1[%c0, %c0_0] : memref<2x3072xbf16, #tpu.memory_space<vmem>>, vector<2x3072xbf16>
    %c0_1 = arith.constant 0 : index
    %c0_2 = arith.constant 0 : index
    %1 = vector.load %arg2[%c0_1, %c0_2] : memref<3072x512xbf16, #tpu.memory_space<vmem>>, vector<3072x512xbf16>
    %cst = arith.constant dense<0.000000e+00> : vector<2x512xf32>
    %2 = tpu.matmul %0, %1, %cst {dimension_numbers = #tpu.dot_dimension_numbers<[1], [0], [0], [1], [0, 0, 1, 1], [], []>} : vector<2x3072xbf16>, vector<3072x512xbf16>, vector<2x512xf32> -> vector<2x512xf32>
    %c0_3 = arith.constant 0 : index
    %c0_4 = arith.constant 0 : index
    %3 = vector.load %arg3[%c0_3, %c0_4] : memref<1x512xf32, #tpu.memory_space<vmem>>, vector<1x512xf32>
    %4 = vector.broadcast %3 : vector<1x512xf32> to vector<2x512xf32>
    %5 = arith.addf %2, %4 : vector<2x512xf32>
    %cst_5 = arith.constant 0.000000e+00 : f32
    %6 = vector.broadcast %cst_5 : f32 to vector<2x512xf32>
    %7 = arith.maximumf %5, %6 : vector<2x512xf32>
    %c0_6 = arith.constant 0 : index
    %c0_7 = arith.constant 0 : index
    %8 = vector.load %arg5[%c0_6, %c0_7] : memref<2x512xf32, #tpu.memory_space<vmem>>, vector<2x512xf32>
    tpu.vector_store %arg5[%c0_6, %c0_7], %7 {strides = array<i32>} : memref<2x512xf32, #tpu.memory_space<vmem>>, vector<2x512xf32>,
    %9 = arith.truncf %7 : vector<2x512xf32> to vector<2x512xbf16>
    %c0_8 = arith.constant 0 : index
    %c0_9 = arith.constant 0 : index
    %10 = vector.load %arg4[%c0_8, %c0_9] : memref<512x128xbf16, #tpu.memory_space<vmem>>, vector<512x128xbf16>
    %cst_10 = arith.constant dense<0.000000e+00> : vector<2x128xf32>
    %11 = tpu.matmul %9, %10, %cst_10 {dimension_numbers = #tpu.dot_dimension_numbers<[1], [0], [0], [1], [0, 0, 1, 1], [], []>} : vector<2x512xbf16>, vector<512x128xbf16>, vector<2x128xf32> -> vector<2x128xf32>
    %12 = vector.shape_cast %11 : vector<2x128xf32> to vector<1x2x128xf32>
    %c0_11 = arith.constant 0 : index
    %c0_12 = arith.constant 0 : index
    %c0_13 = arith.constant 0 : index
    %13 = vector.load %arg6[%c0_11, %c0_12, %c0_13] : memref<1x2x128xf32, #tpu.memory_space<vmem>>, vector<1x2x128xf32>
    tpu.vector_store %arg6[%c0_11, %c0_12, %c0_13], %12 {strides = array<i32>} : memref<1x2x128xf32, #tpu.memory_space<vmem>>, vector<1x2x128xf32>,
    return
  }
  func.func @transform_0(%arg0: i32) -> (i32, i32) {
    %c0_i32 = arith.constant 0 : i32
    %c0_i32_0 = arith.constant 0 : i32
    %c0_i32_1 = arith.constant 0 : i32
    return %c0_i32, %c0_i32_0 : i32, i32
  }
  func.func @transform_1(%arg0: i32) -> (i32, i32) {
    %c0_i32 = arith.constant 0 : i32
    %c0_i32_0 = arith.constant 0 : i32
    return %c0_i32, %arg0 : i32, i32
  }
  func.func @transform_2(%arg0: i32) -> (i32, i32) {
    %c0_i32 = arith.constant 0 : i32
    %c0_i32_0 = arith.constant 0 : i32
    return %c0_i32, %arg0 : i32, i32
  }
  func.func @transform_3(%arg0: i32) -> (i32, i32) {
    %c0_i32 = arith.constant 0 : i32
    %c0_i32_0 = arith.constant 0 : i32
    return %arg0, %c0_i32 : i32, i32
  }
  func.func @transform_4(%arg0: i32) -> (i32, i32) {
    %c0_i32 = arith.constant 0 : i32
    %c0_i32_0 = arith.constant 0 : i32
    return %c0_i32, %arg0 : i32, i32
  }
  func.func @transform_5(%arg0: i32) -> (i32, i32, i32) {
    %c0_i32 = arith.constant 0 : i32
    %c0_i32_0 = arith.constant 0 : i32
    %c0_i32_1 = arith.constant 0 : i32
    return %arg0, %c0_i32, %c0_i32_0 : i32, i32, i32
  }
}

</mosaic_0001>

<bundles_post_ra>
// kernel: mlp_forward.1
= control target key start
LH: loop header
LB: loop body
LE: loop exit
PB: predicated region body
PF: predicated region fallthrough
CT: control target
= control target key end

     0   :  { %s10260_s0 = inlined_call_operand.vmem [shape: bf16[2,3072], index: 0, kind: input, shape index: {}]   ;;  %s10261_s1 = inlined_call_operand.hbm [shape: bf16[3072,1024], index: 1, kind: input, shape index: {}]   ;;  %s10262_s2 = inlined_call_operand.hbm [shape: f32[1,1024], index: 2, kind: input, shape index: {}]   ;;  %s10263_s3 = inlined_call_operand.hbm [shape: bf16[1024,128], index: 3, kind: input, shape index: {}]   ;;  %s10264_s4 = inlined_call_operand.hbm [shape: f32[2,1024], index: 4, kind: output, shape index: {0}]   ;;  %s10265_s5 = inlined_call_operand.vmem [shape: f32[2,2,128], index: 5, kind: output, shape index: {1}]  }
   0x1   :  { %10269 = sst [smem:[#allocation14_spill]] %s10261_s1 }
   0x2   :  { %10270 = sst [smem:[#allocation15_spill]] %s10262_s2 }
   0x3   :  { %11 = vsyncpa [#allocation3], 0 }
   0x4   :  { %13 = vsyncpa [#allocation3 + $0x1], 0 }
   0x5   :  { %14 = vsyncpa [#allocation6], 0 }
   0x6   :  { %16 = vsyncpa [#allocation6 + $0x1], 0 }
   0x7   :  { %17 = vsyncpa [#allocation4], 0 }
   0x8   :  { %19 = vsyncpa [#allocation4 + $0x1], 0  ;;  %s9070_s18 = smov 0   ;;  %s9072_s19 = smov 0  }
   0x9   :  { %s9074_s20 = smov 0   ;;  %s9076_s21 = smov 0  }
   0xa LB: > { %10271 = sst [smem:[#allocation12_spill]] %s9023_s20  ;;  %s9091_s22 = sadd.s32 4294967295, %s9027_s21   ;;  %s9027_s21 = sphi %s9076_s21, %s10292_s21   ;;  %s9023_s20 = sphi %s9074_s20, %s10289_s20   ;;  %s9019_s19 = sphi %s9072_s19, %s10291_s19   ;;  %s9015_s18 = sphi %s9070_s18, %s10290_s18  }
   0xb   : > { %s6652_s23 = sadd.s32 4294967294, %s9027_s21   ;;  %s9095_s24 = sadd.s32 1, %s9027_s21  }
   0xc   : > { %s53_s25 = sadd.s32 1, %s9023_s20  ;;  %s50_s26 = ssub.s32 %s9027_s21, %s9095_s24 }
   0xd   : > { %p60_p0 = scmp.ne.s32.totalorder %s9023_s20, %s9019_s19  ;;  %p51_p1 = scmp.eq.s32.totalorder %s50_s26, 0 }
   0xe   : > { %p61_p2 = scmp.eq.s32.totalorder %s9027_s21, 0  ;;  %p66_p3 = scmp.ne.s32.totalorder %s9019_s19, %s9015_s18 }
   0xf   : > { %p67_p4 = scmp.eq.s32.totalorder %s9091_s22, 0  ;;  %p142_p7 = scmp.eq.s32.totalorder %s9091_s22, 1 }
  0x10   : > { %s9107_s27 = scalar_select %p51_p1, %s9023_s20, %s53_s25  }
  0x11   : > { %p62_p5 = por %p61_p2, %p60_p0  ;;  %p9109_p6 = por %p67_p4, %p66_p3 }
  0x12   : > { %10272 = sst [smem:[#allocation13_spill]] %s9107_s27  ;;  %p148_p8 = scmp.eq.s32.totalorder %s6652_s23, 1 }
  0x13   : > { %s10273_s28 = scalar_select %p9109_p6, 1, 0 }
  0x14   : > { %p7637_p10 = scmp.lt.s32.totalorder %s9027_s21, 2  ;;  %p9116_p11 = por %p142_p7, %p60_p0 }
  0x15   : > { %p9120_p12 = por %p148_p8, %p66_p3  ;;  %s9125_s6 = sand.u32 1, %s9023_s20  }
  0x16   : > { %s10274_s29 = scalar_select %p9116_p11, 1, 0 }
  0x17   : > { %s10275_s30 = scalar_select %p9120_p12, 1, 0 }
  0x18   : > { %p9127_p13 = pnand %p7637_p10, %p62_p5  ;;  %s7613_s8 = smul.u32 6144, %s9125_s6 }
  0x19   : > { %s218_s9 = sand.u32 1, %s9027_s21   ;;  %s6657_s10 = sshll.u32 %s9125_s6, 2 }
  0x1a   : > { %s7474_s11 = sshll.u32 %s9027_s21, 6  ;;  %s10277_s2 = sld [smem:[#allocation15_spill]] }
  0x1b   : > { %s222_s15 = scalar_lea.vmem [#allocation5], %s6657_s10  ;;  %s9144_s23 = scalar_lea.sflag [#allocation6], %s218_s9 }
  0x1c   : > { %s230_s16 = sshll.u32 %s222_s15, 4  ;;  %p9150_p2 = pneg %p9127_p13  ;;  %s9141_s16 = int_to_ptr.vmem [resolvable:$true] %s230_s16 }
  0x20   : > { %s9138_s14 = scalar_lea.hbm %s10277_s2, %s7474_s11  ;;  %s8872_s12 = scalar_lea.hbm %s10277_s2, 128 }
  0x21   : > { %s8867_s25 = scalar_lea.hbm %s9138_s14, 64  ;;  %p8873_p5 = scmp.lt.u32.totalorder %s9138_s14, %s10277_s2 }
  0x22   : > { %p8868_p1 = scmp.ne.s32.totalorder %s9138_s14, %s8867_s25  ;;  %p8874_p7 = scmp.lt.u32.totalorder %s8872_s12, %s8867_s25 }
  0x23   : > { %p8876_p10 = scmp.lt.u32.totalorder %s8867_s25, %s9138_s14 }
  0x24   : > { %p8870_p3 = pnand %p9150_p2, %p8868_p1  ;;  %p8875_p8 = por %p8874_p7, %p8873_p5 }
  0x26   : > { %p8871_p4 = pneg %p8870_p3  ;;  %p8877_p9 = por %p8876_p10, %p8875_p8 }
  0x28   : > { %p8878_p0 = pnand %p8877_p9, %p8871_p4 }
  0x2a   : > { %8881 = shalt.err (!%p8878_p0)
}
  0x2b   : > { %s8882_s9 = scalar_lea.vmem %s9141_s16, 64  ;;  %s9029_s11 = smov [#allocation5]  }
  0x2c   : > { %p8883_p1 = scmp.ne.s32.totalorder %s9141_s16, %s8882_s9  ;;  %s8887_s10 = sshll.u32 %s9029_s11, 4  ;;  %s8888_s10 = int_to_ptr.vmem [resolvable:$false] %s8887_s10 }
  0x2d   : > { %s8889_s13 = scalar_lea.vmem %s8888_s10, 128  ;;  %p8890_p11 = scmp.lt.s32.totalorder %s9141_s16, %s8888_s10 }
  0x2e   : > { %p8885_p3 = pnand %p8883_p1, %p9150_p2  ;;  %p8891_p6 = scmp.lt.s32.totalorder %s8889_s13, %s8882_s9 }
  0x30   : > { %p8886_p12 = pneg %p8885_p3  ;;  %p8892_p5 = por %p8891_p6, %p8890_p11 }
  0x32   : > { %p8893_p7 = pnand %p8892_p5, %p8886_p12 }
  0x34   : > { %8896 = shalt.err (!%p8893_p7)
}
  0x35   : > { %7629 = dma.hbm_to_vmem [thread:$0]  (!%p9127_p13), %s9138_s14, 64, %s9141_s16, %s9144_s23  }
  0x36   : > { %p256_p9 = scmp.lt.s32.totalorder %s9027_s21, 3  ;;  %s7473_s25 = sshll.u32 %s9027_s21, 8 }
  0x37   : > { %p10279_p0 = scmp.ge.s32.totalorder %s9027_s21, 1  ;;  %s10281_s1 = sld [smem:[#allocation14_spill]] }
  0x38   : > { %s201_s10 = scalar_lea.vmem [#allocation2], %s7613_s8  ;;  %s198_s14 = scalar_lea.sflag [#allocation3], %s9125_s6 }
  0x39   : > { %p9178_p4 = pnand %p10279_p0, %p256_p9  ;;  %s208_s13 = sshll.u32 %s201_s10, 4  ;;  %s9189_s13 = int_to_ptr.vmem [resolvable:$true] %s208_s13 }
  0x3b   : > { %s10280_s12 = scalar_select %p9178_p4, 1, 0 }
  0x3d   : > { %s9185_s11 = scalar_lea.hbm %s10281_s1, %s7473_s25  ;;  %s8902_s25 = scalar_lea.hbm %s10281_s1, 196608 }
  0x3e   : > { %s8897_s16 = scalar_lea.hbm %s9185_s11, 98304  ;;  %p8903_p8 = scmp.lt.u32.totalorder %s9185_s11, %s10281_s1 }
  0x3f   : > { %p8898_p6 = scmp.ne.s32.totalorder %s9185_s11, %s8897_s16  ;;  %p8904_p10 = scmp.lt.u32.totalorder %s8902_s25, %s8897_s16 }
  0x40   : > { %p8906_p3 = scmp.lt.u32.totalorder %s8897_s16, %s9185_s11 }
  0x41   : > { %p8900_p11 = pnand %p8898_p6, %p9150_p2  ;;  %p8905_p1 = por %p8904_p10, %p8903_p8 }
  0x43   : > { %p8901_p12 = pneg %p8900_p11  ;;  %p8907_p5 = por %p8906_p3, %p8905_p1 }
  0x45   : > { %p8908_p7 = pnand %p8907_p5, %p8901_p12 }
  0x47   : > { %8911 = shalt.err (!%p8908_p7)
}
  0x48   : > { %s8912_s8 = scalar_lea.vmem %s9189_s13, 98304  ;;  %s9030_s2 = smov [#allocation2]  }
  0x49   : > { %p8913_p9 = scmp.ne.s32.totalorder %s9189_s13, %s8912_s8  ;;  %s8917_s17 = sshll.u32 %s9030_s2, 4  ;;  %s8918_s17 = int_to_ptr.vmem [resolvable:$false] %s8917_s17 }
  0x4a   : > { %s8919_s10 = scalar_lea.vmem %s8918_s17, 196608  ;;  %p8920_p11 = scmp.lt.s32.totalorder %s9189_s13, %s8918_s17 }
  0x4b   : > { %p8915_p0 = pnand %p8913_p9, %p9150_p2  ;;  %p8921_p4 = scmp.lt.s32.totalorder %s8919_s10, %s8912_s8 }
  0x4d   : > { %p8916_p6 = pneg %p8915_p0  ;;  %p8922_p8 = por %p8921_p4, %p8920_p11 }
  0x4f   : > { %p8923_p10 = pnand %p8922_p8, %p8916_p6 }
  0x51   : > { %8926 = shalt.err (!%p8923_p10)
}
  0x52   : > { %s9031_s16 = smov 512   ;;  %s9032_s25 = smov 256  }
  0x53   : > { %s9033_s15 = smov 16   ;;  %s7475_s9 = sshll.u32 %s9027_s21, 12 }
  0x54   : > { %7626 = dma.hbm_to_vmem [thread:$0]  (!%p9127_p13), %s9185_s11, 98304, %s9189_s13, %s198_s14, %s9031_s16, %s9032_s25, %s9033_s15  }
  0x55   : > { %s10282_s2 = sshll.u32 %s9125_s6, 8  ;;  %s9221_s27 = scalar_lea.hbm %s10263_s3, %s7475_s9 }
  0x56   : > { %s241_s17 = scalar_lea.vmem [#allocation7], %s10282_s2  ;;  %s8927_s20 = scalar_lea.hbm %s9221_s27, 4096 }
  0x57   : > { %s248_s8 = sshll.u32 %s241_s17, 4  ;;  %p8928_p4 = scmp.ne.s32.totalorder %s9221_s27, %s8927_s20  ;;  %s9223_s8 = int_to_ptr.vmem [resolvable:$true] %s248_s8 }
  0x58   : > { %s8932_s13 = scalar_lea.hbm %s10263_s3, 8192  ;;  %p8933_p3 = scmp.lt.u32.totalorder %s9221_s27, %s10263_s3 }
  0x59   : > { %p8930_p12 = pnand %p8928_p4, %p9150_p2  ;;  %p8934_p5 = scmp.lt.u32.totalorder %s8932_s13, %s8927_s20 }
  0x5a   : > { %p8936_p9 = scmp.lt.u32.totalorder %s8927_s20, %s9221_s27 }
  0x5b   : > { %p8931_p1 = pneg %p8930_p12  ;;  %p8935_p7 = por %p8934_p5, %p8933_p3 }
  0x5d   : > { %p8937_p0 = por %p8936_p9, %p8935_p7 }
  0x5f   : > { %p8938_p6 = pnand %p8937_p0, %p8931_p1 }
  0x61   : > { %8941 = shalt.err (!%p8938_p6)
}
  0x62   : > { %s8942_s1 = scalar_lea.vmem %s9223_s8, 4096  ;;  %s9034_s25 = smov [#allocation7]  }
  0x63   : > { %p8943_p11 = scmp.ne.s32.totalorder %s9223_s8, %s8942_s1  ;;  %s8947_s15 = sshll.u32 %s9034_s25, 4  ;;  %s8948_s15 = int_to_ptr.vmem [resolvable:$false] %s8947_s15 }
  0x64   : > { %s8949_s9 = scalar_lea.vmem %s8948_s15, 8192  ;;  %p8950_p4 = scmp.lt.s32.totalorder %s9223_s8, %s8948_s15 }
  0x65   : > { %p8945_p8 = pnand %p8943_p11, %p9150_p2  ;;  %p8951_p12 = scmp.lt.s32.totalorder %s8949_s9, %s8942_s1 }
  0x67   : > { %p8946_p10 = pneg %p8945_p8  ;;  %p8952_p3 = por %p8951_p12, %p8950_p4 }
  0x69   : > { %p8953_p5 = pnand %p8952_p3, %p8946_p10 }
  0x6b   : > { %8956 = shalt.err (!%p8953_p5)
}
  0x6c   : > { %s9035_s20 = smov 64   ;;  %s9036_s2 = smov 4  }
  0x6d   : > { %7632 = dma.hbm_to_vmem [thread:$0]  (!%p9127_p13), %s9221_s27, 4096, %s9223_s8, %s9144_s23, %s9035_s20, %s9035_s20, %s9036_s2  }
  0x6e   : > { %p10283_p2 = scmp.ne.s32.totalorder %s10280_s12, 0 }
  0x6f   : > { %s9250_s26 = sand.u32 (!%p10283_p2), 1, %s9019_s19   ;;  %p10284_p1 = scmp.ne.s32.totalorder (!%p10283_p2), %s10273_s28, 0 }
  0x70   : > { %260 = sbr.rel (%p10283_p2) target bundleno = 1330 (0x532), region = 36  ;;  %s263_s10 = scalar_lea.sflag (!%p10283_p2), [#allocation3], %s9250_s26 }
  0x71   : > { %s7614_s17 = smul.u32 (!%p10283_p2), 6144, %s9250_s26 }
  0x73   : > { %s9254_s11 = scalar_lea.vmem (!%p10283_p2), [#allocation2], %s7614_s17 }
  0x77   : > { %9002 = dma.done.wait (%p10284_p1), %s263_s10, 98304  }
  0x78   : > { %9004 = vsyncadd (%p10284_p1), %s263_s10, 4294868992  ;;  %s271_s27 = sand.u32 1, %s9091_s22   ;;  %s6664_s7 = sshll.u32 %s9250_s26, 2 }
  0x79   : > { %s272_s23 = scalar_lea.sflag [#allocation6], %s271_s27  ;;  %s9262_s12 = scalar_lea.vmem [#allocation5], %s6664_s7 }
  0x7a   : > { %9006 = dma.done.wait (%p10284_p1), %s272_s23, 4160  }
  0x7b   : > { %9008 = vsyncadd (%p10284_p1), %s272_s23, 4294963136  ;;  %v7678_v0 = vld [vmem:[%s9254_s11 + $0x4] ss:$16 sps:$4 sm:$0xff]   ;;  %v7680_v1 = vld [vmem:[%s9254_s11 + $0xc] ss:$16 sps:$4 sm:$0xff]   ;;  %v1107_v36 = vlaneseq  ;;  %s6665_s15 = sshll.u32 %s9250_s26, 8 }
  0x7c   : > { %5141 = vmatprep.subr.bf16.mxu0 %v7678_v0  ;;  %v7682_v2 = vld [vmem:[%s9254_s11] ss:$16 sps:$4 sm:$0xff]   ;;  %v7683_v3 = vld [vmem:[%s9254_s11 + $0x8] ss:$16 sps:$4 sm:$0xff]   ;;  %5633 = vmatprep.subr.bf16.mxu1 %v7680_v1  ;;  %v7684_v4 = vld [vmem:[%s9254_s11 + $0x24] ss:$16 sps:$4 sm:$0xff]  }
  0x7d   : > { %5142 = vmatpush1.bf16.msra.mxu0 %v7682_v2  ;;  %5634 = vmatpush1.bf16.msra.mxu1 %v7683_v3  ;;  %v7686_v5 = vld [vmem:[%s9254_s11 + $0x2c] ss:$16 sps:$4 sm:$0xff]   ;;  %v7688_v6 = vld [vmem:[%s9254_s11 + $0x20] ss:$16 sps:$4 sm:$0xff]   ;;  %v7689_v7 = vld [vmem:[%s9254_s11 + $0x28] ss:$16 sps:$4 sm:$0xff]  }
  0x7e   : > { %5143 = vmatprep.subr.bf16.mxu0 %v7684_v4  ;;  %5635 = vmatprep.subr.bf16.mxu1 %v7686_v5  ;;  %v7690_v8 = vld [vmem:[%s9254_s11 + $0x44] ss:$16 sps:$4 sm:$0xff]   ;;  %v7692_v9 = vld [vmem:[%s9254_s11 + $0x4c] ss:$16 sps:$4 sm:$0xff]   ;;  %v7694_v10 = vld [vmem:[%s9254_s11 + $0x40] ss:$16 sps:$4 sm:$0xff]  }
  0x7f   : > { %v7695_v11 = vld [vmem:[%s9254_s11 + $0x48] ss:$16 sps:$4 sm:$0xff]   ;;  %v7696_v12 = vld [vmem:[%s9254_s11 + $0x64] ss:$16 sps:$4 sm:$0xff]   ;;  %v7698_v13 = vld [vmem:[%s9254_s11 + $0x6c] ss:$16 sps:$4 sm:$0xff]  }
  0x80   : > { %v7700_v14 = vld [vmem:[%s9254_s11 + $0x60] ss:$16 sps:$4 sm:$0xff]   ;;  %v7701_v15 = vld [vmem:[%s9254_s11 + $0x68] ss:$16 sps:$4 sm:$0xff]   ;;  %v7702_v16 = vld [vmem:[%s9254_s11 + $0x84] ss:$16 sps:$4 sm:$0xff]  }
  0x81   : > { %5144 = vmatpush1.bf16.msra.mxu0 %v7688_v6  ;;  %5636 = vmatpush1.bf16.msra.mxu1 %v7689_v7  ;;  %v7704_v17 = vld [vmem:[%s9254_s11 + $0x8c] ss:$16 sps:$4 sm:$0xff]   ;;  %v7706_v18 = vld [vmem:[%s9254_s11 + $0x80] ss:$16 sps:$4 sm:$0xff]   ;;  %v7707_v19 = vld [vmem:[%s9254_s11 + $0x88] ss:$16 sps:$4 sm:$0xff]  }
  0x82   : > { %5145 = vmatprep.subr.bf16.mxu0 %v7690_v8  ;;  %5637 = vmatprep.subr.bf16.mxu1 %v7692_v9  ;;  %v7708_v20 = vld [vmem:[%s9254_s11 + $0xa4] ss:$16 sps:$4 sm:$0xff]   ;;  %v7710_v21 = vld [vmem:[%s9254_s11 + $0xac] ss:$16 sps:$4 sm:$0xff]   ;;  %v7712_v22 = vld [vmem:[%s9254_s11 + $0xa0] ss:$16 sps:$4 sm:$0xff]  }
  0x83   : > { %v7713_v23 = vld [vmem:[%s9254_s11 + $0xa8] ss:$16 sps:$4 sm:$0xff]   ;;  %v7714_v24 = vld [vmem:[%s9254_s11 + $0xc4] ss:$16 sps:$4 sm:$0xff]   ;;  %v7716_v25 = vld [vmem:[%s9254_s11 + $0xcc] ss:$16 sps:$4 sm:$0xff]  }
  0x84   : > { %v7718_v26 = vld [vmem:[%s9254_s11 + $0xc0] ss:$16 sps:$4 sm:$0xff]   ;;  %v7719_v27 = vld [vmem:[%s9254_s11 + $0xc8] ss:$16 sps:$4 sm:$0xff]   ;;  %v7720_v28 = vld [vmem:[%s9254_s11 + $0xe4] ss:$16 sps:$4 sm:$0xff]  }
  0x85   : > { %5146 = vmatpush1.bf16.msra.mxu0 %v7694_v10  ;;  %5638 = vmatpush1.bf16.msra.mxu1 %v7695_v11  ;;  %v7722_v29 = vld [vmem:[%s9254_s11 + $0xec] ss:$16 sps:$4 sm:$0xff]   ;;  %v7724_v30 = vld [vmem:[%s9254_s11 + $0xe0] ss:$16 sps:$4 sm:$0xff]   ;;  %v7725_v31 = vld [vmem:[%s9254_s11 + $0xe8] ss:$16 sps:$4 sm:$0xff]  }
  0x86   : > { %5147 = vmatprep.subr.bf16.mxu0 %v7696_v12  ;;  %5639 = vmatprep.subr.bf16.mxu1 %v7698_v13  ;;  %v7726_v32 = vld [vmem:[%s9254_s11 + $0x104] ss:$16 sps:$4 sm:$0xff]   ;;  %v7728_v33 = vld [vmem:[%s9254_s11 + $0x10c] ss:$16 sps:$4 sm:$0xff]   ;;  %v7730_v34 = vld [vmem:[%s9254_s11 + $0x100] ss:$16 sps:$4 sm:$0xff]  }
  0x87   : > { %v7731_v35 = vld [vmem:[%s9254_s11 + $0x108] ss:$16 sps:$4 sm:$0xff]   ;;  %v9037_v37 = vmov 1966171168   ;;  %v7732_v39 = vld [vmem:[%s9254_s11 + $0x124] ss:$16 sps:$4 sm:$0xff]  }
  0x88   : > { %v1132_v38 = vunpack.c.l.s4 %v9037_v37  ;;  %v7734_v40 = vld [vmem:[%s9254_s11 + $0x12c] ss:$16 sps:$4 sm:$0xff]   ;;  %v7736_v41 = vld [vmem:[%s9254_s11 + $0x120] ss:$16 sps:$4 sm:$0xff]   ;;  %v9307_v42 = vshrl.u32 %v1107_v36, 7  ;;  %s10042_s9 = scalar_lea.vmem [#allocation7], %s6665_s15 }
  0x89   : > { %5148 = vmatpush1.bf16.msra.mxu0 %v7700_v14  ;;  %5640 = vmatpush1.bf16.msra.mxu1 %v7701_v15  ;;  %v7737_v44 = vld [vmem:[%s9254_s11 + $0x128] ss:$16 sps:$4 sm:$0xff]   ;;  %v7738_v45 = vld [vmem:[%s9254_s11 + $0x144] ss:$16 sps:$4 sm:$0xff]   ;;  %v7740_v46 = vld [vmem:[%s9254_s11 + $0x14c] ss:$16 sps:$4 sm:$0xff]  }
  0x8a   : > { %5149 = vmatprep.subr.bf16.mxu0 %v7702_v16  ;;  %5641 = vmatprep.subr.bf16.mxu1 %v7704_v17  ;;  %v1133_v43 = vunpack.c.0.s8 %v1132_v38  ;;  %v7742_v47 = vld [vmem:[%s9254_s11 + $0x140] ss:$16 sps:$4 sm:$0xff]   ;;  %v7743_v48 = vld [vmem:[%s9254_s11 + $0x148] ss:$16 sps:$4 sm:$0xff]   ;;  %v7744_v50 = vld [vmem:[%s9254_s11 + $0x164] ss:$16 sps:$4 sm:$0xff]  }
  0x8b   : > { %v7746_v51 = vld [vmem:[%s9254_s11 + $0x16c] ss:$16 sps:$4 sm:$0xff]   ;;  %v9322_v52 = vld [vmem:[%s10260_s0] sm:$0xff]  ;;  %v7749_v55 = vld [vmem:[%s9254_s11 + $0x168] ss:$16 sps:$4 sm:$0xff]   ;;  %s6666_s20 = sshll.u32 %s9250_s26, 3 }
  0x8c   : > { %v9315_v49 = vsub.s32 %v1133_v43, %v9307_v42  ;;  %v7748_v53 = vld [vmem:[%s9254_s11 + $0x160] ss:$16 sps:$4 sm:$0xff]   ;;  %v7750_v56 = vld [vmem:[%s9254_s11 + $0x184] ss:$16 sps:$4 sm:$0xff]   ;;  %v7752_v57 = vld [vmem:[%s9254_s11 + $0x18c] ss:$16 sps:$4 sm:$0xff]  }
  0x8d   : > { %5150 = vmatpush1.bf16.msra.mxu0 %v7706_v18  ;;  %5642 = vmatpush1.bf16.msra.mxu1 %v7707_v19  ;;  %v7754_v59 = vld [vmem:[%s9254_s11 + $0x180] ss:$16 sps:$4 sm:$0xff]   ;;  %v7755_v61 = vld [vmem:[%s9254_s11 + $0x188] ss:$16 sps:$4 sm:$0xff]   ;;  %v7756_v62 = vld [vmem:[%s9254_s11 + $0x1a4] ss:$16 sps:$4 sm:$0xff]  }
  0x8e   : > { %5151 = vmatprep.subr.bf16.mxu0 %v7708_v20  ;;  %5643 = vmatprep.subr.bf16.mxu1 %v7710_v21  ;;  %v1137_v54 = vrot.slane %v9322_v52, %v9315_v49  ;;  %v7758_v63 = vld [vmem:[%s9254_s11 + $0x1ac] ss:$16 sps:$4 sm:$0xff]   ;;  %v7760_v0 = vld [vmem:[%s9254_s11 + $0x1a0] ss:$16 sps:$4 sm:$0xff]   ;;  %v7761_v1 = vld [vmem:[%s9254_s11 + $0x1a8] ss:$16 sps:$4 sm:$0xff]  }
  0x8f   : > { %v7762_v2 = vld [vmem:[%s9254_s11 + $0x1c4] ss:$16 sps:$4 sm:$0xff]   ;;  %v7764_v3 = vld [vmem:[%s9254_s11 + $0x1cc] ss:$16 sps:$4 sm:$0xff]   ;;  %v7766_v4 = vld [vmem:[%s9254_s11 + $0x1c0] ss:$16 sps:$4 sm:$0xff]  }
  0x90   : > { %v1145_v58 = vcombine.high %v1137_v54, %v1137_v54  ;;  %v7767_v5 = vld [vmem:[%s9254_s11 + $0x1c8] ss:$16 sps:$4 sm:$0xff]   ;;  %v7768_v6 = vld [vmem:[%s9254_s11 + $0x1e4] ss:$16 sps:$4 sm:$0xff]   ;;  %v7770_v7 = vld [vmem:[%s9254_s11 + $0x1ec] ss:$16 sps:$4 sm:$0xff]   ;;  %v9349_v13 = vrot.slane %v1137_v54, %v9315_v49 }
  0x91   : > { %5152 = vmatpush1.bf16.msra.mxu0 %v7712_v22  ;;  %5644 = vmatpush1.bf16.msra.mxu1 %v7713_v23  ;;  %v7772_v8 = vld [vmem:[%s9254_s11 + $0x1e0] ss:$16 sps:$4 sm:$0xff]   ;;  %v7773_v9 = vld [vmem:[%s9254_s11 + $0x1e8] ss:$16 sps:$4 sm:$0xff]   ;;  %v7776_v10 = vld [vmem:[%s9254_s11 + $0x204] ss:$16 sps:$4 sm:$0xff]  }
  0x92   : > { %5153 = vmatprep.subr.bf16.mxu0 %v7714_v24  ;;  %5645 = vmatprep.subr.bf16.mxu1 %v7716_v25  ;;  %v1167_v60 = vrot.slane %v1145_v58, %v9315_v49  ;;  %v7779_v11 = vld [vmem:[%s9254_s11 + $0x20c] ss:$16 sps:$4 sm:$0xff]   ;;  %v7774_v12 = vld [vmem:[%s9254_s11 + $0x200] ss:$16 sps:$4 sm:$0xff]   ;;  %v7777_v14 = vld [vmem:[%s9254_s11 + $0x208] ss:$16 sps:$4 sm:$0xff]  }
  0x93   : > { %v7782_v15 = vld [vmem:[%s9254_s11 + $0x224] ss:$16 sps:$4 sm:$0xff]   ;;  %v7785_v16 = vld [vmem:[%s9254_s11 + $0x22c] ss:$16 sps:$4 sm:$0xff]   ;;  %v7780_v18 = vld [vmem:[%s9254_s11 + $0x220] ss:$16 sps:$4 sm:$0xff]  }
  0x94   : > { %5173 = vmatprep.mubr.bf16.mxu0 %v1167_v60  ;;  %5665 = vmatprep.mubr.bf16.mxu1 %v1167_v60  ;;  %v1177_v17 = vcombine.high %v1167_v60, %v1167_v60  ;;  %v7783_v19 = vld [vmem:[%s9254_s11 + $0x228] ss:$16 sps:$4 sm:$0xff]   ;;  %v7788_v20 = vld [vmem:[%s9254_s11 + $0x244] ss:$16 sps:$4 sm:$0xff]   ;;  %v7791_v21 = vld [vmem:[%s9254_s11 + $0x24c] ss:$16 sps:$4 sm:$0xff]  }
  0x95   : > { %5154 = vmatpush1.bf16.msra.mxu0 %v7718_v26  ;;  %5646 = vmatpush1.bf16.msra.mxu1 %v7719_v27  ;;  %v7786_v22 = vld [vmem:[%s9254_s11 + $0x240] ss:$16 sps:$4 sm:$0xff]   ;;  %v7789_v23 = vld [vmem:[%s9254_s11 + $0x248] ss:$16 sps:$4 sm:$0xff]   ;;  %v7794_v24 = vld [vmem:[%s9254_s11 + $0x264] ss:$16 sps:$4 sm:$0xff]  }
  0x96   : > { %5155 = vmatprep.subr.bf16.mxu0 %v7720_v28  ;;  %5647 = vmatprep.subr.bf16.mxu1 %v7722_v29  ;;  %v7797_v25 = vld [vmem:[%s9254_s11 + $0x26c] ss:$16 sps:$4 sm:$0xff]   ;;  %v7792_v26 = vld [vmem:[%s9254_s11 + $0x260] ss:$16 sps:$4 sm:$0xff]   ;;  %v7795_v27 = vld [vmem:[%s9254_s11 + $0x268] ss:$16 sps:$4 sm:$0xff]  }
  0x97   : > { %v7800_v28 = vld [vmem:[%s9254_s11 + $0x284] ss:$16 sps:$4 sm:$0xff]   ;;  %v7803_v29 = vld [vmem:[%s9254_s11 + $0x28c] ss:$16 sps:$4 sm:$0xff]   ;;  %v7810_v38 = vld [vmem:[%s9254_s11 + $0x2c0] ss:$16 sps:$4 sm:$0xff]  }
  0x98   : > { %v7812_v36 = vld [vmem:[%s9254_s11 + $0x2c4] ss:$16 sps:$4 sm:$0xff]   ;;  %v7815_v37 = vld [vmem:[%s9254_s11 + $0x2cc] ss:$16 sps:$4 sm:$0xff]   ;;  %v7816_v43 = vld [vmem:[%s9254_s11 + $0x2e0] ss:$16 sps:$4 sm:$0xff]  }
  0x99   : > { %5156 = vmatpush1.bf16.msra.mxu0 %v7724_v30  ;;  %5648 = vmatpush1.bf16.msra.mxu1 %v7725_v31  ;;  %v7798_v30 = vld [vmem:[%s9254_s11 + $0x280] ss:$16 sps:$4 sm:$0xff]   ;;  %v7801_v31 = vld [vmem:[%s9254_s11 + $0x288] ss:$16 sps:$4 sm:$0xff]   ;;  %v7845_v60 = vld [vmem:[%s9254_s11 + $0x36c] ss:$16 sps:$4 sm:$0xff]  }
  0x9a   : > { %5157 = vmatprep.subr.bf16.mxu0 %v7726_v32  ;;  %5649 = vmatprep.subr.bf16.mxu1 %v7728_v33  ;;  %v7806_v32 = vld [vmem:[%s9254_s11 + $0x2a4] ss:$16 sps:$4 sm:$0xff]   ;;  %v7809_v33 = vld [vmem:[%s9254_s11 + $0x2ac] ss:$16 sps:$4 sm:$0xff]   ;;  %v7831_v54 = vld [vmem:[%s9254_s11 + $0x328] ss:$16 sps:$4 sm:$0xff]  }
  0x9b   : > { %v7837_v58 = vld [vmem:[%s9254_s11 + $0x348] ss:$16 sps:$4 sm:$0xff]   ;;  %s318_s2 = scalar_lea.vmem [#allocation8], %s6666_s20  ;;  %s7476_s17 = sshll.u32 %s9091_s22, 7 }
  0x9c   : > { %s10217_s27 = scalar_lea.hbm %s10264_s4, %s7476_s17  ;;  %s6512_s7 = sshll.u32 %s318_s2, 4  ;;  %s6513_s7 = int_to_ptr.vmem [resolvable:$true] %s6512_s7 }
  0x9d   : > { %5158 = vmatpush1.bf16.msra.mxu0 %v7730_v34  ;;  %5650 = vmatpush1.bf16.msra.mxu1 %v7731_v35  ;;  %v7804_v34 = vld [vmem:[%s9254_s11 + $0x2a0] ss:$16 sps:$4 sm:$0xff]   ;;  %v7807_v35 = vld [vmem:[%s9254_s11 + $0x2a8] ss:$16 sps:$4 sm:$0xff]   ;;  %s6494_s23 = scalar_lea.sflag [#allocation4], %s9250_s26  ;;  %p10285_p7 = scmp.ne.s32.totalorder %s10274_s29, 0 }
  0x9e   : > { %5159 = vmatprep.subr.bf16.mxu0 %v7732_v39  ;;  %5651 = vmatprep.subr.bf16.mxu1 %v7734_v40  ;;  %v7813_v39 = vld [vmem:[%s9254_s11 + $0x2c8] ss:$16 sps:$4 sm:$0xff]   ;;  %v7818_v40 = vld [vmem:[%s9254_s11 + $0x2e4] ss:$16 sps:$4 sm:$0xff]   ;;  %s9039_s28 = smov [#allocation8]  }
  0x9f   : > { %s8961_s8 = sshll.u32 %s9039_s28, 4  ;;  %s8962_s8 = int_to_ptr.vmem [resolvable:$false] %s8961_s8 }
  0xa0   : > { %s8963_s6 = scalar_lea.vmem %s8962_s8, 256  ;;  %p8964_p6 = scmp.lt.s32.totalorder %s6513_s7, %s8962_s8 }
  0xa1   : > { %5160 = vmatpush1.bf16.msra.mxu0 %v7736_v41  ;;  %5652 = vmatpush1.bf16.msra.mxu1 %v7737_v44  ;;  %v7821_v41 = vld [vmem:[%s9254_s11 + $0x2ec] ss:$16 sps:$4 sm:$0xff]   ;;  %v7819_v44 = vld [vmem:[%s9254_s11 + $0x2e8] ss:$16 sps:$4 sm:$0xff]  }
  0xa2   : > { %5161 = vmatprep.subr.bf16.mxu0 %v7738_v45  ;;  %5653 = vmatprep.subr.bf16.mxu1 %v7740_v46  ;;  %v7824_v45 = vld [vmem:[%s9254_s11 + $0x304] ss:$16 sps:$4 sm:$0xff]   ;;  %v7827_v46 = vld [vmem:[%s9254_s11 + $0x30c] ss:$16 sps:$4 sm:$0xff]  }
  0xa5   : > { %5162 = vmatpush1.bf16.msra.mxu0 %v7742_v47  ;;  %5654 = vmatpush1.bf16.msra.mxu1 %v7743_v48  ;;  %v7822_v47 = vld [vmem:[%s9254_s11 + $0x300] ss:$16 sps:$4 sm:$0xff]   ;;  %v7825_v48 = vld [vmem:[%s9254_s11 + $0x308] ss:$16 sps:$4 sm:$0xff]  }
  0xa6   : > { %5163 = vmatprep.subr.bf16.mxu0 %v7744_v50  ;;  %5655 = vmatprep.subr.bf16.mxu1 %v7746_v51  ;;  %v7830_v50 = vld [vmem:[%s9254_s11 + $0x324] ss:$16 sps:$4 sm:$0xff]   ;;  %v7833_v51 = vld [vmem:[%s9254_s11 + $0x32c] ss:$16 sps:$4 sm:$0xff]  }
  0xa9   : > { %5164 = vmatpush1.bf16.msra.mxu0 %v7748_v53  ;;  %5656 = vmatpush1.bf16.msra.mxu1 %v7749_v55  ;;  %v7828_v53 = vld [vmem:[%s9254_s11 + $0x320] ss:$16 sps:$4 sm:$0xff]   ;;  %v7836_v55 = vld [vmem:[%s9254_s11 + $0x344] ss:$16 sps:$4 sm:$0xff]  }
  0xaa   : > { %5165 = vmatprep.subr.bf16.mxu0 %v7750_v56  ;;  %5657 = vmatprep.subr.bf16.mxu1 %v7752_v57  ;;  %v7839_v56 = vld [vmem:[%s9254_s11 + $0x34c] ss:$16 sps:$4 sm:$0xff]   ;;  %v7834_v57 = vld [vmem:[%s9254_s11 + $0x340] ss:$16 sps:$4 sm:$0xff]  }
  0xad   : > { %5166 = vmatpush1.bf16.msra.mxu0 %v7754_v59  ;;  %5658 = vmatpush1.bf16.msra.mxu1 %v7755_v61  ;;  %v7842_v59 = vld [vmem:[%s9254_s11 + $0x364] ss:$16 sps:$4 sm:$0xff]   ;;  %v7840_v61 = vld [vmem:[%s9254_s11 + $0x360] ss:$16 sps:$4 sm:$0xff]  }
  0xae   : > { %5167 = vmatprep.subr.bf16.mxu0 %v7756_v62  ;;  %5659 = vmatprep.subr.bf16.mxu1 %v7758_v63  ;;  %v7843_v62 = vld [vmem:[%s9254_s11 + $0x368] ss:$16 sps:$4 sm:$0xff]   ;;  %v7848_v63 = vld [vmem:[%s9254_s11 + $0x384] ss:$16 sps:$4 sm:$0xff]  }
  0xb1   : > { %5168 = vmatpush1.bf16.msra.mxu0 %v7760_v0  ;;  %5660 = vmatpush1.bf16.msra.mxu1 %v7761_v1  ;;  %v7851_v0 = vld [vmem:[%s9254_s11 + $0x38c] ss:$16 sps:$4 sm:$0xff]   ;;  %v7846_v1 = vld [vmem:[%s9254_s11 + $0x380] ss:$16 sps:$4 sm:$0xff]  }
  0xb2   : > { %5169 = vmatprep.subr.bf16.mxu0 %v7762_v2  ;;  %5661 = vmatprep.subr.bf16.mxu1 %v7764_v3  ;;  %v7849_v2 = vld [vmem:[%s9254_s11 + $0x388] ss:$16 sps:$4 sm:$0xff]   ;;  %v7854_v3 = vld [vmem:[%s9254_s11 + $0x3a4] ss:$16 sps:$4 sm:$0xff]  }
  0xb5   : > { %5170 = vmatpush1.bf16.msra.mxu0 %v7766_v4  ;;  %5662 = vmatpush1.bf16.msra.mxu1 %v7767_v5  ;;  %v7857_v4 = vld [vmem:[%s9254_s11 + $0x3ac] ss:$16 sps:$4 sm:$0xff]   ;;  %v7852_v5 = vld [vmem:[%s9254_s11 + $0x3a0] ss:$16 sps:$4 sm:$0xff]  }
  0xb6   : > { %5171 = vmatprep.subr.bf16.mxu0 %v7768_v6  ;;  %5663 = vmatprep.subr.bf16.mxu1 %v7770_v7  ;;  %v7855_v6 = vld [vmem:[%s9254_s11 + $0x3a8] ss:$16 sps:$4 sm:$0xff]   ;;  %v7860_v7 = vld [vmem:[%s9254_s11 + $0x3c4] ss:$16 sps:$4 sm:$0xff]  }
  0xb9   : > { %5172 = vmatpush1.bf16.msra.mxu0 %v7772_v8  ;;  %5664 = vmatpush1.bf16.msra.mxu1 %v7773_v9  ;;  %v7863_v8 = vld [vmem:[%s9254_s11 + $0x3cc] ss:$16 sps:$4 sm:$0xff]   ;;  %v1130_v9 = vcombine.high %v9322_v52, %v9322_v52  ;;  %v7867_v52 = vld [vmem:[%s9254_s11 + $0x3e8] ss:$16 sps:$4 sm:$0xff]  }
  0xba   : > { %5182 = vmatprep.subr.bf16.mxu0 %v7776_v10  ;;  %5674 = vmatprep.subr.bf16.mxu1 %v7779_v11  ;;  %v7858_v10 = vld [vmem:[%s9254_s11 + $0x3c0] ss:$16 sps:$4 sm:$0xff]   ;;  %v7861_v11 = vld [vmem:[%s9254_s11 + $0x3c8] ss:$16 sps:$4 sm:$0xff]  }
  0xbc   : > { %5174 = vmatmul.mubr.bf16.vlgmr.msra.gmra.mrb[0].mxu0 %v9349_v13  ;;  %5666 = vmatmul.mubr.bf16.vlgmr.msra.gmra.mrb[0].mxu1 %v9349_v13 }
  0xbd   : > { %5183 = vmatpush1.bf16.msra.mxu0 %v7774_v12  ;;  %5675 = vmatpush1.bf16.msra.mxu1 %v7777_v14  ;;  %v7866_v12 = vld [vmem:[%s9254_s11 + $0x3e4] ss:$16 sps:$4 sm:$0xff]   ;;  %v7869_v14 = vld [vmem:[%s9254_s11 + $0x3ec] ss:$16 sps:$4 sm:$0xff]  }
  0xbe   : > { %5184 = vmatprep.subr.bf16.mxu0 %v7782_v15  ;;  %5676 = vmatprep.subr.bf16.mxu1 %v7785_v16  ;;  %v9415_v15 = vrot.slane %v1130_v9, %v9315_v49  ;;  %v7864_v16 = vld [vmem:[%s9254_s11 + $0x3e0] ss:$16 sps:$4 sm:$0xff]   ;;  %v7945_v9 = vld [vmem:[%s9254_s11 + $0x588] ss:$16 sps:$4 sm:$0xff]  }
  0xbf   : > { %5214 = vmatprep.mubr.bf16.mxu0 %v1177_v17  ;;  %5706 = vmatprep.mubr.bf16.mxu1 %v1177_v17  ;;  %v7872_v17 = vld [vmem:[%s9254_s11 + $0x404] ss:$16 sps:$4 sm:$0xff]  }
  0xc1   : > { %5185 = vmatpush1.bf16.msra.mxu0 %v7780_v18  ;;  %5677 = vmatpush1.bf16.msra.mxu1 %v7783_v19  ;;  %v7875_v18 = vld [vmem:[%s9254_s11 + $0x40c] ss:$16 sps:$4 sm:$0xff]   ;;  %v1146_v19 = vcombine.high %v9415_v15, %v9415_v15 }
  0xc2   : > { %5186 = vmatprep.subr.bf16.mxu0 %v7788_v20  ;;  %5678 = vmatprep.subr.bf16.mxu1 %v7791_v21  ;;  %v7870_v20 = vld [vmem:[%s9254_s11 + $0x400] ss:$16 sps:$4 sm:$0xff]   ;;  %v1175_v21 = vcombine.high %v9349_v13, %v9349_v13  ;;  %v7879_v13 = vld [vmem:[%s9254_s11 + $0x428] ss:$16 sps:$4 sm:$0xff]  }
  0xc5   : > { %5187 = vmatpush1.bf16.msra.mxu0 %v7786_v22  ;;  %5679 = vmatpush1.bf16.msra.mxu1 %v7789_v23  ;;  %v7873_v22 = vld [vmem:[%s9254_s11 + $0x408] ss:$16 sps:$4 sm:$0xff]   ;;  %v7878_v23 = vld [vmem:[%s9254_s11 + $0x424] ss:$16 sps:$4 sm:$0xff]  }
  0xc6   : > { %5188 = vmatprep.subr.bf16.mxu0 %v7794_v24  ;;  %5680 = vmatprep.subr.bf16.mxu1 %v7797_v25  ;;  %v7881_v24 = vld [vmem:[%s9254_s11 + $0x42c] ss:$16 sps:$4 sm:$0xff]   ;;  %v9430_v25 = vrot.slane %v1146_v19, %v9315_v49  ;;  %v7962_v19 = vld [vmem:[%s9254_s11 + $0x5e4] ss:$16 sps:$4 sm:$0xff]  }
  0xc9   : > { %5189 = vmatpush1.bf16.msra.mxu0 %v7792_v26  ;;  %5681 = vmatpush1.bf16.msra.mxu1 %v7795_v27  ;;  %v7876_v26 = vld [vmem:[%s9254_s11 + $0x420] ss:$16 sps:$4 sm:$0xff]   ;;  %v7884_v27 = vld [vmem:[%s9254_s11 + $0x444] ss:$16 sps:$4 sm:$0xff]  }
  0xca   : > { %5190 = vmatprep.subr.bf16.mxu0 %v7800_v28  ;;  %5682 = vmatprep.subr.bf16.mxu1 %v7803_v29  ;;  %v7887_v28 = vld [vmem:[%s9254_s11 + $0x44c] ss:$16 sps:$4 sm:$0xff]   ;;  %v7882_v29 = vld [vmem:[%s9254_s11 + $0x440] ss:$16 sps:$4 sm:$0xff]  }
  0xcd   : > { %5191 = vmatpush1.bf16.msra.mxu0 %v7798_v30  ;;  %5683 = vmatpush1.bf16.msra.mxu1 %v7801_v31  ;;  %v7885_v30 = vld [vmem:[%s9254_s11 + $0x448] ss:$16 sps:$4 sm:$0xff]   ;;  %v7890_v31 = vld [vmem:[%s9254_s11 + $0x464] ss:$16 sps:$4 sm:$0xff]  }
  0xce   : > { %5192 = vmatprep.subr.bf16.mxu0 %v7806_v32  ;;  %5684 = vmatprep.subr.bf16.mxu1 %v7809_v33  ;;  %v7893_v32 = vld [vmem:[%s9254_s11 + $0x46c] ss:$16 sps:$4 sm:$0xff]   ;;  %v7888_v33 = vld [vmem:[%s9254_s11 + $0x460] ss:$16 sps:$4 sm:$0xff]  }
  0xd1   : > { %5193 = vmatpush1.bf16.msra.mxu0 %v7804_v34  ;;  %5685 = vmatpush1.bf16.msra.mxu1 %v7807_v35  ;;  %v7891_v34 = vld [vmem:[%s9254_s11 + $0x468] ss:$16 sps:$4 sm:$0xff]   ;;  %v7896_v35 = vld [vmem:[%s9254_s11 + $0x484] ss:$16 sps:$4 sm:$0xff]  }
  0xd2   : > { %5194 = vmatprep.subr.bf16.mxu0 %v7812_v36  ;;  %5686 = vmatprep.subr.bf16.mxu1 %v7815_v37  ;;  %v7899_v36 = vld [vmem:[%s9254_s11 + $0x48c] ss:$16 sps:$4 sm:$0xff]   ;;  %v7894_v37 = vld [vmem:[%s9254_s11 + $0x480] ss:$16 sps:$4 sm:$0xff]  }
  0xd5   : > { %5195 = vmatpush1.bf16.msra.mxu0 %v7810_v38  ;;  %5687 = vmatpush1.bf16.msra.mxu1 %v7813_v39  ;;  %v7897_v38 = vld [vmem:[%s9254_s11 + $0x488] ss:$16 sps:$4 sm:$0xff]   ;;  %v7902_v39 = vld [vmem:[%s9254_s11 + $0x4a4] ss:$16 sps:$4 sm:$0xff]  }
  0xd6   : > { %5196 = vmatprep.subr.bf16.mxu0 %v7818_v40  ;;  %5688 = vmatprep.subr.bf16.mxu1 %v7821_v41  ;;  %v7905_v40 = vld [vmem:[%s9254_s11 + $0x4ac] ss:$16 sps:$4 sm:$0xff]   ;;  %v7900_v41 = vld [vmem:[%s9254_s11 + $0x4a0] ss:$16 sps:$4 sm:$0xff]  }
  0xd9   : > { %5197 = vmatpush1.bf16.msra.mxu0 %v7816_v43  ;;  %5689 = vmatpush1.bf16.msra.mxu1 %v7819_v44  ;;  %v7903_v43 = vld [vmem:[%s9254_s11 + $0x4a8] ss:$16 sps:$4 sm:$0xff]   ;;  %v7908_v44 = vld [vmem:[%s9254_s11 + $0x4c4] ss:$16 sps:$4 sm:$0xff]  }
  0xda   : > { %5198 = vmatprep.subr.bf16.mxu0 %v7824_v45  ;;  %5690 = vmatprep.subr.bf16.mxu1 %v7827_v46  ;;  %v7911_v45 = vld [vmem:[%s9254_s11 + $0x4cc] ss:$16 sps:$4 sm:$0xff]   ;;  %v7906_v46 = vld [vmem:[%s9254_s11 + $0x4c0] ss:$16 sps:$4 sm:$0xff]  }
  0xdd   : > { %5199 = vmatpush1.bf16.msra.mxu0 %v7822_v47  ;;  %5691 = vmatpush1.bf16.msra.mxu1 %v7825_v48  ;;  %v7909_v47 = vld [vmem:[%s9254_s11 + $0x4c8] ss:$16 sps:$4 sm:$0xff]   ;;  %v7914_v48 = vld [vmem:[%s9254_s11 + $0x4e4] ss:$16 sps:$4 sm:$0xff]  }
  0xde   : > { %5200 = vmatprep.subr.bf16.mxu0 %v7830_v50  ;;  %5692 = vmatprep.subr.bf16.mxu1 %v7833_v51  ;;  %v7917_v50 = vld [vmem:[%s9254_s11 + $0x4ec] ss:$16 sps:$4 sm:$0xff]   ;;  %v7912_v51 = vld [vmem:[%s9254_s11 + $0x4e0] ss:$16 sps:$4 sm:$0xff]  }
  0xe1   : > { %5201 = vmatpush1.bf16.msra.mxu0 %v7828_v53  ;;  %5693 = vmatpush1.bf16.msra.mxu1 %v7831_v54  ;;  %v7915_v53 = vld [vmem:[%s9254_s11 + $0x4e8] ss:$16 sps:$4 sm:$0xff]   ;;  %v7920_v54 = vld [vmem:[%s9254_s11 + $0x504] ss:$16 sps:$4 sm:$0xff]  }
  0xe2   : > { %5202 = vmatprep.subr.bf16.mxu0 %v7836_v55  ;;  %5694 = vmatprep.subr.bf16.mxu1 %v7839_v56  ;;  %v7923_v55 = vld [vmem:[%s9254_s11 + $0x50c] ss:$16 sps:$4 sm:$0xff]   ;;  %v7918_v56 = vld [vmem:[%s9254_s11 + $0x500] ss:$16 sps:$4 sm:$0xff]  }
  0xe5   : > { %5203 = vmatpush1.bf16.msra.mxu0 %v7834_v57  ;;  %5695 = vmatpush1.bf16.msra.mxu1 %v7837_v58  ;;  %v7921_v57 = vld [vmem:[%s9254_s11 + $0x508] ss:$16 sps:$4 sm:$0xff]   ;;  %v7926_v58 = vld [vmem:[%s9254_s11 + $0x524] ss:$16 sps:$4 sm:$0xff]  }
  0xe6   : > { %5204 = vmatprep.subr.bf16.mxu0 %v7842_v59  ;;  %5696 = vmatprep.subr.bf16.mxu1 %v7845_v60  ;;  %v7929_v59 = vld [vmem:[%s9254_s11 + $0x52c] ss:$16 sps:$4 sm:$0xff]   ;;  %v7924_v60 = vld [vmem:[%s9254_s11 + $0x520] ss:$16 sps:$4 sm:$0xff]  }
  0xe9   : > { %5205 = vmatpush1.bf16.msra.mxu0 %v7840_v61  ;;  %5697 = vmatpush1.bf16.msra.mxu1 %v7843_v62  ;;  %v7927_v61 = vld [vmem:[%s9254_s11 + $0x528] ss:$16 sps:$4 sm:$0xff]   ;;  %v7932_v62 = vld [vmem:[%s9254_s11 + $0x544] ss:$16 sps:$4 sm:$0xff]  }
  0xea   : > { %5206 = vmatprep.subr.bf16.mxu0 %v7848_v63  ;;  %5698 = vmatprep.subr.bf16.mxu1 %v7851_v0  ;;  %v7935_v63 = vld [vmem:[%s9254_s11 + $0x54c] ss:$16 sps:$4 sm:$0xff]   ;;  %v7930_v0 = vld [vmem:[%s9254_s11 + $0x540] ss:$16 sps:$4 sm:$0xff]  }
  0xed   : > { %5207 = vmatpush1.bf16.msra.mxu0 %v7846_v1  ;;  %5699 = vmatpush1.bf16.msra.mxu1 %v7849_v2  ;;  %v7933_v1 = vld [vmem:[%s9254_s11 + $0x548] ss:$16 sps:$4 sm:$0xff]   ;;  %v7938_v2 = vld [vmem:[%s9254_s11 + $0x564] ss:$16 sps:$4 sm:$0xff]  }
  0xee   : > { %5208 = vmatprep.subr.bf16.mxu0 %v7854_v3  ;;  %5700 = vmatprep.subr.bf16.mxu1 %v7857_v4  ;;  %v7941_v3 = vld [vmem:[%s9254_s11 + $0x56c] ss:$16 sps:$4 sm:$0xff]   ;;  %v7936_v4 = vld [vmem:[%s9254_s11 + $0x560] ss:$16 sps:$4 sm:$0xff]  }
  0xf1   : > { %5209 = vmatpush1.bf16.msra.mxu0 %v7852_v5  ;;  %5701 = vmatpush1.bf16.msra.mxu1 %v7855_v6  ;;  %v7939_v5 = vld [vmem:[%s9254_s11 + $0x568] ss:$16 sps:$4 sm:$0xff]   ;;  %v7944_v6 = vld [vmem:[%s9254_s11 + $0x584] ss:$16 sps:$4 sm:$0xff]  }
  0xf2   : > { %5210 = vmatprep.subr.bf16.mxu0 %v7860_v7  ;;  %5702 = vmatprep.subr.bf16.mxu1 %v7863_v8  ;;  %v7947_v7 = vld [vmem:[%s9254_s11 + $0x58c] ss:$16 sps:$4 sm:$0xff]   ;;  %v7942_v8 = vld [vmem:[%s9254_s11 + $0x580] ss:$16 sps:$4 sm:$0xff]  }
  0xf5   : > { %5211 = vmatpush1.bf16.msra.mxu0 %v7858_v10  ;;  %5703 = vmatpush1.bf16.msra.mxu1 %v7861_v11  ;;  %v7950_v10 = vld [vmem:[%s9254_s11 + $0x5a4] ss:$16 sps:$4 sm:$0xff]   ;;  %v7953_v11 = vld [vmem:[%s9254_s11 + $0x5ac] ss:$16 sps:$4 sm:$0xff]  }
  0xf6   : > { %5212 = vmatprep.subr.bf16.mxu0 %v7866_v12  ;;  %5704 = vmatprep.subr.bf16.mxu1 %v7869_v14  ;;  %v7948_v12 = vld [vmem:[%s9254_s11 + $0x5a0] ss:$16 sps:$4 sm:$0xff]   ;;  %v7951_v14 = vld [vmem:[%s9254_s11 + $0x5a8] ss:$16 sps:$4 sm:$0xff]  }
  0xf9   : > { %5213 = vmatpush1.bf16.msra.mxu0 %v7864_v16  ;;  %5705 = vmatpush1.bf16.msra.mxu1 %v7867_v52  ;;  %v7956_v16 = vld [vmem:[%s9254_s11 + $0x5c4] ss:$16 sps:$4 sm:$0xff]   ;;  %v7959_v52 = vld [vmem:[%s9254_s11 + $0x5cc] ss:$16 sps:$4 sm:$0xff]  }
  0xfa   : > { %5223 = vmatprep.subr.bf16.mxu0 %v7872_v17  ;;  %5715 = vmatprep.subr.bf16.mxu1 %v7875_v18  ;;  %v7954_v17 = vld [vmem:[%s9254_s11 + $0x5c0] ss:$16 sps:$4 sm:$0xff]   ;;  %v7957_v18 = vld [vmem:[%s9254_s11 + $0x5c8] ss:$16 sps:$4 sm:$0xff]  }
  0xfc   : > { %5215 = vmatmul.mubr.bf16.vlgmr.msra.gmra.mrb[0].mxu0 %v1175_v21  ;;  %5707 = vmatmul.mubr.bf16.vlgmr.msra.gmra.mrb[0].mxu1 %v1175_v21  ;;  %v7960_v21 = vld [vmem:[%s9254_s11 + $0x5e0] ss:$16 sps:$4 sm:$0xff]  }
  0xfd   : > { %5224 = vmatpush1.bf16.msra.mxu0 %v7870_v20  ;;  %5716 = vmatpush1.bf16.msra.mxu1 %v7873_v22  ;;  %v7965_v20 = vld [vmem:[%s9254_s11 + $0x5ec] ss:$16 sps:$4 sm:$0xff]   ;;  %v7963_v22 = vld [vmem:[%s9254_s11 + $0x5e8] ss:$16 sps:$4 sm:$0xff]  }
  0xfe   : > { %5225 = vmatprep.subr.bf16.mxu0 %v7878_v23  ;;  %5717 = vmatprep.subr.bf16.mxu1 %v7881_v24  ;;  %v7969_v23 = vld [vmem:[%s9254_s11 + $0x604] ss:$16 sps:$4 sm:$0xff]   ;;  %v7972_v24 = vld [vmem:[%s9254_s11 + $0x60c] ss:$16 sps:$4 sm:$0xff]  }
  0xff   : > { %5255 = vmatprep.mubr.bf16.mxu0 %v9430_v25  ;;  %5747 = vmatprep.mubr.bf16.mxu1 %v9430_v25 }
 0x101   : > { %5226 = vmatpush1.bf16.msra.mxu0 %v7876_v26  ;;  %5718 = vmatpush1.bf16.msra.mxu1 %v7879_v13  ;;  %v7967_v26 = vld [vmem:[%s9254_s11 + $0x600] ss:$16 sps:$4 sm:$0xff]   ;;  %v9497_v13 = vrot.slane %v9415_v15, %v9315_v49 }
 0x102   : > { %5227 = vmatprep.subr.bf16.mxu0 %v7884_v27  ;;  %5719 = vmatprep.subr.bf16.mxu1 %v7887_v28  ;;  %v7970_v27 = vld [vmem:[%s9254_s11 + $0x608] ss:$16 sps:$4 sm:$0xff]   ;;  %v7975_v28 = vld [vmem:[%s9254_s11 + $0x624] ss:$16 sps:$4 sm:$0xff]   ;;  %v7973_v15 = vld [vmem:[%s9254_s11 + $0x620] ss:$16 sps:$4 sm:$0xff]  }
 0x105   : > { %5228 = vmatpush1.bf16.msra.mxu0 %v7882_v29  ;;  %5720 = vmatpush1.bf16.msra.mxu1 %v7885_v30  ;;  %v7978_v29 = vld [vmem:[%s9254_s11 + $0x62c] ss:$16 sps:$4 sm:$0xff]   ;;  %v1178_v30 = vcombine.high %v9430_v25, %v9430_v25  ;;  %v7979_v25 = vld [vmem:[%s9254_s11 + $0x640] ss:$16 sps:$4 sm:$0xff]  }
 0x106   : > { %5229 = vmatprep.subr.bf16.mxu0 %v7890_v31  ;;  %5721 = vmatprep.subr.bf16.mxu1 %v7893_v32  ;;  %v7976_v31 = vld [vmem:[%s9254_s11 + $0x628] ss:$16 sps:$4 sm:$0xff]   ;;  %v7981_v32 = vld [vmem:[%s9254_s11 + $0x644] ss:$16 sps:$4 sm:$0xff]  }
 0x109   : > { %5230 = vmatpush1.bf16.msra.mxu0 %v7888_v33  ;;  %5722 = vmatpush1.bf16.msra.mxu1 %v7891_v34  ;;  %v7984_v33 = vld [vmem:[%s9254_s11 + $0x64c] ss:$16 sps:$4 sm:$0xff]   ;;  %v7982_v34 = vld [vmem:[%s9254_s11 + $0x648] ss:$16 sps:$4 sm:$0xff]  }
 0x10a   : > { %5231 = vmatprep.subr.bf16.mxu0 %v7896_v35  ;;  %5723 = vmatprep.subr.bf16.mxu1 %v7899_v36  ;;  %v7987_v35 = vld [vmem:[%s9254_s11 + $0x664] ss:$16 sps:$4 sm:$0xff]   ;;  %v7990_v36 = vld [vmem:[%s9254_s11 + $0x66c] ss:$16 sps:$4 sm:$0xff]  }
 0x10d   : > { %5232 = vmatpush1.bf16.msra.mxu0 %v7894_v37  ;;  %5724 = vmatpush1.bf16.msra.mxu1 %v7897_v38  ;;  %v7985_v37 = vld [vmem:[%s9254_s11 + $0x660] ss:$16 sps:$4 sm:$0xff]   ;;  %v7988_v38 = vld [vmem:[%s9254_s11 + $0x668] ss:$16 sps:$4 sm:$0xff]  }
 0x10e   : > { %5233 = vmatprep.subr.bf16.mxu0 %v7902_v39  ;;  %5725 = vmatprep.subr.bf16.mxu1 %v7905_v40  ;;  %v7993_v39 = vld [vmem:[%s9254_s11 + $0x684] ss:$16 sps:$4 sm:$0xff]   ;;  %v7996_v40 = vld [vmem:[%s9254_s11 + $0x68c] ss:$16 sps:$4 sm:$0xff]  }
 0x111   : > { %5234 = vmatpush1.bf16.msra.mxu0 %v7900_v41  ;;  %5726 = vmatpush1.bf16.msra.mxu1 %v7903_v43  ;;  %v7991_v41 = vld [vmem:[%s9254_s11 + $0x680] ss:$16 sps:$4 sm:$0xff]   ;;  %v7994_v43 = vld [vmem:[%s9254_s11 + $0x688] ss:$16 sps:$4 sm:$0xff]  }
 0x112   : > { %5235 = vmatprep.subr.bf16.mxu0 %v7908_v44  ;;  %5727 = vmatprep.subr.bf16.mxu1 %v7911_v45  ;;  %v7999_v44 = vld [vmem:[%s9254_s11 + $0x6a4] ss:$16 sps:$4 sm:$0xff]   ;;  %v8002_v45 = vld [vmem:[%s9254_s11 + $0x6ac] ss:$16 sps:$4 sm:$0xff]  }
 0x115   : > { %5236 = vmatpush1.bf16.msra.mxu0 %v7906_v46  ;;  %5728 = vmatpush1.bf16.msra.mxu1 %v7909_v47  ;;  %v7997_v46 = vld [vmem:[%s9254_s11 + $0x6a0] ss:$16 sps:$4 sm:$0xff]   ;;  %v8000_v47 = vld [vmem:[%s9254_s11 + $0x6a8] ss:$16 sps:$4 sm:$0xff]  }
 0x116   : > { %5237 = vmatprep.subr.bf16.mxu0 %v7914_v48  ;;  %5729 = vmatprep.subr.bf16.mxu1 %v7917_v50  ;;  %v8005_v48 = vld [vmem:[%s9254_s11 + $0x6c4] ss:$16 sps:$4 sm:$0xff]   ;;  %v8008_v50 = vld [vmem:[%s9254_s11 + $0x6cc] ss:$16 sps:$4 sm:$0xff]  }
 0x119   : > { %5238 = vmatpush1.bf16.msra.mxu0 %v7912_v51  ;;  %5730 = vmatpush1.bf16.msra.mxu1 %v7915_v53  ;;  %v8003_v51 = vld [vmem:[%s9254_s11 + $0x6c0] ss:$16 sps:$4 sm:$0xff]   ;;  %v8006_v53 = vld [vmem:[%s9254_s11 + $0x6c8] ss:$16 sps:$4 sm:$0xff]  }
 0x11a   : > { %5239 = vmatprep.subr.bf16.mxu0 %v7920_v54  ;;  %5731 = vmatprep.subr.bf16.mxu1 %v7923_v55  ;;  %v8011_v54 = vld [vmem:[%s9254_s11 + $0x6e4] ss:$16 sps:$4 sm:$0xff]   ;;  %v8014_v55 = vld [vmem:[%s9254_s11 + $0x6ec] ss:$16 sps:$4 sm:$0xff]  }
 0x11d   : > { %5240 = vmatpush1.bf16.msra.mxu0 %v7918_v56  ;;  %5732 = vmatpush1.bf16.msra.mxu1 %v7921_v57  ;;  %v8009_v56 = vld [vmem:[%s9254_s11 + $0x6e0] ss:$16 sps:$4 sm:$0xff]   ;;  %v8012_v57 = vld [vmem:[%s9254_s11 + $0x6e8] ss:$16 sps:$4 sm:$0xff]  }
 0x11e   : > { %5241 = vmatprep.subr.bf16.mxu0 %v7926_v58  ;;  %5733 = vmatprep.subr.bf16.mxu1 %v7929_v59  ;;  %v8017_v58 = vld [vmem:[%s9254_s11 + $0x704] ss:$16 sps:$4 sm:$0xff]   ;;  %v8020_v59 = vld [vmem:[%s9254_s11 + $0x70c] ss:$16 sps:$4 sm:$0xff]  }
 0x121   : > { %5242 = vmatpush1.bf16.msra.mxu0 %v7924_v60  ;;  %5734 = vmatpush1.bf16.msra.mxu1 %v7927_v61  ;;  %v8015_v60 = vld [vmem:[%s9254_s11 + $0x700] ss:$16 sps:$4 sm:$0xff]   ;;  %v8018_v61 = vld [vmem:[%s9254_s11 + $0x708] ss:$16 sps:$4 sm:$0xff]  }
 0x122   : > { %5243 = vmatprep.subr.bf16.mxu0 %v7932_v62  ;;  %5735 = vmatprep.subr.bf16.mxu1 %v7935_v63  ;;  %v8023_v62 = vld [vmem:[%s9254_s11 + $0x724] ss:$16 sps:$4 sm:$0xff]   ;;  %v8026_v63 = vld [vmem:[%s9254_s11 + $0x72c] ss:$16 sps:$4 sm:$0xff]  }
 0x125   : > { %5244 = vmatpush1.bf16.msra.mxu0 %v7930_v0  ;;  %5736 = vmatpush1.bf16.msra.mxu1 %v7933_v1  ;;  %v8021_v0 = vld [vmem:[%s9254_s11 + $0x720] ss:$16 sps:$4 sm:$0xff]   ;;  %v8024_v1 = vld [vmem:[%s9254_s11 + $0x728] ss:$16 sps:$4 sm:$0xff]  }
 0x126   : > { %5245 = vmatprep.subr.bf16.mxu0 %v7938_v2  ;;  %5737 = vmatprep.subr.bf16.mxu1 %v7941_v3  ;;  %v8029_v2 = vld [vmem:[%s9254_s11 + $0x744] ss:$16 sps:$4 sm:$0xff]   ;;  %v8032_v3 = vld [vmem:[%s9254_s11 + $0x74c] ss:$16 sps:$4 sm:$0xff]  }
 0x129   : > { %5246 = vmatpush1.bf16.msra.mxu0 %v7936_v4  ;;  %5738 = vmatpush1.bf16.msra.mxu1 %v7939_v5  ;;  %v8027_v4 = vld [vmem:[%s9254_s11 + $0x740] ss:$16 sps:$4 sm:$0xff]   ;;  %v8030_v5 = vld [vmem:[%s9254_s11 + $0x748] ss:$16 sps:$4 sm:$0xff]  }
 0x12a   : > { %5247 = vmatprep.subr.bf16.mxu0 %v7944_v6  ;;  %5739 = vmatprep.subr.bf16.mxu1 %v7947_v7  ;;  %v8035_v6 = vld [vmem:[%s9254_s11 + $0x764] ss:$16 sps:$4 sm:$0xff]   ;;  %v8038_v7 = vld [vmem:[%s9254_s11 + $0x76c] ss:$16 sps:$4 sm:$0xff]  }
 0x12d   : > { %5248 = vmatpush1.bf16.msra.mxu0 %v7942_v8  ;;  %5740 = vmatpush1.bf16.msra.mxu1 %v7945_v9  ;;  %v8033_v8 = vld [vmem:[%s9254_s11 + $0x760] ss:$16 sps:$4 sm:$0xff]   ;;  %v8036_v9 = vld [vmem:[%s9254_s11 + $0x768] ss:$16 sps:$4 sm:$0xff]  }
 0x12e   : > { %5249 = vmatprep.subr.bf16.mxu0 %v7950_v10  ;;  %5741 = vmatprep.subr.bf16.mxu1 %v7953_v11  ;;  %v8041_v10 = vld [vmem:[%s9254_s11 + $0x784] ss:$16 sps:$4 sm:$0xff]   ;;  %v8044_v11 = vld [vmem:[%s9254_s11 + $0x78c] ss:$16 sps:$4 sm:$0xff]  }
 0x131   : > { %5250 = vmatpush1.bf16.msra.mxu0 %v7948_v12  ;;  %5742 = vmatpush1.bf16.msra.mxu1 %v7951_v14  ;;  %v8039_v12 = vld [vmem:[%s9254_s11 + $0x780] ss:$16 sps:$4 sm:$0xff]   ;;  %v8042_v14 = vld [vmem:[%s9254_s11 + $0x788] ss:$16 sps:$4 sm:$0xff]  }
 0x132   : > { %5251 = vmatprep.subr.bf16.mxu0 %v7956_v16  ;;  %5743 = vmatprep.subr.bf16.mxu1 %v7959_v52  ;;  %v8047_v16 = vld [vmem:[%s9254_s11 + $0x7a4] ss:$16 sps:$4 sm:$0xff]   ;;  %v8050_v52 = vld [vmem:[%s9254_s11 + $0x7ac] ss:$16 sps:$4 sm:$0xff]  }
 0x135   : > { %5252 = vmatpush1.bf16.msra.mxu0 %v7954_v17  ;;  %5744 = vmatpush1.bf16.msra.mxu1 %v7957_v18  ;;  %v8045_v17 = vld [vmem:[%s9254_s11 + $0x7a0] ss:$16 sps:$4 sm:$0xff]   ;;  %v8048_v18 = vld [vmem:[%s9254_s11 + $0x7a8] ss:$16 sps:$4 sm:$0xff]  }
 0x136   : > { %5253 = vmatprep.subr.bf16.mxu0 %v7962_v19  ;;  %5745 = vmatprep.subr.bf16.mxu1 %v7965_v20  ;;  %v8053_v19 = vld [vmem:[%s9254_s11 + $0x7c4] ss:$16 sps:$4 sm:$0xff]   ;;  %v8056_v20 = vld [vmem:[%s9254_s11 + $0x7cc] ss:$16 sps:$4 sm:$0xff]  }
 0x139   : > { %5254 = vmatpush1.bf16.msra.mxu0 %v7960_v21  ;;  %5746 = vmatpush1.bf16.msra.mxu1 %v7963_v22  ;;  %v9561_v21 = vld.sshfl [vmem:[%s10260_s0 + $0x8] sm:$0xff pattern:$0x75316420]  ;;  %v8051_v22 = vld [vmem:[%s9254_s11 + $0x7c0] ss:$16 sps:$4 sm:$0xff]  }
 0x13a   : > { %5264 = vmatprep.subr.bf16.mxu0 %v7969_v23  ;;  %5756 = vmatprep.subr.bf16.mxu1 %v7972_v24  ;;  %v8054_v23 = vld [vmem:[%s9254_s11 + $0x7c8] ss:$16 sps:$4 sm:$0xff]   ;;  %v8059_v24 = vld [vmem:[%s9254_s11 + $0x7e4] ss:$16 sps:$4 sm:$0xff]  }
 0x13c   : > { %5256 = vmatmul.mubr.bf16.vlgmr.msra.gmra.mrb[0].mxu0 %v9497_v13  ;;  %5748 = vmatmul.mubr.bf16.vlgmr.msra.gmra.mrb[0].mxu1 %v9497_v13 }
 0x13d   : > { %5265 = vmatpush1.bf16.msra.mxu0 %v7967_v26  ;;  %5757 = vmatpush1.bf16.msra.mxu1 %v7970_v27  ;;  %v8062_v26 = vld [vmem:[%s9254_s11 + $0x7ec] ss:$16 sps:$4 sm:$0xff]   ;;  %v8057_v27 = vld [vmem:[%s9254_s11 + $0x7e0] ss:$16 sps:$4 sm:$0xff]  }
 0x13e   : > { %5266 = vmatprep.subr.bf16.mxu0 %v7975_v28  ;;  %5758 = vmatprep.subr.bf16.mxu1 %v7978_v29  ;;  %v8060_v28 = vld [vmem:[%s9254_s11 + $0x7e8] ss:$16 sps:$4 sm:$0xff]   ;;  %v8065_v29 = vld [vmem:[%s9254_s11 + $0x804] ss:$16 sps:$4 sm:$0xff]  }
 0x13f   : > { %5296 = vmatprep.mubr.bf16.mxu0 %v1178_v30  ;;  %5788 = vmatprep.mubr.bf16.mxu1 %v1178_v30  ;;  %v8068_v30 = vld [vmem:[%s9254_s11 + $0x80c] ss:$16 sps:$4 sm:$0xff]  }
 0x141   : > { %5267 = vmatpush1.bf16.msra.mxu0 %v7973_v15  ;;  %5759 = vmatpush1.bf16.msra.mxu1 %v7976_v31  ;;  %v1194_v15 = vcombine.high %v9561_v21, %v9561_v21  ;;  %v1176_v31 = vcombine.high %v9497_v13, %v9497_v13  ;;  %v8069_v13 = vld [vmem:[%s9254_s11 + $0x820] ss:$16 sps:$4 sm:$0xff]  }
 0x142   : > { %5268 = vmatprep.subr.bf16.mxu0 %v7981_v32  ;;  %5760 = vmatprep.subr.bf16.mxu1 %v7984_v33  ;;  %v8063_v32 = vld [vmem:[%s9254_s11 + $0x800] ss:$16 sps:$4 sm:$0xff]   ;;  %v8066_v33 = vld [vmem:[%s9254_s11 + $0x808] ss:$16 sps:$4 sm:$0xff]  }
 0x145   : > { %5269 = vmatpush1.bf16.msra.mxu0 %v7979_v25  ;;  %5761 = vmatpush1.bf16.msra.mxu1 %v7982_v34  ;;  %v8071_v25 = vld [vmem:[%s9254_s11 + $0x824] ss:$16 sps:$4 sm:$0xff]   ;;  %v8074_v34 = vld [vmem:[%s9254_s11 + $0x82c] ss:$16 sps:$4 sm:$0xff]  }
 0x146   : > { %5270 = vmatprep.subr.bf16.mxu0 %v7987_v35  ;;  %5762 = vmatprep.subr.bf16.mxu1 %v7990_v36  ;;  %v9580_v35 = vrot.slane %v1194_v15, %v9315_v49  ;;  %v8072_v36 = vld [vmem:[%s9254_s11 + $0x828] ss:$16 sps:$4 sm:$0xff]   ;;  %v8155_v15 = vld [vmem:[%s9254_s11 + $0x9e4] ss:$16 sps:$4 sm:$0xff]  }
 0x149   : > { %5271 = vmatpush1.bf16.msra.mxu0 %v7985_v37  ;;  %5763 = vmatpush1.bf16.msra.mxu1 %v7988_v38  ;;  %v8077_v37 = vld [vmem:[%s9254_s11 + $0x844] ss:$16 sps:$4 sm:$0xff]   ;;  %v8080_v38 = vld [vmem:[%s9254_s11 + $0x84c] ss:$16 sps:$4 sm:$0xff]  }
 0x14a   : > { %5272 = vmatprep.subr.bf16.mxu0 %v7993_v39  ;;  %5764 = vmatprep.subr.bf16.mxu1 %v7996_v40  ;;  %v8075_v39 = vld [vmem:[%s9254_s11 + $0x840] ss:$16 sps:$4 sm:$0xff]   ;;  %v8078_v40 = vld [vmem:[%s9254_s11 + $0x848] ss:$16 sps:$4 sm:$0xff]  }
 0x14d   : > { %5273 = vmatpush1.bf16.msra.mxu0 %v7991_v41  ;;  %5765 = vmatpush1.bf16.msra.mxu1 %v7994_v43  ;;  %v8083_v41 = vld [vmem:[%s9254_s11 + $0x864] ss:$16 sps:$4 sm:$0xff]   ;;  %v8086_v43 = vld [vmem:[%s9254_s11 + $0x86c] ss:$16 sps:$4 sm:$0xff]  }
 0x14e   : > { %5274 = vmatprep.subr.bf16.mxu0 %v7999_v44  ;;  %5766 = vmatprep.subr.bf16.mxu1 %v8002_v45  ;;  %v8081_v44 = vld [vmem:[%s9254_s11 + $0x860] ss:$16 sps:$4 sm:$0xff]   ;;  %v8084_v45 = vld [vmem:[%s9254_s11 + $0x868] ss:$16 sps:$4 sm:$0xff]  }
 0x151   : > { %5275 = vmatpush1.bf16.msra.mxu0 %v7997_v46  ;;  %5767 = vmatpush1.bf16.msra.mxu1 %v8000_v47  ;;  %v8089_v46 = vld [vmem:[%s9254_s11 + $0x884] ss:$16 sps:$4 sm:$0xff]   ;;  %v8092_v47 = vld [vmem:[%s9254_s11 + $0x88c] ss:$16 sps:$4 sm:$0xff]  }
 0x152   : > { %5276 = vmatprep.subr.bf16.mxu0 %v8005_v48  ;;  %5768 = vmatprep.subr.bf16.mxu1 %v8008_v50  ;;  %v8087_v48 = vld [vmem:[%s9254_s11 + $0x880] ss:$16 sps:$4 sm:$0xff]   ;;  %v8090_v50 = vld [vmem:[%s9254_s11 + $0x888] ss:$16 sps:$4 sm:$0xff]  }
 0x155   : > { %5277 = vmatpush1.bf16.msra.mxu0 %v8003_v51  ;;  %5769 = vmatpush1.bf16.msra.mxu1 %v8006_v53  ;;  %v8095_v51 = vld [vmem:[%s9254_s11 + $0x8a4] ss:$16 sps:$4 sm:$0xff]   ;;  %v8098_v53 = vld [vmem:[%s9254_s11 + $0x8ac] ss:$16 sps:$4 sm:$0xff]  }
 0x156   : > { %5278 = vmatprep.subr.bf16.mxu0 %v8011_v54  ;;  %5770 = vmatprep.subr.bf16.mxu1 %v8014_v55  ;;  %v8093_v54 = vld [vmem:[%s9254_s11 + $0x8a0] ss:$16 sps:$4 sm:$0xff]   ;;  %v8096_v55 = vld [vmem:[%s9254_s11 + $0x8a8] ss:$16 sps:$4 sm:$0xff]  }
 0x159   : > { %5279 = vmatpush1.bf16.msra.mxu0 %v8009_v56  ;;  %5771 = vmatpush1.bf16.msra.mxu1 %v8012_v57  ;;  %v8101_v56 = vld [vmem:[%s9254_s11 + $0x8c4] ss:$16 sps:$4 sm:$0xff]   ;;  %v8104_v57 = vld [vmem:[%s9254_s11 + $0x8cc] ss:$16 sps:$4 sm:$0xff]  }
 0x15a   : > { %5280 = vmatprep.subr.bf16.mxu0 %v8017_v58  ;;  %5772 = vmatprep.subr.bf16.mxu1 %v8020_v59  ;;  %v8099_v58 = vld [vmem:[%s9254_s11 + $0x8c0] ss:$16 sps:$4 sm:$0xff]   ;;  %v8102_v59 = vld [vmem:[%s9254_s11 + $0x8c8] ss:$16 sps:$4 sm:$0xff]  }
 0x15d   : > { %5281 = vmatpush1.bf16.msra.mxu0 %v8015_v60  ;;  %5773 = vmatpush1.bf16.msra.mxu1 %v8018_v61  ;;  %v8107_v60 = vld [vmem:[%s9254_s11 + $0x8e4] ss:$16 sps:$4 sm:$0xff]   ;;  %v8110_v61 = vld [vmem:[%s9254_s11 + $0x8ec] ss:$16 sps:$4 sm:$0xff]  }
 0x15e   : > { %5282 = vmatprep.subr.bf16.mxu0 %v8023_v62  ;;  %5774 = vmatprep.subr.bf16.mxu1 %v8026_v63  ;;  %v8105_v62 = vld [vmem:[%s9254_s11 + $0x8e0] ss:$16 sps:$4 sm:$0xff]   ;;  %v8108_v63 = vld [vmem:[%s9254_s11 + $0x8e8] ss:$16 sps:$4 sm:$0xff]  }
 0x161   : > { %5283 = vmatpush1.bf16.msra.mxu0 %v8021_v0  ;;  %5775 = vmatpush1.bf16.msra.mxu1 %v8024_v1  ;;  %v8113_v0 = vld [vmem:[%s9254_s11 + $0x904] ss:$16 sps:$4 sm:$0xff]   ;;  %v8116_v1 = vld [vmem:[%s9254_s11 + $0x90c] ss:$16 sps:$4 sm:$0xff]  }
 0x162   : > { %5284 = vmatprep.subr.bf16.mxu0 %v8029_v2  ;;  %5776 = vmatprep.subr.bf16.mxu1 %v8032_v3  ;;  %v8111_v2 = vld [vmem:[%s9254_s11 + $0x900] ss:$16 sps:$4 sm:$0xff]   ;;  %v8114_v3 = vld [vmem:[%s9254_s11 + $0x908] ss:$16 sps:$4 sm:$0xff]  }
 0x165   : > { %5285 = vmatpush1.bf16.msra.mxu0 %v8027_v4  ;;  %5777 = vmatpush1.bf16.msra.mxu1 %v8030_v5  ;;  %v8119_v4 = vld [vmem:[%s9254_s11 + $0x924] ss:$16 sps:$4 sm:$0xff]   ;;  %v8122_v5 = vld [vmem:[%s9254_s11 + $0x92c] ss:$16 sps:$4 sm:$0xff]  }
 0x166   : > { %5286 = vmatprep.subr.bf16.mxu0 %v8035_v6  ;;  %5778 = vmatprep.subr.bf16.mxu1 %v8038_v7  ;;  %v8117_v6 = vld [vmem:[%s9254_s11 + $0x920] ss:$16 sps:$4 sm:$0xff]   ;;  %v8120_v7 = vld [vmem:[%s9254_s11 + $0x928] ss:$16 sps:$4 sm:$0xff]  }
 0x169   : > { %5287 = vmatpush1.bf16.msra.mxu0 %v8033_v8  ;;  %5779 = vmatpush1.bf16.msra.mxu1 %v8036_v9  ;;  %v8125_v8 = vld [vmem:[%s9254_s11 + $0x944] ss:$16 sps:$4 sm:$0xff]   ;;  %v8128_v9 = vld [vmem:[%s9254_s11 + $0x94c] ss:$16 sps:$4 sm:$0xff]  }
 0x16a   : > { %5288 = vmatprep.subr.bf16.mxu0 %v8041_v10  ;;  %5780 = vmatprep.subr.bf16.mxu1 %v8044_v11  ;;  %v8123_v10 = vld [vmem:[%s9254_s11 + $0x940] ss:$16 sps:$4 sm:$0xff]   ;;  %v8126_v11 = vld [vmem:[%s9254_s11 + $0x948] ss:$16 sps:$4 sm:$0xff]  }
 0x16d   : > { %5289 = vmatpush1.bf16.msra.mxu0 %v8039_v12  ;;  %5781 = vmatpush1.bf16.msra.mxu1 %v8042_v14  ;;  %v8131_v12 = vld [vmem:[%s9254_s11 + $0x964] ss:$16 sps:$4 sm:$0xff]   ;;  %v8134_v14 = vld [vmem:[%s9254_s11 + $0x96c] ss:$16 sps:$4 sm:$0xff]  }
 0x16e   : > { %5290 = vmatprep.subr.bf16.mxu0 %v8047_v16  ;;  %5782 = vmatprep.subr.bf16.mxu1 %v8050_v52  ;;  %v8129_v16 = vld [vmem:[%s9254_s11 + $0x960] ss:$16 sps:$4 sm:$0xff]   ;;  %v8132_v52 = vld [vmem:[%s9254_s11 + $0x968] ss:$16 sps:$4 sm:$0xff]  }
 0x171   : > { %5291 = vmatpush1.bf16.msra.mxu0 %v8045_v17  ;;  %5783 = vmatpush1.bf16.msra.mxu1 %v8048_v18  ;;  %v8137_v17 = vld [vmem:[%s9254_s11 + $0x984] ss:$16 sps:$4 sm:$0xff]   ;;  %v8140_v18 = vld [vmem:[%s9254_s11 + $0x98c] ss:$16 sps:$4 sm:$0xff]  }
 0x172   : > { %5292 = vmatprep.subr.bf16.mxu0 %v8053_v19  ;;  %5784 = vmatprep.subr.bf16.mxu1 %v8056_v20  ;;  %v8135_v19 = vld [vmem:[%s9254_s11 + $0x980] ss:$16 sps:$4 sm:$0xff]   ;;  %v8138_v20 = vld [vmem:[%s9254_s11 + $0x988] ss:$16 sps:$4 sm:$0xff]  }
 0x175   : > { %5293 = vmatpush1.bf16.msra.mxu0 %v8051_v22  ;;  %5785 = vmatpush1.bf16.msra.mxu1 %v8054_v23  ;;  %v8143_v22 = vld [vmem:[%s9254_s11 + $0x9a4] ss:$16 sps:$4 sm:$0xff]   ;;  %v8146_v23 = vld [vmem:[%s9254_s11 + $0x9ac] ss:$16 sps:$4 sm:$0xff]  }
 0x176   : > { %5294 = vmatprep.subr.bf16.mxu0 %v8059_v24  ;;  %5786 = vmatprep.subr.bf16.mxu1 %v8062_v26  ;;  %v8141_v24 = vld [vmem:[%s9254_s11 + $0x9a0] ss:$16 sps:$4 sm:$0xff]   ;;  %v8144_v26 = vld [vmem:[%s9254_s11 + $0x9a8] ss:$16 sps:$4 sm:$0xff]  }
 0x179   : > { %5295 = vmatpush1.bf16.msra.mxu0 %v8057_v27  ;;  %5787 = vmatpush1.bf16.msra.mxu1 %v8060_v28  ;;  %v8149_v27 = vld [vmem:[%s9254_s11 + $0x9c4] ss:$16 sps:$4 sm:$0xff]   ;;  %v8152_v28 = vld [vmem:[%s9254_s11 + $0x9cc] ss:$16 sps:$4 sm:$0xff]  }
 0x17a   : > { %5305 = vmatprep.subr.bf16.mxu0 %v8065_v29  ;;  %5797 = vmatprep.subr.bf16.mxu1 %v8068_v30  ;;  %v8147_v29 = vld [vmem:[%s9254_s11 + $0x9c0] ss:$16 sps:$4 sm:$0xff]   ;;  %v8150_v30 = vld [vmem:[%s9254_s11 + $0x9c8] ss:$16 sps:$4 sm:$0xff]  }
 0x17c   : > { %5297 = vmatmul.mubr.bf16.vlgmr.msra.gmra.mrb[0].mxu0 %v1176_v31  ;;  %5789 = vmatmul.mubr.bf16.vlgmr.msra.gmra.mrb[0].mxu1 %v1176_v31  ;;  %v8158_v31 = vld [vmem:[%s9254_s11 + $0x9ec] ss:$16 sps:$4 sm:$0xff]  }
 0x17d   : > { %5306 = vmatpush1.bf16.msra.mxu0 %v8063_v32  ;;  %5798 = vmatpush1.bf16.msra.mxu1 %v8066_v33  ;;  %v8153_v32 = vld [vmem:[%s9254_s11 + $0x9e0] ss:$16 sps:$4 sm:$0xff]   ;;  %v8156_v33 = vld [vmem:[%s9254_s11 + $0x9e8] ss:$16 sps:$4 sm:$0xff]  }
 0x17e   : > { %5307 = vmatprep.subr.bf16.mxu0 %v8071_v25  ;;  %5799 = vmatprep.subr.bf16.mxu1 %v8074_v34  ;;  %v8161_v25 = vld [vmem:[%s9254_s11 + $0xa04] ss:$16 sps:$4 sm:$0xff]   ;;  %v8164_v34 = vld [vmem:[%s9254_s11 + $0xa0c] ss:$16 sps:$4 sm:$0xff]  }
 0x17f   : > { %5337 = vmatprep.mubr.bf16.mxu0 %v9580_v35  ;;  %5829 = vmatprep.mubr.bf16.mxu1 %v9580_v35 }
 0x181   : > { %5308 = vmatpush1.bf16.msra.mxu0 %v8069_v13  ;;  %5800 = vmatpush1.bf16.msra.mxu1 %v8072_v36  ;;  %v9646_v13 = vrot.slane %v9561_v21, %v9315_v49  ;;  %v8159_v36 = vld [vmem:[%s9254_s11 + $0xa00] ss:$16 sps:$4 sm:$0xff]  }
 0x182   : > { %5309 = vmatprep.subr.bf16.mxu0 %v8077_v37  ;;  %5801 = vmatprep.subr.bf16.mxu1 %v8080_v38  ;;  %v8162_v37 = vld [vmem:[%s9254_s11 + $0xa08] ss:$16 sps:$4 sm:$0xff]   ;;  %v8167_v38 = vld [vmem:[%s9254_s11 + $0xa24] ss:$16 sps:$4 sm:$0xff]   ;;  %v8165_v21 = vld [vmem:[%s9254_s11 + $0xa20] ss:$16 sps:$4 sm:$0xff]  }
 0x185   : > { %5310 = vmatpush1.bf16.msra.mxu0 %v8075_v39  ;;  %5802 = vmatpush1.bf16.msra.mxu1 %v8078_v40  ;;  %v8170_v39 = vld [vmem:[%s9254_s11 + $0xa2c] ss:$16 sps:$4 sm:$0xff]   ;;  %v1226_v40 = vcombine.high %v9580_v35, %v9580_v35  ;;  %v8171_v35 = vld [vmem:[%s9254_s11 + $0xa40] ss:$16 sps:$4 sm:$0xff]  }
 0x186   : > { %5311 = vmatprep.subr.bf16.mxu0 %v8083_v41  ;;  %5803 = vmatprep.subr.bf16.mxu1 %v8086_v43  ;;  %v8168_v41 = vld [vmem:[%s9254_s11 + $0xa28] ss:$16 sps:$4 sm:$0xff]   ;;  %v8173_v43 = vld [vmem:[%s9254_s11 + $0xa44] ss:$16 sps:$4 sm:$0xff]  }
 0x189   : > { %5312 = vmatpush1.bf16.msra.mxu0 %v8081_v44  ;;  %5804 = vmatpush1.bf16.msra.mxu1 %v8084_v45  ;;  %v8176_v44 = vld [vmem:[%s9254_s11 + $0xa4c] ss:$16 sps:$4 sm:$0xff]   ;;  %v8174_v45 = vld [vmem:[%s9254_s11 + $0xa48] ss:$16 sps:$4 sm:$0xff]  }
 0x18a   : > { %5313 = vmatprep.subr.bf16.mxu0 %v8089_v46  ;;  %5805 = vmatprep.subr.bf16.mxu1 %v8092_v47  ;;  %v8179_v46 = vld [vmem:[%s9254_s11 + $0xa64] ss:$16 sps:$4 sm:$0xff]   ;;  %v8182_v47 = vld [vmem:[%s9254_s11 + $0xa6c] ss:$16 sps:$4 sm:$0xff]  }
 0x18d   : > { %5314 = vmatpush1.bf16.msra.mxu0 %v8087_v48  ;;  %5806 = vmatpush1.bf16.msra.mxu1 %v8090_v50  ;;  %v8177_v48 = vld [vmem:[%s9254_s11 + $0xa60] ss:$16 sps:$4 sm:$0xff]   ;;  %v8180_v50 = vld [vmem:[%s9254_s11 + $0xa68] ss:$16 sps:$4 sm:$0xff]  }
 0x18e   : > { %5315 = vmatprep.subr.bf16.mxu0 %v8095_v51  ;;  %5807 = vmatprep.subr.bf16.mxu1 %v8098_v53  ;;  %v8185_v51 = vld [vmem:[%s9254_s11 + $0xa84] ss:$16 sps:$4 sm:$0xff]   ;;  %v8188_v53 = vld [vmem:[%s9254_s11 + $0xa8c] ss:$16 sps:$4 sm:$0xff]  }
 0x191   : > { %5316 = vmatpush1.bf16.msra.mxu0 %v8093_v54  ;;  %5808 = vmatpush1.bf16.msra.mxu1 %v8096_v55  ;;  %v8183_v54 = vld [vmem:[%s9254_s11 + $0xa80] ss:$16 sps:$4 sm:$0xff]   ;;  %v8186_v55 = vld [vmem:[%s9254_s11 + $0xa88] ss:$16 sps:$4 sm:$0xff]  }
 0x192   : > { %5317 = vmatprep.subr.bf16.mxu0 %v8101_v56  ;;  %5809 = vmatprep.subr.bf16.mxu1 %v8104_v57  ;;  %v8191_v56 = vld [vmem:[%s9254_s11 + $0xaa4] ss:$16 sps:$4 sm:$0xff]   ;;  %v8194_v57 = vld [vmem:[%s9254_s11 + $0xaac] ss:$16 sps:$4 sm:$0xff]  }
 0x195   : > { %5318 = vmatpush1.bf16.msra.mxu0 %v8099_v58  ;;  %5810 = vmatpush1.bf16.msra.mxu1 %v8102_v59  ;;  %v8189_v58 = vld [vmem:[%s9254_s11 + $0xaa0] ss:$16 sps:$4 sm:$0xff]   ;;  %v8192_v59 = vld [vmem:[%s9254_s11 + $0xaa8] ss:$16 sps:$4 sm:$0xff]  }
 0x196   : > { %5319 = vmatprep.subr.bf16.mxu0 %v8107_v60  ;;  %5811 = vmatprep.subr.bf16.mxu1 %v8110_v61  ;;  %v8197_v60 = vld [vmem:[%s9254_s11 + $0xac4] ss:$16 sps:$4 sm:$0xff]   ;;  %v8200_v61 = vld [vmem:[%s9254_s11 + $0xacc] ss:$16 sps:$4 sm:$0xff]  }
 0x199   : > { %5320 = vmatpush1.bf16.msra.mxu0 %v8105_v62  ;;  %5812 = vmatpush1.bf16.msra.mxu1 %v8108_v63  ;;  %v8195_v62 = vld [vmem:[%s9254_s11 + $0xac0] ss:$16 sps:$4 sm:$0xff]   ;;  %v8198_v63 = vld [vmem:[%s9254_s11 + $0xac8] ss:$16 sps:$4 sm:$0xff]  }
 0x19a   : > { %5321 = vmatprep.subr.bf16.mxu0 %v8113_v0  ;;  %5813 = vmatprep.subr.bf16.mxu1 %v8116_v1  ;;  %v8203_v0 = vld [vmem:[%s9254_s11 + $0xae4] ss:$16 sps:$4 sm:$0xff]   ;;  %v8206_v1 = vld [vmem:[%s9254_s11 + $0xaec] ss:$16 sps:$4 sm:$0xff]  }
 0x19d   : > { %5322 = vmatpush1.bf16.msra.mxu0 %v8111_v2  ;;  %5814 = vmatpush1.bf16.msra.mxu1 %v8114_v3  ;;  %v8201_v2 = vld [vmem:[%s9254_s11 + $0xae0] ss:$16 sps:$4 sm:$0xff]   ;;  %v8204_v3 = vld [vmem:[%s9254_s11 + $0xae8] ss:$16 sps:$4 sm:$0xff]  }
 0x19e   : > { %5323 = vmatprep.subr.bf16.mxu0 %v8119_v4  ;;  %5815 = vmatprep.subr.bf16.mxu1 %v8122_v5  ;;  %v8209_v4 = vld [vmem:[%s9254_s11 + $0xb04] ss:$16 sps:$4 sm:$0xff]   ;;  %v8212_v5 = vld [vmem:[%s9254_s11 + $0xb0c] ss:$16 sps:$4 sm:$0xff]  }
 0x1a1   : > { %5324 = vmatpush1.bf16.msra.mxu0 %v8117_v6  ;;  %5816 = vmatpush1.bf16.msra.mxu1 %v8120_v7  ;;  %v8207_v6 = vld [vmem:[%s9254_s11 + $0xb00] ss:$16 sps:$4 sm:$0xff]   ;;  %v8210_v7 = vld [vmem:[%s9254_s11 + $0xb08] ss:$16 sps:$4 sm:$0xff]  }
 0x1a2   : > { %5325 = vmatprep.subr.bf16.mxu0 %v8125_v8  ;;  %5817 = vmatprep.subr.bf16.mxu1 %v8128_v9  ;;  %v8215_v8 = vld [vmem:[%s9254_s11 + $0xb24] ss:$16 sps:$4 sm:$0xff]   ;;  %v8218_v9 = vld [vmem:[%s9254_s11 + $0xb2c] ss:$16 sps:$4 sm:$0xff]  }
 0x1a5   : > { %5326 = vmatpush1.bf16.msra.mxu0 %v8123_v10  ;;  %5818 = vmatpush1.bf16.msra.mxu1 %v8126_v11  ;;  %v8213_v10 = vld [vmem:[%s9254_s11 + $0xb20] ss:$16 sps:$4 sm:$0xff]   ;;  %v8216_v11 = vld [vmem:[%s9254_s11 + $0xb28] ss:$16 sps:$4 sm:$0xff]  }
 0x1a6   : > { %5327 = vmatprep.subr.bf16.mxu0 %v8131_v12  ;;  %5819 = vmatprep.subr.bf16.mxu1 %v8134_v14  ;;  %v8221_v12 = vld [vmem:[%s9254_s11 + $0xb44] ss:$16 sps:$4 sm:$0xff]   ;;  %v8224_v14 = vld [vmem:[%s9254_s11 + $0xb4c] ss:$16 sps:$4 sm:$0xff]  }
 0x1a9   : > { %5328 = vmatpush1.bf16.msra.mxu0 %v8129_v16  ;;  %5820 = vmatpush1.bf16.msra.mxu1 %v8132_v52  ;;  %v8219_v16 = vld [vmem:[%s9254_s11 + $0xb40] ss:$16 sps:$4 sm:$0xff]   ;;  %v8222_v52 = vld [vmem:[%s9254_s11 + $0xb48] ss:$16 sps:$4 sm:$0xff]  }
 0x1aa   : > { %5329 = vmatprep.subr.bf16.mxu0 %v8137_v17  ;;  %5821 = vmatprep.subr.bf16.mxu1 %v8140_v18  ;;  %v8227_v17 = vld [vmem:[%s9254_s11 + $0xb64] ss:$16 sps:$4 sm:$0xff]   ;;  %v8230_v18 = vld [vmem:[%s9254_s11 + $0xb6c] ss:$16 sps:$4 sm:$0xff]  }
 0x1ad   : > { %5330 = vmatpush1.bf16.msra.mxu0 %v8135_v19  ;;  %5822 = vmatpush1.bf16.msra.mxu1 %v8138_v20  ;;  %v8225_v19 = vld [vmem:[%s9254_s11 + $0xb60] ss:$16 sps:$4 sm:$0xff]   ;;  %v8228_v20 = vld [vmem:[%s9254_s11 + $0xb68] ss:$16 sps:$4 sm:$0xff]  }
 0x1ae   : > { %5331 = vmatprep.subr.bf16.mxu0 %v8143_v22  ;;  %5823 = vmatprep.subr.bf16.mxu1 %v8146_v23  ;;  %v8233_v22 = vld [vmem:[%s9254_s11 + $0xb84] ss:$16 sps:$4 sm:$0xff]   ;;  %v8236_v23 = vld [vmem:[%s9254_s11 + $0xb8c] ss:$16 sps:$4 sm:$0xff]  }
 0x1b1   : > { %5332 = vmatpush1.bf16.msra.mxu0 %v8141_v24  ;;  %5824 = vmatpush1.bf16.msra.mxu1 %v8144_v26  ;;  %v8231_v24 = vld [vmem:[%s9254_s11 + $0xb80] ss:$16 sps:$4 sm:$0xff]   ;;  %v8234_v26 = vld [vmem:[%s9254_s11 + $0xb88] ss:$16 sps:$4 sm:$0xff]  }
 0x1b2   : > { %5333 = vmatprep.subr.bf16.mxu0 %v8149_v27  ;;  %5825 = vmatprep.subr.bf16.mxu1 %v8152_v28  ;;  %v8239_v27 = vld [vmem:[%s9254_s11 + $0xba4] ss:$16 sps:$4 sm:$0xff]   ;;  %v8242_v28 = vld [vmem:[%s9254_s11 + $0xbac] ss:$16 sps:$4 sm:$0xff]  }
 0x1b5   : > { %5334 = vmatpush1.bf16.msra.mxu0 %v8147_v29  ;;  %5826 = vmatpush1.bf16.msra.mxu1 %v8150_v30  ;;  %v8237_v29 = vld [vmem:[%s9254_s11 + $0xba0] ss:$16 sps:$4 sm:$0xff]   ;;  %v8240_v30 = vld [vmem:[%s9254_s11 + $0xba8] ss:$16 sps:$4 sm:$0xff]  }
 0x1b6   : > { %5335 = vmatprep.subr.bf16.mxu0 %v8155_v15  ;;  %5827 = vmatprep.subr.bf16.mxu1 %v8158_v31  ;;  %v8245_v15 = vld [vmem:[%s9254_s11 + $0xbc4] ss:$16 sps:$4 sm:$0xff]   ;;  %v8248_v31 = vld [vmem:[%s9254_s11 + $0xbcc] ss:$16 sps:$4 sm:$0xff]  }
 0x1b9   : > { %5336 = vmatpush1.bf16.msra.mxu0 %v8153_v32  ;;  %5828 = vmatpush1.bf16.msra.mxu1 %v8156_v33  ;;  %v8865_v32 = vld [vmem:[%s10260_s0 + $0x8] sm:$0xff] }
 0x1ba   : > { %5346 = vmatprep.subr.bf16.mxu0 %v8161_v25  ;;  %5838 = vmatprep.subr.bf16.mxu1 %v8164_v34  ;;  %v1179_v33 = vcombine.high %v8865_v32, %v8865_v32  ;;  %v8243_v25 = vld [vmem:[%s9254_s11 + $0xbc0] ss:$16 sps:$4 sm:$0xff]   ;;  %v8246_v34 = vld [vmem:[%s9254_s11 + $0xbc8] ss:$16 sps:$4 sm:$0xff]  }
 0x1bb   : > { %v8327_v32 = vld [vmem:[%s9254_s11 + $0xd80] ss:$16 sps:$4 sm:$0xff]  }
 0x1bc   : > { %5338 = vmatmul.mubr.bf16.vlgmr.msra.gmra.mrb[0].mxu0 %v9646_v13  ;;  %5830 = vmatmul.mubr.bf16.vlgmr.msra.gmra.mrb[0].mxu1 %v9646_v13 }
 0x1bd   : > { %5347 = vmatpush1.bf16.msra.mxu0 %v8159_v36  ;;  %5839 = vmatpush1.bf16.msra.mxu1 %v8162_v37  ;;  %v8251_v36 = vld [vmem:[%s9254_s11 + $0xbe4] ss:$16 sps:$4 sm:$0xff]   ;;  %v8254_v37 = vld [vmem:[%s9254_s11 + $0xbec] ss:$16 sps:$4 sm:$0xff]  }
 0x1be   : > { %5348 = vmatprep.subr.bf16.mxu0 %v8167_v38  ;;  %5840 = vmatprep.subr.bf16.mxu1 %v8170_v39  ;;  %v9716_v38 = vrot.slane %v1179_v33, %v9315_v49  ;;  %v8249_v39 = vld [vmem:[%s9254_s11 + $0xbe0] ss:$16 sps:$4 sm:$0xff]   ;;  %v8330_v33 = vld [vmem:[%s9254_s11 + $0xd88] ss:$16 sps:$4 sm:$0xff]  }
 0x1bf   : > { %5378 = vmatprep.mubr.bf16.mxu0 %v1226_v40  ;;  %5870 = vmatprep.mubr.bf16.mxu1 %v1226_v40  ;;  %v8252_v40 = vld [vmem:[%s9254_s11 + $0xbe8] ss:$16 sps:$4 sm:$0xff]  }
 0x1c1   : > { %5349 = vmatpush1.bf16.msra.mxu0 %v8165_v21  ;;  %5841 = vmatpush1.bf16.msra.mxu1 %v8168_v41  ;;  %v8257_v21 = vld [vmem:[%s9254_s11 + $0xc04] ss:$16 sps:$4 sm:$0xff]   ;;  %v8260_v41 = vld [vmem:[%s9254_s11 + $0xc0c] ss:$16 sps:$4 sm:$0xff]  }
 0x1c2   : > { %5350 = vmatprep.subr.bf16.mxu0 %v8173_v43  ;;  %5842 = vmatprep.subr.bf16.mxu1 %v8176_v44  ;;  %v1195_v43 = vcombine.high %v9716_v38, %v9716_v38  ;;  %v1224_v44 = vcombine.high %v9646_v13, %v9646_v13  ;;  %v8261_v13 = vld [vmem:[%s9254_s11 + $0xc20] ss:$16 sps:$4 sm:$0xff]  }
 0x1c5   : > { %5351 = vmatpush1.bf16.msra.mxu0 %v8171_v35  ;;  %5843 = vmatpush1.bf16.msra.mxu1 %v8174_v45  ;;  %v8255_v35 = vld [vmem:[%s9254_s11 + $0xc00] ss:$16 sps:$4 sm:$0xff]   ;;  %v8258_v45 = vld [vmem:[%s9254_s11 + $0xc08] ss:$16 sps:$4 sm:$0xff]  }
 0x1c6   : > { %5352 = vmatprep.subr.bf16.mxu0 %v8179_v46  ;;  %5844 = vmatprep.subr.bf16.mxu1 %v8182_v47  ;;  %v8263_v46 = vld [vmem:[%s9254_s11 + $0xc24] ss:$16 sps:$4 sm:$0xff]   ;;  %v8266_v47 = vld [vmem:[%s9254_s11 + $0xc2c] ss:$16 sps:$4 sm:$0xff]  }
 0x1c9   : > { %5353 = vmatpush1.bf16.msra.mxu0 %v8177_v48  ;;  %5845 = vmatpush1.bf16.msra.mxu1 %v8180_v50  ;;  %v9731_v48 = vrot.slane %v1195_v43, %v9315_v49  ;;  %v8264_v50 = vld [vmem:[%s9254_s11 + $0xc28] ss:$16 sps:$4 sm:$0xff]   ;;  %v8347_v43 = vld [vmem:[%s9254_s11 + $0xde4] ss:$16 sps:$4 sm:$0xff]  }
 0x1ca   : > { %5354 = vmatprep.subr.bf16.mxu0 %v8185_v51  ;;  %5846 = vmatprep.subr.bf16.mxu1 %v8188_v53  ;;  %v8269_v51 = vld [vmem:[%s9254_s11 + $0xc44] ss:$16 sps:$4 sm:$0xff]   ;;  %v8272_v53 = vld [vmem:[%s9254_s11 + $0xc4c] ss:$16 sps:$4 sm:$0xff]  }
 0x1cd   : > { %5355 = vmatpush1.bf16.msra.mxu0 %v8183_v54  ;;  %5847 = vmatpush1.bf16.msra.mxu1 %v8186_v55  ;;  %v8267_v54 = vld [vmem:[%s9254_s11 + $0xc40] ss:$16 sps:$4 sm:$0xff]   ;;  %v8270_v55 = vld [vmem:[%s9254_s11 + $0xc48] ss:$16 sps:$4 sm:$0xff]  }
 0x1ce   : > { %5356 = vmatprep.subr.bf16.mxu0 %v8191_v56  ;;  %5848 = vmatprep.subr.bf16.mxu1 %v8194_v57  ;;  %v8275_v56 = vld [vmem:[%s9254_s11 + $0xc64] ss:$16 sps:$4 sm:$0xff]   ;;  %v8278_v57 = vld [vmem:[%s9254_s11 + $0xc6c] ss:$16 sps:$4 sm:$0xff]  }
 0x1d1   : > { %5357 = vmatpush1.bf16.msra.mxu0 %v8189_v58  ;;  %5849 = vmatpush1.bf16.msra.mxu1 %v8192_v59  ;;  %v8273_v58 = vld [vmem:[%s9254_s11 + $0xc60] ss:$16 sps:$4 sm:$0xff]   ;;  %v8276_v59 = vld [vmem:[%s9254_s11 + $0xc68] ss:$16 sps:$4 sm:$0xff]  }
 0x1d2   : > { %5358 = vmatprep.subr.bf16.mxu0 %v8197_v60  ;;  %5850 = vmatprep.subr.bf16.mxu1 %v8200_v61  ;;  %v8281_v60 = vld [vmem:[%s9254_s11 + $0xc84] ss:$16 sps:$4 sm:$0xff]   ;;  %v8284_v61 = vld [vmem:[%s9254_s11 + $0xc8c] ss:$16 sps:$4 sm:$0xff]  }
 0x1d5   : > { %5359 = vmatpush1.bf16.msra.mxu0 %v8195_v62  ;;  %5851 = vmatpush1.bf16.msra.mxu1 %v8198_v63  ;;  %v8279_v62 = vld [vmem:[%s9254_s11 + $0xc80] ss:$16 sps:$4 sm:$0xff]   ;;  %v8282_v63 = vld [vmem:[%s9254_s11 + $0xc88] ss:$16 sps:$4 sm:$0xff]  }
 0x1d6   : > { %5360 = vmatprep.subr.bf16.mxu0 %v8203_v0  ;;  %5852 = vmatprep.subr.bf16.mxu1 %v8206_v1  ;;  %v8287_v0 = vld [vmem:[%s9254_s11 + $0xca4] ss:$16 sps:$4 sm:$0xff]   ;;  %v8290_v1 = vld [vmem:[%s9254_s11 + $0xcac] ss:$16 sps:$4 sm:$0xff]  }
 0x1d9   : > { %5361 = vmatpush1.bf16.msra.mxu0 %v8201_v2  ;;  %5853 = vmatpush1.bf16.msra.mxu1 %v8204_v3  ;;  %v8285_v2 = vld [vmem:[%s9254_s11 + $0xca0] ss:$16 sps:$4 sm:$0xff]   ;;  %v8288_v3 = vld [vmem:[%s9254_s11 + $0xca8] ss:$16 sps:$4 sm:$0xff]  }
 0x1da   : > { %5362 = vmatprep.subr.bf16.mxu0 %v8209_v4  ;;  %5854 = vmatprep.subr.bf16.mxu1 %v8212_v5  ;;  %v8293_v4 = vld [vmem:[%s9254_s11 + $0xcc4] ss:$16 sps:$4 sm:$0xff]   ;;  %v8296_v5 = vld [vmem:[%s9254_s11 + $0xccc] ss:$16 sps:$4 sm:$0xff]  }
 0x1dd   : > { %5363 = vmatpush1.bf16.msra.mxu0 %v8207_v6  ;;  %5855 = vmatpush1.bf16.msra.mxu1 %v8210_v7  ;;  %v8291_v6 = vld [vmem:[%s9254_s11 + $0xcc0] ss:$16 sps:$4 sm:$0xff]   ;;  %v8294_v7 = vld [vmem:[%s9254_s11 + $0xcc8] ss:$16 sps:$4 sm:$0xff]  }
 0x1de   : > { %5364 = vmatprep.subr.bf16.mxu0 %v8215_v8  ;;  %5856 = vmatprep.subr.bf16.mxu1 %v8218_v9  ;;  %v8299_v8 = vld [vmem:[%s9254_s11 + $0xce4] ss:$16 sps:$4 sm:$0xff]   ;;  %v8302_v9 = vld [vmem:[%s9254_s11 + $0xcec] ss:$16 sps:$4 sm:$0xff]  }
 0x1e1   : > { %5365 = vmatpush1.bf16.msra.mxu0 %v8213_v10  ;;  %5857 = vmatpush1.bf16.msra.mxu1 %v8216_v11  ;;  %v8297_v10 = vld [vmem:[%s9254_s11 + $0xce0] ss:$16 sps:$4 sm:$0xff]   ;;  %v8300_v11 = vld [vmem:[%s9254_s11 + $0xce8] ss:$16 sps:$4 sm:$0xff]  }
 0x1e2   : > { %5366 = vmatprep.subr.bf16.mxu0 %v8221_v12  ;;  %5858 = vmatprep.subr.bf16.mxu1 %v8224_v14  ;;  %v8305_v12 = vld [vmem:[%s9254_s11 + $0xd04] ss:$16 sps:$4 sm:$0xff]   ;;  %v8308_v14 = vld [vmem:[%s9254_s11 + $0xd0c] ss:$16 sps:$4 sm:$0xff]  }
 0x1e5   : > { %5367 = vmatpush1.bf16.msra.mxu0 %v8219_v16  ;;  %5859 = vmatpush1.bf16.msra.mxu1 %v8222_v52  ;;  %v8303_v16 = vld [vmem:[%s9254_s11 + $0xd00] ss:$16 sps:$4 sm:$0xff]   ;;  %v8306_v52 = vld [vmem:[%s9254_s11 + $0xd08] ss:$16 sps:$4 sm:$0xff]  }
 0x1e6   : > { %5368 = vmatprep.subr.bf16.mxu0 %v8227_v17  ;;  %5860 = vmatprep.subr.bf16.mxu1 %v8230_v18  ;;  %v8311_v17 = vld [vmem:[%s9254_s11 + $0xd24] ss:$16 sps:$4 sm:$0xff]   ;;  %v8314_v18 = vld [vmem:[%s9254_s11 + $0xd2c] ss:$16 sps:$4 sm:$0xff]  }
 0x1e9   : > { %5369 = vmatpush1.bf16.msra.mxu0 %v8225_v19  ;;  %5861 = vmatpush1.bf16.msra.mxu1 %v8228_v20  ;;  %v8309_v19 = vld [vmem:[%s9254_s11 + $0xd20] ss:$16 sps:$4 sm:$0xff]   ;;  %v8312_v20 = vld [vmem:[%s9254_s11 + $0xd28] ss:$16 sps:$4 sm:$0xff]  }
 0x1ea   : > { %5370 = vmatprep.subr.bf16.mxu0 %v8233_v22  ;;  %5862 = vmatprep.subr.bf16.mxu1 %v8236_v23  ;;  %v8317_v22 = vld [vmem:[%s9254_s11 + $0xd44] ss:$16 sps:$4 sm:$0xff]   ;;  %v8320_v23 = vld [vmem:[%s9254_s11 + $0xd4c] ss:$16 sps:$4 sm:$0xff]  }
 0x1ed   : > { %5371 = vmatpush1.bf16.msra.mxu0 %v8231_v24  ;;  %5863 = vmatpush1.bf16.msra.mxu1 %v8234_v26  ;;  %v8315_v24 = vld [vmem:[%s9254_s11 + $0xd40] ss:$16 sps:$4 sm:$0xff]   ;;  %v8318_v26 = vld [vmem:[%s9254_s11 + $0xd48] ss:$16 sps:$4 sm:$0xff]  }
 0x1ee   : > { %5372 = vmatprep.subr.bf16.mxu0 %v8239_v27  ;;  %5864 = vmatprep.subr.bf16.mxu1 %v8242_v28  ;;  %v8323_v27 = vld [vmem:[%s9254_s11 + $0xd64] ss:$16 sps:$4 sm:$0xff]   ;;  %v8326_v28 = vld [vmem:[%s9254_s11 + $0xd6c] ss:$16 sps:$4 sm:$0xff]  }
 0x1f1   : > { %5373 = vmatpush1.bf16.msra.mxu0 %v8237_v29  ;;  %5865 = vmatpush1.bf16.msra.mxu1 %v8240_v30  ;;  %v8321_v29 = vld [vmem:[%s9254_s11 + $0xd60] ss:$16 sps:$4 sm:$0xff]   ;;  %v8324_v30 = vld [vmem:[%s9254_s11 + $0xd68] ss:$16 sps:$4 sm:$0xff]  }
 0x1f2   : > { %5374 = vmatprep.subr.bf16.mxu0 %v8245_v15  ;;  %5866 = vmatprep.subr.bf16.mxu1 %v8248_v31  ;;  %v8329_v15 = vld [vmem:[%s9254_s11 + $0xd84] ss:$16 sps:$4 sm:$0xff]   ;;  %v8332_v31 = vld [vmem:[%s9254_s11 + $0xd8c] ss:$16 sps:$4 sm:$0xff]  }
 0x1f5   : > { %5375 = vmatpush1.bf16.msra.mxu0 %v8243_v25  ;;  %5867 = vmatpush1.bf16.msra.mxu1 %v8246_v34  ;;  %v8335_v25 = vld [vmem:[%s9254_s11 + $0xda4] ss:$16 sps:$4 sm:$0xff]   ;;  %v8338_v34 = vld [vmem:[%s9254_s11 + $0xdac] ss:$16 sps:$4 sm:$0xff]  }
 0x1f6   : > { %5376 = vmatprep.subr.bf16.mxu0 %v8251_v36  ;;  %5868 = vmatprep.subr.bf16.mxu1 %v8254_v37  ;;  %v8333_v36 = vld [vmem:[%s9254_s11 + $0xda0] ss:$16 sps:$4 sm:$0xff]   ;;  %v8336_v37 = vld [vmem:[%s9254_s11 + $0xda8] ss:$16 sps:$4 sm:$0xff]  }
 0x1f9   : > { %5377 = vmatpush1.bf16.msra.mxu0 %v8249_v39  ;;  %5869 = vmatpush1.bf16.msra.mxu1 %v8252_v40  ;;  %v8341_v39 = vld [vmem:[%s9254_s11 + $0xdc4] ss:$16 sps:$4 sm:$0xff]   ;;  %v8344_v40 = vld [vmem:[%s9254_s11 + $0xdcc] ss:$16 sps:$4 sm:$0xff]  }
 0x1fa   : > { %5387 = vmatprep.subr.bf16.mxu0 %v8257_v21  ;;  %5879 = vmatprep.subr.bf16.mxu1 %v8260_v41  ;;  %v8339_v21 = vld [vmem:[%s9254_s11 + $0xdc0] ss:$16 sps:$4 sm:$0xff]   ;;  %v8342_v41 = vld [vmem:[%s9254_s11 + $0xdc8] ss:$16 sps:$4 sm:$0xff]  }
 0x1fc   : > { %5379 = vmatmul.mubr.bf16.vlgmr.msra.gmra.mrb[0].mxu0 %v1224_v44  ;;  %5871 = vmatmul.mubr.bf16.vlgmr.msra.gmra.mrb[0].mxu1 %v1224_v44  ;;  %v8350_v44 = vld [vmem:[%s9254_s11 + $0xdec] ss:$16 sps:$4 sm:$0xff]  }
 0x1fd   : > { %5388 = vmatpush1.bf16.msra.mxu0 %v8255_v35  ;;  %5880 = vmatpush1.bf16.msra.mxu1 %v8258_v45  ;;  %v8345_v35 = vld [vmem:[%s9254_s11 + $0xde0] ss:$16 sps:$4 sm:$0xff]   ;;  %v8348_v45 = vld [vmem:[%s9254_s11 + $0xde8] ss:$16 sps:$4 sm:$0xff]  }
 0x1fe   : > { %5389 = vmatprep.subr.bf16.mxu0 %v8263_v46  ;;  %5881 = vmatprep.subr.bf16.mxu1 %v8266_v47  ;;  %v8354_v46 = vld [vmem:[%s9254_s11 + $0xe04] ss:$16 sps:$4 sm:$0xff]   ;;  %v8357_v47 = vld [vmem:[%s9254_s11 + $0xe0c] ss:$16 sps:$4 sm:$0xff]  }
 0x1ff   : > { %5419 = vmatprep.mubr.bf16.mxu0 %v9731_v48  ;;  %5911 = vmatprep.mubr.bf16.mxu1 %v9731_v48 }
 0x201   : > { %5390 = vmatpush1.bf16.msra.mxu0 %v8261_v13  ;;  %5882 = vmatpush1.bf16.msra.mxu1 %v8264_v50  ;;  %v9797_v13 = vrot.slane %v9716_v38, %v9315_v49  ;;  %v8352_v50 = vld [vmem:[%s9254_s11 + $0xe00] ss:$16 sps:$4 sm:$0xff]  }
 0x202   : > { %5391 = vmatprep.subr.bf16.mxu0 %v8269_v51  ;;  %5883 = vmatprep.subr.bf16.mxu1 %v8272_v53  ;;  %v8355_v51 = vld [vmem:[%s9254_s11 + $0xe08] ss:$16 sps:$4 sm:$0xff]   ;;  %v8360_v53 = vld [vmem:[%s9254_s11 + $0xe24] ss:$16 sps:$4 sm:$0xff]   ;;  %v8358_v38 = vld [vmem:[%s9254_s11 + $0xe20] ss:$16 sps:$4 sm:$0xff]  }
 0x205   : > { %5392 = vmatpush1.bf16.msra.mxu0 %v8267_v54  ;;  %5884 = vmatpush1.bf16.msra.mxu1 %v8270_v55  ;;  %v8363_v54 = vld [vmem:[%s9254_s11 + $0xe2c] ss:$16 sps:$4 sm:$0xff]   ;;  %v1227_v55 = vcombine.high %v9731_v48, %v9731_v48  ;;  %v8364_v48 = vld [vmem:[%s9254_s11 + $0xe40] ss:$16 sps:$4 sm:$0xff]  }
 0x206   : > { %5393 = vmatprep.subr.bf16.mxu0 %v8275_v56  ;;  %5885 = vmatprep.subr.bf16.mxu1 %v8278_v57  ;;  %v8361_v56 = vld [vmem:[%s9254_s11 + $0xe28] ss:$16 sps:$4 sm:$0xff]   ;;  %v8366_v57 = vld [vmem:[%s9254_s11 + $0xe44] ss:$16 sps:$4 sm:$0xff]  }
 0x209   : > { %5394 = vmatpush1.bf16.msra.mxu0 %v8273_v58  ;;  %5886 = vmatpush1.bf16.msra.mxu1 %v8276_v59  ;;  %v8369_v58 = vld [vmem:[%s9254_s11 + $0xe4c] ss:$16 sps:$4 sm:$0xff]   ;;  %v8367_v59 = vld [vmem:[%s9254_s11 + $0xe48] ss:$16 sps:$4 sm:$0xff]  }
 0x20a   : > { %5395 = vmatprep.subr.bf16.mxu0 %v8281_v60  ;;  %5887 = vmatprep.subr.bf16.mxu1 %v8284_v61  ;;  %v8372_v60 = vld [vmem:[%s9254_s11 + $0xe64] ss:$16 sps:$4 sm:$0xff]   ;;  %v8375_v61 = vld [vmem:[%s9254_s11 + $0xe6c] ss:$16 sps:$4 sm:$0xff]  }
 0x20d   : > { %5396 = vmatpush1.bf16.msra.mxu0 %v8279_v62  ;;  %5888 = vmatpush1.bf16.msra.mxu1 %v8282_v63  ;;  %v8370_v62 = vld [vmem:[%s9254_s11 + $0xe60] ss:$16 sps:$4 sm:$0xff]   ;;  %v8373_v63 = vld [vmem:[%s9254_s11 + $0xe68] ss:$16 sps:$4 sm:$0xff]  }
 0x20e   : > { %5397 = vmatprep.subr.bf16.mxu0 %v8287_v0  ;;  %5889 = vmatprep.subr.bf16.mxu1 %v8290_v1  ;;  %v8378_v0 = vld [vmem:[%s9254_s11 + $0xe84] ss:$16 sps:$4 sm:$0xff]   ;;  %v8381_v1 = vld [vmem:[%s9254_s11 + $0xe8c] ss:$16 sps:$4 sm:$0xff]  }
 0x211   : > { %5398 = vmatpush1.bf16.msra.mxu0 %v8285_v2  ;;  %5890 = vmatpush1.bf16.msra.mxu1 %v8288_v3  ;;  %v8376_v2 = vld [vmem:[%s9254_s11 + $0xe80] ss:$16 sps:$4 sm:$0xff]   ;;  %v8379_v3 = vld [vmem:[%s9254_s11 + $0xe88] ss:$16 sps:$4 sm:$0xff]  }
 0x212   : > { %5399 = vmatprep.subr.bf16.mxu0 %v8293_v4  ;;  %5891 = vmatprep.subr.bf16.mxu1 %v8296_v5  ;;  %v8384_v4 = vld [vmem:[%s9254_s11 + $0xea4] ss:$16 sps:$4 sm:$0xff]   ;;  %v8387_v5 = vld [vmem:[%s9254_s11 + $0xeac] ss:$16 sps:$4 sm:$0xff]  }
 0x215   : > { %5400 = vmatpush1.bf16.msra.mxu0 %v8291_v6  ;;  %5892 = vmatpush1.bf16.msra.mxu1 %v8294_v7  ;;  %v8382_v6 = vld [vmem:[%s9254_s11 + $0xea0] ss:$16 sps:$4 sm:$0xff]   ;;  %v8385_v7 = vld [vmem:[%s9254_s11 + $0xea8] ss:$16 sps:$4 sm:$0xff]  }
 0x216   : > { %5401 = vmatprep.subr.bf16.mxu0 %v8299_v8  ;;  %5893 = vmatprep.subr.bf16.mxu1 %v8302_v9  ;;  %v8390_v8 = vld [vmem:[%s9254_s11 + $0xec4] ss:$16 sps:$4 sm:$0xff]   ;;  %v8393_v9 = vld [vmem:[%s9254_s11 + $0xecc] ss:$16 sps:$4 sm:$0xff]  }
 0x219   : > { %5402 = vmatpush1.bf16.msra.mxu0 %v8297_v10  ;;  %5894 = vmatpush1.bf16.msra.mxu1 %v8300_v11  ;;  %v8388_v10 = vld [vmem:[%s9254_s11 + $0xec0] ss:$16 sps:$4 sm:$0xff]   ;;  %v8391_v11 = vld [vmem:[%s9254_s11 + $0xec8] ss:$16 sps:$4 sm:$0xff]  }
 0x21a   : > { %5403 = vmatprep.subr.bf16.mxu0 %v8305_v12  ;;  %5895 = vmatprep.subr.bf16.mxu1 %v8308_v14  ;;  %v8396_v12 = vld [vmem:[%s9254_s11 + $0xee4] ss:$16 sps:$4 sm:$0xff]   ;;  %v8399_v14 = vld [vmem:[%s9254_s11 + $0xeec] ss:$16 sps:$4 sm:$0xff]  }
 0x21d   : > { %5404 = vmatpush1.bf16.msra.mxu0 %v8303_v16  ;;  %5896 = vmatpush1.bf16.msra.mxu1 %v8306_v52  ;;  %v8394_v16 = vld [vmem:[%s9254_s11 + $0xee0] ss:$16 sps:$4 sm:$0xff]   ;;  %v8397_v52 = vld [vmem:[%s9254_s11 + $0xee8] ss:$16 sps:$4 sm:$0xff]  }
 0x21e   : > { %5405 = vmatprep.subr.bf16.mxu0 %v8311_v17  ;;  %5897 = vmatprep.subr.bf16.mxu1 %v8314_v18  ;;  %v8402_v17 = vld [vmem:[%s9254_s11 + $0xf04] ss:$16 sps:$4 sm:$0xff]   ;;  %v8405_v18 = vld [vmem:[%s9254_s11 + $0xf0c] ss:$16 sps:$4 sm:$0xff]  }
 0x221   : > { %5406 = vmatpush1.bf16.msra.mxu0 %v8309_v19  ;;  %5898 = vmatpush1.bf16.msra.mxu1 %v8312_v20  ;;  %v8400_v19 = vld [vmem:[%s9254_s11 + $0xf00] ss:$16 sps:$4 sm:$0xff]   ;;  %v8403_v20 = vld [vmem:[%s9254_s11 + $0xf08] ss:$16 sps:$4 sm:$0xff]  }
 0x222   : > { %5407 = vmatprep.subr.bf16.mxu0 %v8317_v22  ;;  %5899 = vmatprep.subr.bf16.mxu1 %v8320_v23  ;;  %v8408_v22 = vld [vmem:[%s9254_s11 + $0xf24] ss:$16 sps:$4 sm:$0xff]   ;;  %v8411_v23 = vld [vmem:[%s9254_s11 + $0xf2c] ss:$16 sps:$4 sm:$0xff]  }
 0x225   : > { %5408 = vmatpush1.bf16.msra.mxu0 %v8315_v24  ;;  %5900 = vmatpush1.bf16.msra.mxu1 %v8318_v26  ;;  %v8406_v24 = vld [vmem:[%s9254_s11 + $0xf20] ss:$16 sps:$4 sm:$0xff]   ;;  %v8409_v26 = vld [vmem:[%s9254_s11 + $0xf28] ss:$16 sps:$4 sm:$0xff]  }
 0x226   : > { %5409 = vmatprep.subr.bf16.mxu0 %v8323_v27  ;;  %5901 = vmatprep.subr.bf16.mxu1 %v8326_v28  ;;  %v8414_v27 = vld [vmem:[%s9254_s11 + $0xf44] ss:$16 sps:$4 sm:$0xff]   ;;  %v8417_v28 = vld [vmem:[%s9254_s11 + $0xf4c] ss:$16 sps:$4 sm:$0xff]  }
 0x229   : > { %5410 = vmatpush1.bf16.msra.mxu0 %v8321_v29  ;;  %5902 = vmatpush1.bf16.msra.mxu1 %v8324_v30  ;;  %v8412_v29 = vld [vmem:[%s9254_s11 + $0xf40] ss:$16 sps:$4 sm:$0xff]   ;;  %v8415_v30 = vld [vmem:[%s9254_s11 + $0xf48] ss:$16 sps:$4 sm:$0xff]  }
 0x22a   : > { %5411 = vmatprep.subr.bf16.mxu0 %v8329_v15  ;;  %5903 = vmatprep.subr.bf16.mxu1 %v8332_v31  ;;  %v8420_v15 = vld [vmem:[%s9254_s11 + $0xf64] ss:$16 sps:$4 sm:$0xff]   ;;  %v8423_v31 = vld [vmem:[%s9254_s11 + $0xf6c] ss:$16 sps:$4 sm:$0xff]  }
 0x22d   : > { %5412 = vmatpush1.bf16.msra.mxu0 %v8327_v32  ;;  %5904 = vmatpush1.bf16.msra.mxu1 %v8330_v33  ;;  %v8418_v32 = vld [vmem:[%s9254_s11 + $0xf60] ss:$16 sps:$4 sm:$0xff]   ;;  %v8421_v33 = vld [vmem:[%s9254_s11 + $0xf68] ss:$16 sps:$4 sm:$0xff]  }
 0x22e   : > { %5413 = vmatprep.subr.bf16.mxu0 %v8335_v25  ;;  %5905 = vmatprep.subr.bf16.mxu1 %v8338_v34  ;;  %v8426_v25 = vld [vmem:[%s9254_s11 + $0xf84] ss:$16 sps:$4 sm:$0xff]   ;;  %v8429_v34 = vld [vmem:[%s9254_s11 + $0xf8c] ss:$16 sps:$4 sm:$0xff]  }
 0x231   : > { %5414 = vmatpush1.bf16.msra.mxu0 %v8333_v36  ;;  %5906 = vmatpush1.bf16.msra.mxu1 %v8336_v37  ;;  %v8424_v36 = vld [vmem:[%s9254_s11 + $0xf80] ss:$16 sps:$4 sm:$0xff]   ;;  %v8427_v37 = vld [vmem:[%s9254_s11 + $0xf88] ss:$16 sps:$4 sm:$0xff]  }
 0x232   : > { %5415 = vmatprep.subr.bf16.mxu0 %v8341_v39  ;;  %5907 = vmatprep.subr.bf16.mxu1 %v8344_v40  ;;  %v8432_v39 = vld [vmem:[%s9254_s11 + $0xfa4] ss:$16 sps:$4 sm:$0xff]   ;;  %v8435_v40 = vld [vmem:[%s9254_s11 + $0xfac] ss:$16 sps:$4 sm:$0xff]  }
 0x235   : > { %5416 = vmatpush1.bf16.msra.mxu0 %v8339_v21  ;;  %5908 = vmatpush1.bf16.msra.mxu1 %v8342_v41  ;;  %v8430_v21 = vld [vmem:[%s9254_s11 + $0xfa0] ss:$16 sps:$4 sm:$0xff]   ;;  %v8433_v41 = vld [vmem:[%s9254_s11 + $0xfa8] ss:$16 sps:$4 sm:$0xff]  }
 0x236   : > { %5417 = vmatprep.subr.bf16.mxu0 %v8347_v43  ;;  %5909 = vmatprep.subr.bf16.mxu1 %v8350_v44  ;;  %v8438_v43 = vld [vmem:[%s9254_s11 + $0xfc4] ss:$16 sps:$4 sm:$0xff]   ;;  %v8441_v44 = vld [vmem:[%s9254_s11 + $0xfcc] ss:$16 sps:$4 sm:$0xff]  }
 0x239   : > { %5418 = vmatpush1.bf16.msra.mxu0 %v8345_v35  ;;  %5910 = vmatpush1.bf16.msra.mxu1 %v8348_v45  ;;  %v9862_v35 = vld [vmem:[%s10260_s0 + $0x10] sm:$0xff] }
 0x23a   : > { %5428 = vmatprep.subr.bf16.mxu0 %v8354_v46  ;;  %5920 = vmatprep.subr.bf16.mxu1 %v8357_v47  ;;  %v8436_v45 = vld [vmem:[%s9254_s11 + $0xfc0] ss:$16 sps:$4 sm:$0xff]   ;;  %v8439_v46 = vld [vmem:[%s9254_s11 + $0xfc8] ss:$16 sps:$4 sm:$0xff]   ;;  %v8444_v47 = vld [vmem:[%s9254_s11 + $0xfe4] ss:$16 sps:$4 sm:$0xff]  }
 0x23c   : > { %5420 = vmatmul.mubr.bf16.vlgmr.msra.gmra.mrb[0].mxu0 %v9797_v13  ;;  %5912 = vmatmul.mubr.bf16.vlgmr.msra.gmra.mrb[0].mxu1 %v9797_v13 }
 0x23d   : > { %5429 = vmatpush1.bf16.msra.mxu0 %v8352_v50  ;;  %5921 = vmatpush1.bf16.msra.mxu1 %v8355_v51  ;;  %v8447_v50 = vld [vmem:[%s9254_s11 + $0xfec] ss:$16 sps:$4 sm:$0xff]   ;;  %v9870_v51 = vrot.slane %v9862_v35, %v9315_v49 }
 0x23e   : > { %5430 = vmatprep.subr.bf16.mxu0 %v8360_v53  ;;  %5922 = vmatprep.subr.bf16.mxu1 %v8363_v54  ;;  %v8442_v53 = vld [vmem:[%s9254_s11 + $0xfe0] ss:$16 sps:$4 sm:$0xff]   ;;  %v8445_v54 = vld [vmem:[%s9254_s11 + $0xfe8] ss:$16 sps:$4 sm:$0xff]  }
 0x23f   : > { %5460 = vmatprep.mubr.bf16.mxu0 %v1227_v55  ;;  %5952 = vmatprep.mubr.bf16.mxu1 %v1227_v55  ;;  %v8450_v55 = vld [vmem:[%s9254_s11 + $0x1004] ss:$16 sps:$4 sm:$0xff]  }
 0x241   : > { %5431 = vmatpush1.bf16.msra.mxu0 %v8358_v38  ;;  %5923 = vmatpush1.bf16.msra.mxu1 %v8361_v56  ;;  %v8453_v38 = vld [vmem:[%s9254_s11 + $0x100c] ss:$16 sps:$4 sm:$0xff]   ;;  %v1243_v56 = vcombine.high %v9870_v51, %v9870_v51 }
 0x242   : > { %5432 = vmatprep.subr.bf16.mxu0 %v8366_v57  ;;  %5924 = vmatprep.subr.bf16.mxu1 %v8369_v58  ;;  %v1225_v57 = vcombine.high %v9797_v13, %v9797_v13  ;;  %v8448_v58 = vld [vmem:[%s9254_s11 + $0x1000] ss:$16 sps:$4 sm:$0xff]  }
 0x243   : > { %v8454_v13 = vld [vmem:[%s9254_s11 + $0x1020] ss:$16 sps:$4 sm:$0xff]  }
 0x245   : > { %5433 = vmatpush1.bf16.msra.mxu0 %v8364_v48  ;;  %5925 = vmatpush1.bf16.msra.mxu1 %v8367_v59  ;;  %v8451_v48 = vld [vmem:[%s9254_s11 + $0x1008] ss:$16 sps:$4 sm:$0xff]   ;;  %v8456_v59 = vld [vmem:[%s9254_s11 + $0x1024] ss:$16 sps:$4 sm:$0xff]  }
 0x246   : > { %5434 = vmatprep.subr.bf16.mxu0 %v8372_v60  ;;  %5926 = vmatprep.subr.bf16.mxu1 %v8375_v61  ;;  %v8459_v60 = vld [vmem:[%s9254_s11 + $0x102c] ss:$16 sps:$4 sm:$0xff]   ;;  %v9885_v61 = vrot.slane %v1243_v56, %v9315_v49  ;;  %v8535_v56 = vld [vmem:[%s9254_s11 + $0x11c8] ss:$16 sps:$4 sm:$0xff]  }
 0x249   : > { %5435 = vmatpush1.bf16.msra.mxu0 %v8370_v62  ;;  %5927 = vmatpush1.bf16.msra.mxu1 %v8373_v63  ;;  %v8457_v62 = vld [vmem:[%s9254_s11 + $0x1028] ss:$16 sps:$4 sm:$0xff]   ;;  %v8462_v63 = vld [vmem:[%s9254_s11 + $0x1044] ss:$16 sps:$4 sm:$0xff]  }
 0x24a   : > { %5436 = vmatprep.subr.bf16.mxu0 %v8378_v0  ;;  %5928 = vmatprep.subr.bf16.mxu1 %v8381_v1  ;;  %v8465_v0 = vld [vmem:[%s9254_s11 + $0x104c] ss:$16 sps:$4 sm:$0xff]   ;;  %v8460_v1 = vld [vmem:[%s9254_s11 + $0x1040] ss:$16 sps:$4 sm:$0xff]  }
 0x24d   : > { %5437 = vmatpush1.bf16.msra.mxu0 %v8376_v2  ;;  %5929 = vmatpush1.bf16.msra.mxu1 %v8379_v3  ;;  %v8463_v2 = vld [vmem:[%s9254_s11 + $0x1048] ss:$16 sps:$4 sm:$0xff]   ;;  %v8468_v3 = vld [vmem:[%s9254_s11 + $0x1064] ss:$16 sps:$4 sm:$0xff]  }
 0x24e   : > { %5438 = vmatprep.subr.bf16.mxu0 %v8384_v4  ;;  %5930 = vmatprep.subr.bf16.mxu1 %v8387_v5  ;;  %v8471_v4 = vld [vmem:[%s9254_s11 + $0x106c] ss:$16 sps:$4 sm:$0xff]   ;;  %v8466_v5 = vld [vmem:[%s9254_s11 + $0x1060] ss:$16 sps:$4 sm:$0xff]  }
 0x251   : > { %5439 = vmatpush1.bf16.msra.mxu0 %v8382_v6  ;;  %5931 = vmatpush1.bf16.msra.mxu1 %v8385_v7  ;;  %v8469_v6 = vld [vmem:[%s9254_s11 + $0x1068] ss:$16 sps:$4 sm:$0xff]   ;;  %v8474_v7 = vld [vmem:[%s9254_s11 + $0x1084] ss:$16 sps:$4 sm:$0xff]  }
 0x252   : > { %5440 = vmatprep.subr.bf16.mxu0 %v8390_v8  ;;  %5932 = vmatprep.subr.bf16.mxu1 %v8393_v9  ;;  %v8477_v8 = vld [vmem:[%s9254_s11 + $0x108c] ss:$16 sps:$4 sm:$0xff]   ;;  %v8472_v9 = vld [vmem:[%s9254_s11 + $0x1080] ss:$16 sps:$4 sm:$0xff]  }
 0x255   : > { %5441 = vmatpush1.bf16.msra.mxu0 %v8388_v10  ;;  %5933 = vmatpush1.bf16.msra.mxu1 %v8391_v11  ;;  %v8475_v10 = vld [vmem:[%s9254_s11 + $0x1088] ss:$16 sps:$4 sm:$0xff]   ;;  %v8480_v11 = vld [vmem:[%s9254_s11 + $0x10a4] ss:$16 sps:$4 sm:$0xff]  }
 0x256   : > { %5442 = vmatprep.subr.bf16.mxu0 %v8396_v12  ;;  %5934 = vmatprep.subr.bf16.mxu1 %v8399_v14  ;;  %v8483_v12 = vld [vmem:[%s9254_s11 + $0x10ac] ss:$16 sps:$4 sm:$0xff]   ;;  %v8478_v14 = vld [vmem:[%s9254_s11 + $0x10a0] ss:$16 sps:$4 sm:$0xff]  }
 0x259   : > { %5443 = vmatpush1.bf16.msra.mxu0 %v8394_v16  ;;  %5935 = vmatpush1.bf16.msra.mxu1 %v8397_v52  ;;  %v8481_v16 = vld [vmem:[%s9254_s11 + $0x10a8] ss:$16 sps:$4 sm:$0xff]   ;;  %v8486_v52 = vld [vmem:[%s9254_s11 + $0x10c4] ss:$16 sps:$4 sm:$0xff]  }
 0x25a   : > { %5444 = vmatprep.subr.bf16.mxu0 %v8402_v17  ;;  %5936 = vmatprep.subr.bf16.mxu1 %v8405_v18  ;;  %v8489_v17 = vld [vmem:[%s9254_s11 + $0x10cc] ss:$16 sps:$4 sm:$0xff]   ;;  %v8484_v18 = vld [vmem:[%s9254_s11 + $0x10c0] ss:$16 sps:$4 sm:$0xff]  }
 0x25d   : > { %5445 = vmatpush1.bf16.msra.mxu0 %v8400_v19  ;;  %5937 = vmatpush1.bf16.msra.mxu1 %v8403_v20  ;;  %v8487_v19 = vld [vmem:[%s9254_s11 + $0x10c8] ss:$16 sps:$4 sm:$0xff]   ;;  %v8492_v20 = vld [vmem:[%s9254_s11 + $0x10e4] ss:$16 sps:$4 sm:$0xff]  }
 0x25e   : > { %5446 = vmatprep.subr.bf16.mxu0 %v8408_v22  ;;  %5938 = vmatprep.subr.bf16.mxu1 %v8411_v23  ;;  %v8495_v22 = vld [vmem:[%s9254_s11 + $0x10ec] ss:$16 sps:$4 sm:$0xff]   ;;  %v8490_v23 = vld [vmem:[%s9254_s11 + $0x10e0] ss:$16 sps:$4 sm:$0xff]  }
 0x261   : > { %5447 = vmatpush1.bf16.msra.mxu0 %v8406_v24  ;;  %5939 = vmatpush1.bf16.msra.mxu1 %v8409_v26  ;;  %v8493_v24 = vld [vmem:[%s9254_s11 + $0x10e8] ss:$16 sps:$4 sm:$0xff]   ;;  %v8498_v26 = vld [vmem:[%s9254_s11 + $0x1104] ss:$16 sps:$4 sm:$0xff]  }
 0x262   : > { %5448 = vmatprep.subr.bf16.mxu0 %v8414_v27  ;;  %5940 = vmatprep.subr.bf16.mxu1 %v8417_v28  ;;  %v8501_v27 = vld [vmem:[%s9254_s11 + $0x110c] ss:$16 sps:$4 sm:$0xff]   ;;  %v8496_v28 = vld [vmem:[%s9254_s11 + $0x1100] ss:$16 sps:$4 sm:$0xff]  }
 0x265   : > { %5449 = vmatpush1.bf16.msra.mxu0 %v8412_v29  ;;  %5941 = vmatpush1.bf16.msra.mxu1 %v8415_v30  ;;  %v8499_v29 = vld [vmem:[%s9254_s11 + $0x1108] ss:$16 sps:$4 sm:$0xff]   ;;  %v8504_v30 = vld [vmem:[%s9254_s11 + $0x1124] ss:$16 sps:$4 sm:$0xff]  }
 0x266   : > { %5450 = vmatprep.subr.bf16.mxu0 %v8420_v15  ;;  %5942 = vmatprep.subr.bf16.mxu1 %v8423_v31  ;;  %v8507_v15 = vld [vmem:[%s9254_s11 + $0x112c] ss:$16 sps:$4 sm:$0xff]   ;;  %v8502_v31 = vld [vmem:[%s9254_s11 + $0x1120] ss:$16 sps:$4 sm:$0xff]  }
 0x269   : > { %5451 = vmatpush1.bf16.msra.mxu0 %v8418_v32  ;;  %5943 = vmatpush1.bf16.msra.mxu1 %v8421_v33  ;;  %v8505_v32 = vld [vmem:[%s9254_s11 + $0x1128] ss:$16 sps:$4 sm:$0xff]   ;;  %v8510_v33 = vld [vmem:[%s9254_s11 + $0x1144] ss:$16 sps:$4 sm:$0xff]  }
 0x26a   : > { %5452 = vmatprep.subr.bf16.mxu0 %v8426_v25  ;;  %5944 = vmatprep.subr.bf16.mxu1 %v8429_v34  ;;  %v8513_v25 = vld [vmem:[%s9254_s11 + $0x114c] ss:$16 sps:$4 sm:$0xff]   ;;  %v8508_v34 = vld [vmem:[%s9254_s11 + $0x1140] ss:$16 sps:$4 sm:$0xff]  }
 0x26d   : > { %5453 = vmatpush1.bf16.msra.mxu0 %v8424_v36  ;;  %5945 = vmatpush1.bf16.msra.mxu1 %v8427_v37  ;;  %v8511_v36 = vld [vmem:[%s9254_s11 + $0x1148] ss:$16 sps:$4 sm:$0xff]   ;;  %v8516_v37 = vld [vmem:[%s9254_s11 + $0x1164] ss:$16 sps:$4 sm:$0xff]  }
 0x26e   : > { %5454 = vmatprep.subr.bf16.mxu0 %v8432_v39  ;;  %5946 = vmatprep.subr.bf16.mxu1 %v8435_v40  ;;  %v8519_v39 = vld [vmem:[%s9254_s11 + $0x116c] ss:$16 sps:$4 sm:$0xff]   ;;  %v8514_v40 = vld [vmem:[%s9254_s11 + $0x1160] ss:$16 sps:$4 sm:$0xff]  }
 0x271   : > { %5455 = vmatpush1.bf16.msra.mxu0 %v8430_v21  ;;  %5947 = vmatpush1.bf16.msra.mxu1 %v8433_v41  ;;  %v8517_v21 = vld [vmem:[%s9254_s11 + $0x1168] ss:$16 sps:$4 sm:$0xff]   ;;  %v8522_v41 = vld [vmem:[%s9254_s11 + $0x1184] ss:$16 sps:$4 sm:$0xff]  }
 0x272   : > { %5456 = vmatprep.subr.bf16.mxu0 %v8438_v43  ;;  %5948 = vmatprep.subr.bf16.mxu1 %v8441_v44  ;;  %v8525_v43 = vld [vmem:[%s9254_s11 + $0x118c] ss:$16 sps:$4 sm:$0xff]   ;;  %v8520_v44 = vld [vmem:[%s9254_s11 + $0x1180] ss:$16 sps:$4 sm:$0xff]  }
 0x275   : > { %5457 = vmatpush1.bf16.msra.mxu0 %v8436_v45  ;;  %5949 = vmatpush1.bf16.msra.mxu1 %v8439_v46  ;;  %v8523_v45 = vld [vmem:[%s9254_s11 + $0x1188] ss:$16 sps:$4 sm:$0xff]   ;;  %v8528_v46 = vld [vmem:[%s9254_s11 + $0x11a4] ss:$16 sps:$4 sm:$0xff]  }
 0x276   : > { %5458 = vmatprep.subr.bf16.mxu0 %v8444_v47  ;;  %5950 = vmatprep.subr.bf16.mxu1 %v8447_v50  ;;  %v8531_v47 = vld [vmem:[%s9254_s11 + $0x11ac] ss:$16 sps:$4 sm:$0xff]   ;;  %v8526_v50 = vld [vmem:[%s9254_s11 + $0x11a0] ss:$16 sps:$4 sm:$0xff]  }
 0x279   : > { %5459 = vmatpush1.bf16.msra.mxu0 %v8442_v53  ;;  %5951 = vmatpush1.bf16.msra.mxu1 %v8445_v54  ;;  %v8529_v53 = vld [vmem:[%s9254_s11 + $0x11a8] ss:$16 sps:$4 sm:$0xff]   ;;  %v8534_v54 = vld [vmem:[%s9254_s11 + $0x11c4] ss:$16 sps:$4 sm:$0xff]  }
 0x27a   : > { %5469 = vmatprep.subr.bf16.mxu0 %v8450_v55  ;;  %5961 = vmatprep.subr.bf16.mxu1 %v8453_v38  ;;  %v8537_v55 = vld [vmem:[%s9254_s11 + $0x11cc] ss:$16 sps:$4 sm:$0xff]   ;;  %v8532_v38 = vld [vmem:[%s9254_s11 + $0x11c0] ss:$16 sps:$4 sm:$0xff]  }
 0x27c   : > { %5461 = vmatmul.mubr.bf16.vlgmr.msra.gmra.mrb[0].mxu0 %v1225_v57  ;;  %5953 = vmatmul.mubr.bf16.vlgmr.msra.gmra.mrb[0].mxu1 %v1225_v57  ;;  %v8540_v57 = vld [vmem:[%s9254_s11 + $0x11e4] ss:$16 sps:$4 sm:$0xff]  }
 0x27d   : > { %5470 = vmatpush1.bf16.msra.mxu0 %v8448_v58  ;;  %5962 = vmatpush1.bf16.msra.mxu1 %v8451_v48  ;;  %v8543_v58 = vld [vmem:[%s9254_s11 + $0x11ec] ss:$16 sps:$4 sm:$0xff]   ;;  %v8538_v48 = vld [vmem:[%s9254_s11 + $0x11e0] ss:$16 sps:$4 sm:$0xff]  }
 0x27e   : > { %5471 = vmatprep.subr.bf16.mxu0 %v8456_v59  ;;  %5963 = vmatprep.subr.bf16.mxu1 %v8459_v60  ;;  %v8541_v59 = vld [vmem:[%s9254_s11 + $0x11e8] ss:$16 sps:$4 sm:$0xff]   ;;  %v8546_v60 = vld [vmem:[%s9254_s11 + $0x1204] ss:$16 sps:$4 sm:$0xff]  }
 0x27f   : > { %5501 = vmatprep.mubr.bf16.mxu0 %v9885_v61  ;;  %5993 = vmatprep.mubr.bf16.mxu1 %v9885_v61 }
 0x281   : > { %5472 = vmatpush1.bf16.msra.mxu0 %v8454_v13  ;;  %5964 = vmatpush1.bf16.msra.mxu1 %v8457_v62  ;;  %v8549_v13 = vld [vmem:[%s9254_s11 + $0x120c] ss:$16 sps:$4 sm:$0xff]   ;;  %v9951_v62 = vrot.slane %v9870_v51, %v9315_v49  ;;  %v8550_v51 = vld [vmem:[%s9254_s11 + $0x1220] ss:$16 sps:$4 sm:$0xff]  }
 0x282   : > { %5473 = vmatprep.subr.bf16.mxu0 %v8462_v63  ;;  %5965 = vmatprep.subr.bf16.mxu1 %v8465_v0  ;;  %v8544_v63 = vld [vmem:[%s9254_s11 + $0x1200] ss:$16 sps:$4 sm:$0xff]   ;;  %v8547_v0 = vld [vmem:[%s9254_s11 + $0x1208] ss:$16 sps:$4 sm:$0xff]  }
 0x285   : > { %5474 = vmatpush1.bf16.msra.mxu0 %v8460_v1  ;;  %5966 = vmatpush1.bf16.msra.mxu1 %v8463_v2  ;;  %v8552_v1 = vld [vmem:[%s9254_s11 + $0x1224] ss:$16 sps:$4 sm:$0xff]   ;;  %v8555_v2 = vld [vmem:[%s9254_s11 + $0x122c] ss:$16 sps:$4 sm:$0xff]  }
 0x286   : > { %5475 = vmatprep.subr.bf16.mxu0 %v8468_v3  ;;  %5967 = vmatprep.subr.bf16.mxu1 %v8471_v4  ;;  %v1275_v3 = vcombine.high %v9885_v61, %v9885_v61  ;;  %v8553_v4 = vld [vmem:[%s9254_s11 + $0x1228] ss:$16 sps:$4 sm:$0xff]   ;;  %v8556_v61 = vld [vmem:[%s9254_s11 + $0x1240] ss:$16 sps:$4 sm:$0xff]  }
 0x289   : > { %5476 = vmatpush1.bf16.msra.mxu0 %v8466_v5  ;;  %5968 = vmatpush1.bf16.msra.mxu1 %v8469_v6  ;;  %v8558_v5 = vld [vmem:[%s9254_s11 + $0x1244] ss:$16 sps:$4 sm:$0xff]   ;;  %v8561_v6 = vld [vmem:[%s9254_s11 + $0x124c] ss:$16 sps:$4 sm:$0xff]  }
 0x28a   : > { %5477 = vmatprep.subr.bf16.mxu0 %v8474_v7  ;;  %5969 = vmatprep.subr.bf16.mxu1 %v8477_v8  ;;  %v8559_v7 = vld [vmem:[%s9254_s11 + $0x1248] ss:$16 sps:$4 sm:$0xff]   ;;  %v8564_v8 = vld [vmem:[%s9254_s11 + $0x1264] ss:$16 sps:$4 sm:$0xff]  }
 0x28d   : > { %5478 = vmatpush1.bf16.msra.mxu0 %v8472_v9  ;;  %5970 = vmatpush1.bf16.msra.mxu1 %v8475_v10  ;;  %v8567_v9 = vld [vmem:[%s9254_s11 + $0x126c] ss:$16 sps:$4 sm:$0xff]   ;;  %v8562_v10 = vld [vmem:[%s9254_s11 + $0x1260] ss:$16 sps:$4 sm:$0xff]  }
 0x28e   : > { %5479 = vmatprep.subr.bf16.mxu0 %v8480_v11  ;;  %5971 = vmatprep.subr.bf16.mxu1 %v8483_v12  ;;  %v8565_v11 = vld [vmem:[%s9254_s11 + $0x1268] ss:$16 sps:$4 sm:$0xff]   ;;  %v8570_v12 = vld [vmem:[%s9254_s11 + $0x1284] ss:$16 sps:$4 sm:$0xff]  }
 0x291   : > { %5480 = vmatpush1.bf16.msra.mxu0 %v8478_v14  ;;  %5972 = vmatpush1.bf16.msra.mxu1 %v8481_v16  ;;  %v8573_v14 = vld [vmem:[%s9254_s11 + $0x128c] ss:$16 sps:$4 sm:$0xff]   ;;  %v8568_v16 = vld [vmem:[%s9254_s11 + $0x1280] ss:$16 sps:$4 sm:$0xff]  }
 0x292   : > { %5481 = vmatprep.subr.bf16.mxu0 %v8486_v52  ;;  %5973 = vmatprep.subr.bf16.mxu1 %v8489_v17  ;;  %v8571_v52 = vld [vmem:[%s9254_s11 + $0x1288] ss:$16 sps:$4 sm:$0xff]   ;;  %v8576_v17 = vld [vmem:[%s9254_s11 + $0x12a4] ss:$16 sps:$4 sm:$0xff]  }
 0x295   : > { %5482 = vmatpush1.bf16.msra.mxu0 %v8484_v18  ;;  %5974 = vmatpush1.bf16.msra.mxu1 %v8487_v19  ;;  %v8579_v18 = vld [vmem:[%s9254_s11 + $0x12ac] ss:$16 sps:$4 sm:$0xff]   ;;  %v8574_v19 = vld [vmem:[%s9254_s11 + $0x12a0] ss:$16 sps:$4 sm:$0xff]  }
 0x296   : > { %5483 = vmatprep.subr.bf16.mxu0 %v8492_v20  ;;  %5975 = vmatprep.subr.bf16.mxu1 %v8495_v22  ;;  %v8577_v20 = vld [vmem:[%s9254_s11 + $0x12a8] ss:$16 sps:$4 sm:$0xff]   ;;  %v8582_v22 = vld [vmem:[%s9254_s11 + $0x12c4] ss:$16 sps:$4 sm:$0xff]  }
 0x299   : > { %5484 = vmatpush1.bf16.msra.mxu0 %v8490_v23  ;;  %5976 = vmatpush1.bf16.msra.mxu1 %v8493_v24  ;;  %v8585_v23 = vld [vmem:[%s9254_s11 + $0x12cc] ss:$16 sps:$4 sm:$0xff]   ;;  %v8580_v24 = vld [vmem:[%s9254_s11 + $0x12c0] ss:$16 sps:$4 sm:$0xff]  }
 0x29a   : > { %5485 = vmatprep.subr.bf16.mxu0 %v8498_v26  ;;  %5977 = vmatprep.subr.bf16.mxu1 %v8501_v27  ;;  %v8583_v26 = vld [vmem:[%s9254_s11 + $0x12c8] ss:$16 sps:$4 sm:$0xff]   ;;  %v8588_v27 = vld [vmem:[%s9254_s11 + $0x12e4] ss:$16 sps:$4 sm:$0xff]  }
 0x29d   : > { %5486 = vmatpush1.bf16.msra.mxu0 %v8496_v28  ;;  %5978 = vmatpush1.bf16.msra.mxu1 %v8499_v29  ;;  %v8591_v28 = vld [vmem:[%s9254_s11 + $0x12ec] ss:$16 sps:$4 sm:$0xff]   ;;  %v8586_v29 = vld [vmem:[%s9254_s11 + $0x12e0] ss:$16 sps:$4 sm:$0xff]  }
 0x29e   : > { %5487 = vmatprep.subr.bf16.mxu0 %v8504_v30  ;;  %5979 = vmatprep.subr.bf16.mxu1 %v8507_v15  ;;  %v8589_v30 = vld [vmem:[%s9254_s11 + $0x12e8] ss:$16 sps:$4 sm:$0xff]   ;;  %v8594_v15 = vld [vmem:[%s9254_s11 + $0x1304] ss:$16 sps:$4 sm:$0xff]  }
 0x2a1   : > { %5488 = vmatpush1.bf16.msra.mxu0 %v8502_v31  ;;  %5980 = vmatpush1.bf16.msra.mxu1 %v8505_v32  ;;  %v8597_v31 = vld [vmem:[%s9254_s11 + $0x130c] ss:$16 sps:$4 sm:$0xff]   ;;  %v8592_v32 = vld [vmem:[%s9254_s11 + $0x1300] ss:$16 sps:$4 sm:$0xff]  }
 0x2a2   : > { %5489 = vmatprep.subr.bf16.mxu0 %v8510_v33  ;;  %5981 = vmatprep.subr.bf16.mxu1 %v8513_v25  ;;  %v8595_v33 = vld [vmem:[%s9254_s11 + $0x1308] ss:$16 sps:$4 sm:$0xff]   ;;  %v8600_v25 = vld [vmem:[%s9254_s11 + $0x1324] ss:$16 sps:$4 sm:$0xff]  }
 0x2a5   : > { %5490 = vmatpush1.bf16.msra.mxu0 %v8508_v34  ;;  %5982 = vmatpush1.bf16.msra.mxu1 %v8511_v36  ;;  %v8603_v34 = vld [vmem:[%s9254_s11 + $0x132c] ss:$16 sps:$4 sm:$0xff]   ;;  %v8598_v36 = vld [vmem:[%s9254_s11 + $0x1320] ss:$16 sps:$4 sm:$0xff]  }
 0x2a6   : > { %5491 = vmatprep.subr.bf16.mxu0 %v8516_v37  ;;  %5983 = vmatprep.subr.bf16.mxu1 %v8519_v39  ;;  %v8601_v37 = vld [vmem:[%s9254_s11 + $0x1328] ss:$16 sps:$4 sm:$0xff]   ;;  %v8606_v39 = vld [vmem:[%s9254_s11 + $0x1344] ss:$16 sps:$4 sm:$0xff]  }
 0x2a9   : > { %5492 = vmatpush1.bf16.msra.mxu0 %v8514_v40  ;;  %5984 = vmatpush1.bf16.msra.mxu1 %v8517_v21  ;;  %v8609_v40 = vld [vmem:[%s9254_s11 + $0x134c] ss:$16 sps:$4 sm:$0xff]   ;;  %v8604_v21 = vld [vmem:[%s9254_s11 + $0x1340] ss:$16 sps:$4 sm:$0xff]  }
 0x2aa   : > { %5493 = vmatprep.subr.bf16.mxu0 %v8522_v41  ;;  %5985 = vmatprep.subr.bf16.mxu1 %v8525_v43  ;;  %v8607_v41 = vld [vmem:[%s9254_s11 + $0x1348] ss:$16 sps:$4 sm:$0xff]   ;;  %v8612_v43 = vld [vmem:[%s9254_s11 + $0x1364] ss:$16 sps:$4 sm:$0xff]  }
 0x2ad   : > { %5494 = vmatpush1.bf16.msra.mxu0 %v8520_v44  ;;  %5986 = vmatpush1.bf16.msra.mxu1 %v8523_v45  ;;  %v8615_v44 = vld [vmem:[%s9254_s11 + $0x136c] ss:$16 sps:$4 sm:$0xff]   ;;  %v8610_v45 = vld [vmem:[%s9254_s11 + $0x1360] ss:$16 sps:$4 sm:$0xff]  }
 0x2ae   : > { %5495 = vmatprep.subr.bf16.mxu0 %v8528_v46  ;;  %5987 = vmatprep.subr.bf16.mxu1 %v8531_v47  ;;  %v8613_v46 = vld [vmem:[%s9254_s11 + $0x1368] ss:$16 sps:$4 sm:$0xff]   ;;  %v8618_v47 = vld [vmem:[%s9254_s11 + $0x1384] ss:$16 sps:$4 sm:$0xff]  }
 0x2b1   : > { %5496 = vmatpush1.bf16.msra.mxu0 %v8526_v50  ;;  %5988 = vmatpush1.bf16.msra.mxu1 %v8529_v53  ;;  %v8621_v50 = vld [vmem:[%s9254_s11 + $0x138c] ss:$16 sps:$4 sm:$0xff]   ;;  %v8616_v53 = vld [vmem:[%s9254_s11 + $0x1380] ss:$16 sps:$4 sm:$0xff]  }
 0x2b2   : > { %5497 = vmatprep.subr.bf16.mxu0 %v8534_v54  ;;  %5989 = vmatprep.subr.bf16.mxu1 %v8537_v55  ;;  %v8619_v54 = vld [vmem:[%s9254_s11 + $0x1388] ss:$16 sps:$4 sm:$0xff]   ;;  %v8624_v55 = vld [vmem:[%s9254_s11 + $0x13a4] ss:$16 sps:$4 sm:$0xff]  }
 0x2b5   : > { %5498 = vmatpush1.bf16.msra.mxu0 %v8532_v38  ;;  %5990 = vmatpush1.bf16.msra.mxu1 %v8535_v56  ;;  %v8627_v38 = vld [vmem:[%s9254_s11 + $0x13ac] ss:$16 sps:$4 sm:$0xff]   ;;  %v8622_v56 = vld [vmem:[%s9254_s11 + $0x13a0] ss:$16 sps:$4 sm:$0xff]  }
 0x2b6   : > { %5499 = vmatprep.subr.bf16.mxu0 %v8540_v57  ;;  %5991 = vmatprep.subr.bf16.mxu1 %v8543_v58  ;;  %v8625_v57 = vld [vmem:[%s9254_s11 + $0x13a8] ss:$16 sps:$4 sm:$0xff]   ;;  %v8630_v58 = vld [vmem:[%s9254_s11 + $0x13c4] ss:$16 sps:$4 sm:$0xff]  }
 0x2b9   : > { %5500 = vmatpush1.bf16.msra.mxu0 %v8538_v48  ;;  %5992 = vmatpush1.bf16.msra.mxu1 %v8541_v59  ;;  %v8633_v48 = vld [vmem:[%s9254_s11 + $0x13cc] ss:$16 sps:$4 sm:$0xff]   ;;  %v1228_v59 = vcombine.high %v9862_v35, %v9862_v35  ;;  %v8634_v35 = vld [vmem:[%s9254_s11 + $0x13e0] ss:$16 sps:$4 sm:$0xff]  }
 0x2ba   : > { %5510 = vmatprep.subr.bf16.mxu0 %v8546_v60  ;;  %6002 = vmatprep.subr.bf16.mxu1 %v8549_v13  ;;  %v8628_v60 = vld [vmem:[%s9254_s11 + $0x13c0] ss:$16 sps:$4 sm:$0xff]   ;;  %v8631_v13 = vld [vmem:[%s9254_s11 + $0x13c8] ss:$16 sps:$4 sm:$0xff]  }
 0x2bc   : > { %5502 = vmatmul.mubr.bf16.vlgmr.msra.gmra.mrb[0].mxu0 %v9951_v62  ;;  %5994 = vmatmul.mubr.bf16.vlgmr.msra.gmra.mrb[0].mxu1 %v9951_v62 }
 0x2bd   : > { %5511 = vmatpush1.bf16.msra.mxu0 %v8544_v63  ;;  %6003 = vmatpush1.bf16.msra.mxu1 %v8547_v0  ;;  %v8636_v63 = vld [vmem:[%s9254_s11 + $0x13e4] ss:$16 sps:$4 sm:$0xff]   ;;  %v8639_v0 = vld [vmem:[%s9254_s11 + $0x13ec] ss:$16 sps:$4 sm:$0xff]  }
 0x2be   : > { %5512 = vmatprep.subr.bf16.mxu0 %v8552_v1  ;;  %6004 = vmatprep.subr.bf16.mxu1 %v8555_v2  ;;  %v10020_v1 = vrot.slane %v1228_v59, %v9315_v49  ;;  %v8637_v2 = vld [vmem:[%s9254_s11 + $0x13e8] ss:$16 sps:$4 sm:$0xff]  }
 0x2bf   : > { %5542 = vmatprep.mubr.bf16.mxu0 %v1275_v3  ;;  %6034 = vmatprep.mubr.bf16.mxu1 %v1275_v3  ;;  %v8642_v3 = vld [vmem:[%s9254_s11 + $0x1404] ss:$16 sps:$4 sm:$0xff]   ;;  %v8715_v59 = vld [vmem:[%s9254_s11 + $0x1588] ss:$16 sps:$4 sm:$0xff]  }
 0x2c1   : > { %5513 = vmatpush1.bf16.msra.mxu0 %v8550_v51  ;;  %6005 = vmatpush1.bf16.msra.mxu1 %v8553_v4  ;;  %v8645_v51 = vld [vmem:[%s9254_s11 + $0x140c] ss:$16 sps:$4 sm:$0xff]   ;;  %v1244_v4 = vcombine.high %v10020_v1, %v10020_v1 }
 0x2c2   : > { %5514 = vmatprep.subr.bf16.mxu0 %v8558_v5  ;;  %6006 = vmatprep.subr.bf16.mxu1 %v8561_v6  ;;  %v1273_v5 = vcombine.high %v9951_v62, %v9951_v62  ;;  %v8640_v6 = vld [vmem:[%s9254_s11 + $0x1400] ss:$16 sps:$4 sm:$0xff]   ;;  %v8649_v62 = vld [vmem:[%s9254_s11 + $0x1428] ss:$16 sps:$4 sm:$0xff]  }
 0x2c5   : > { %5515 = vmatpush1.bf16.msra.mxu0 %v8556_v61  ;;  %6007 = vmatpush1.bf16.msra.mxu1 %v8559_v7  ;;  %v8643_v61 = vld [vmem:[%s9254_s11 + $0x1408] ss:$16 sps:$4 sm:$0xff]   ;;  %v8648_v7 = vld [vmem:[%s9254_s11 + $0x1424] ss:$16 sps:$4 sm:$0xff]  }
 0x2c6   : > { %5516 = vmatprep.subr.bf16.mxu0 %v8564_v8  ;;  %6008 = vmatprep.subr.bf16.mxu1 %v8567_v9  ;;  %v8651_v8 = vld [vmem:[%s9254_s11 + $0x142c] ss:$16 sps:$4 sm:$0xff]   ;;  %v10035_v9 = vrot.slane %v1244_v4, %v9315_v49  ;;  %v8732_v4 = vld [vmem:[%s9254_s11 + $0x15e4] ss:$16 sps:$4 sm:$0xff]  }
 0x2c9   : > { %5517 = vmatpush1.bf16.msra.mxu0 %v8562_v10  ;;  %6009 = vmatpush1.bf16.msra.mxu1 %v8565_v11  ;;  %v8646_v10 = vld [vmem:[%s9254_s11 + $0x1420] ss:$16 sps:$4 sm:$0xff]   ;;  %v8654_v11 = vld [vmem:[%s9254_s11 + $0x1444] ss:$16 sps:$4 sm:$0xff]  }
 0x2ca   : > { %5518 = vmatprep.subr.bf16.mxu0 %v8570_v12  ;;  %6010 = vmatprep.subr.bf16.mxu1 %v8573_v14  ;;  %v8657_v12 = vld [vmem:[%s9254_s11 + $0x144c] ss:$16 sps:$4 sm:$0xff]   ;;  %v8652_v14 = vld [vmem:[%s9254_s11 + $0x1440] ss:$16 sps:$4 sm:$0xff]  }
 0x2cd   : > { %5519 = vmatpush1.bf16.msra.mxu0 %v8568_v16  ;;  %6011 = vmatpush1.bf16.msra.mxu1 %v8571_v52  ;;  %v8655_v16 = vld [vmem:[%s9254_s11 + $0x1448] ss:$16 sps:$4 sm:$0xff]   ;;  %v8660_v52 = vld [vmem:[%s9254_s11 + $0x1464] ss:$16 sps:$4 sm:$0xff]  }
 0x2ce   : > { %5520 = vmatprep.subr.bf16.mxu0 %v8576_v17  ;;  %6012 = vmatprep.subr.bf16.mxu1 %v8579_v18  ;;  %v8663_v17 = vld [vmem:[%s9254_s11 + $0x146c] ss:$16 sps:$4 sm:$0xff]   ;;  %v8658_v18 = vld [vmem:[%s9254_s11 + $0x1460] ss:$16 sps:$4 sm:$0xff]  }
 0x2d1   : > { %5521 = vmatpush1.bf16.msra.mxu0 %v8574_v19  ;;  %6013 = vmatpush1.bf16.msra.mxu1 %v8577_v20  ;;  %v8661_v19 = vld [vmem:[%s9254_s11 + $0x1468] ss:$16 sps:$4 sm:$0xff]   ;;  %v8666_v20 = vld [vmem:[%s9254_s11 + $0x1484] ss:$16 sps:$4 sm:$0xff]  }
 0x2d2   : > { %5522 = vmatprep.subr.bf16.mxu0 %v8582_v22  ;;  %6014 = vmatprep.subr.bf16.mxu1 %v8585_v23  ;;  %v8669_v22 = vld [vmem:[%s9254_s11 + $0x148c] ss:$16 sps:$4 sm:$0xff]   ;;  %v8664_v23 = vld [vmem:[%s9254_s11 + $0x1480] ss:$16 sps:$4 sm:$0xff]  }
 0x2d5   : > { %5523 = vmatpush1.bf16.msra.mxu0 %v8580_v24  ;;  %6015 = vmatpush1.bf16.msra.mxu1 %v8583_v26  ;;  %v8667_v24 = vld [vmem:[%s9254_s11 + $0x1488] ss:$16 sps:$4 sm:$0xff]   ;;  %v8672_v26 = vld [vmem:[%s9254_s11 + $0x14a4] ss:$16 sps:$4 sm:$0xff]  }
 0x2d6   : > { %5524 = vmatprep.subr.bf16.mxu0 %v8588_v27  ;;  %6016 = vmatprep.subr.bf16.mxu1 %v8591_v28  ;;  %v8675_v27 = vld [vmem:[%s9254_s11 + $0x14ac] ss:$16 sps:$4 sm:$0xff]   ;;  %v8670_v28 = vld [vmem:[%s9254_s11 + $0x14a0] ss:$16 sps:$4 sm:$0xff]  }
 0x2d9   : > { %5525 = vmatpush1.bf16.msra.mxu0 %v8586_v29  ;;  %6017 = vmatpush1.bf16.msra.mxu1 %v8589_v30  ;;  %v8673_v29 = vld [vmem:[%s9254_s11 + $0x14a8] ss:$16 sps:$4 sm:$0xff]   ;;  %v8678_v30 = vld [vmem:[%s9254_s11 + $0x14c4] ss:$16 sps:$4 sm:$0xff]  }
 0x2da   : > { %5526 = vmatprep.subr.bf16.mxu0 %v8594_v15  ;;  %6018 = vmatprep.subr.bf16.mxu1 %v8597_v31  ;;  %v8681_v15 = vld [vmem:[%s9254_s11 + $0x14cc] ss:$16 sps:$4 sm:$0xff]   ;;  %v8676_v31 = vld [vmem:[%s9254_s11 + $0x14c0] ss:$16 sps:$4 sm:$0xff]  }
 0x2dd   : > { %5527 = vmatpush1.bf16.msra.mxu0 %v8592_v32  ;;  %6019 = vmatpush1.bf16.msra.mxu1 %v8595_v33  ;;  %v8679_v32 = vld [vmem:[%s9254_s11 + $0x14c8] ss:$16 sps:$4 sm:$0xff]   ;;  %v8684_v33 = vld [vmem:[%s9254_s11 + $0x14e4] ss:$16 sps:$4 sm:$0xff]  }
 0x2de   : > { %5528 = vmatprep.subr.bf16.mxu0 %v8600_v25  ;;  %6020 = vmatprep.subr.bf16.mxu1 %v8603_v34  ;;  %v8687_v25 = vld [vmem:[%s9254_s11 + $0x14ec] ss:$16 sps:$4 sm:$0xff]   ;;  %v8682_v34 = vld [vmem:[%s9254_s11 + $0x14e0] ss:$16 sps:$4 sm:$0xff]  }
 0x2e1   : > { %5529 = vmatpush1.bf16.msra.mxu0 %v8598_v36  ;;  %6021 = vmatpush1.bf16.msra.mxu1 %v8601_v37  ;;  %v8685_v36 = vld [vmem:[%s9254_s11 + $0x14e8] ss:$16 sps:$4 sm:$0xff]   ;;  %v8690_v37 = vld [vmem:[%s9254_s11 + $0x1504] ss:$16 sps:$4 sm:$0xff]  }
 0x2e2   : > { %5530 = vmatprep.subr.bf16.mxu0 %v8606_v39  ;;  %6022 = vmatprep.subr.bf16.mxu1 %v8609_v40  ;;  %v8693_v39 = vld [vmem:[%s9254_s11 + $0x150c] ss:$16 sps:$4 sm:$0xff]   ;;  %v8688_v40 = vld [vmem:[%s9254_s11 + $0x1500] ss:$16 sps:$4 sm:$0xff]  }
 0x2e5   : > { %5531 = vmatpush1.bf16.msra.mxu0 %v8604_v21  ;;  %6023 = vmatpush1.bf16.msra.mxu1 %v8607_v41  ;;  %v8691_v21 = vld [vmem:[%s9254_s11 + $0x1508] ss:$16 sps:$4 sm:$0xff]   ;;  %v8696_v41 = vld [vmem:[%s9254_s11 + $0x1524] ss:$16 sps:$4 sm:$0xff]  }
 0x2e6   : > { %5532 = vmatprep.subr.bf16.mxu0 %v8612_v43  ;;  %6024 = vmatprep.subr.bf16.mxu1 %v8615_v44  ;;  %v8699_v43 = vld [vmem:[%s9254_s11 + $0x152c] ss:$16 sps:$4 sm:$0xff]   ;;  %v8694_v44 = vld [vmem:[%s9254_s11 + $0x1520] ss:$16 sps:$4 sm:$0xff]  }
 0x2e9   : > { %5533 = vmatpush1.bf16.msra.mxu0 %v8610_v45  ;;  %6025 = vmatpush1.bf16.msra.mxu1 %v8613_v46  ;;  %v8697_v45 = vld [vmem:[%s9254_s11 + $0x1528] ss:$16 sps:$4 sm:$0xff]   ;;  %v8702_v46 = vld [vmem:[%s9254_s11 + $0x1544] ss:$16 sps:$4 sm:$0xff]  }
 0x2ea   : > { %5534 = vmatprep.subr.bf16.mxu0 %v8618_v47  ;;  %6026 = vmatprep.subr.bf16.mxu1 %v8621_v50  ;;  %v8705_v47 = vld [vmem:[%s9254_s11 + $0x154c] ss:$16 sps:$4 sm:$0xff]   ;;  %v8700_v50 = vld [vmem:[%s9254_s11 + $0x1540] ss:$16 sps:$4 sm:$0xff]  }
 0x2ed   : > { %5535 = vmatpush1.bf16.msra.mxu0 %v8616_v53  ;;  %6027 = vmatpush1.bf16.msra.mxu1 %v8619_v54  ;;  %v8703_v53 = vld [vmem:[%s9254_s11 + $0x1548] ss:$16 sps:$4 sm:$0xff]   ;;  %v8708_v54 = vld [vmem:[%s9254_s11 + $0x1564] ss:$16 sps:$4 sm:$0xff]  }
 0x2ee   : > { %5536 = vmatprep.subr.bf16.mxu0 %v8624_v55  ;;  %6028 = vmatprep.subr.bf16.mxu1 %v8627_v38  ;;  %v8711_v55 = vld [vmem:[%s9254_s11 + $0x156c] ss:$16 sps:$4 sm:$0xff]   ;;  %v8706_v38 = vld [vmem:[%s9254_s11 + $0x1560] ss:$16 sps:$4 sm:$0xff]  }
 0x2f1   : > { %5537 = vmatpush1.bf16.msra.mxu0 %v8622_v56  ;;  %6029 = vmatpush1.bf16.msra.mxu1 %v8625_v57  ;;  %v8709_v56 = vld [vmem:[%s9254_s11 + $0x1568] ss:$16 sps:$4 sm:$0xff]   ;;  %v8714_v57 = vld [vmem:[%s9254_s11 + $0x1584] ss:$16 sps:$4 sm:$0xff]  }
 0x2f2   : > { %5538 = vmatprep.subr.bf16.mxu0 %v8630_v58  ;;  %6030 = vmatprep.subr.bf16.mxu1 %v8633_v48  ;;  %v8717_v58 = vld [vmem:[%s9254_s11 + $0x158c] ss:$16 sps:$4 sm:$0xff]   ;;  %v8712_v48 = vld [vmem:[%s9254_s11 + $0x1580] ss:$16 sps:$4 sm:$0xff]  }
 0x2f5   : > { %5539 = vmatpush1.bf16.msra.mxu0 %v8628_v60  ;;  %6031 = vmatpush1.bf16.msra.mxu1 %v8631_v13  ;;  %v8720_v60 = vld [vmem:[%s9254_s11 + $0x15a4] ss:$16 sps:$4 sm:$0xff]   ;;  %v8723_v13 = vld [vmem:[%s9254_s11 + $0x15ac] ss:$16 sps:$4 sm:$0xff]  }
 0x2f6   : > { %5540 = vmatprep.subr.bf16.mxu0 %v8636_v63  ;;  %6032 = vmatprep.subr.bf16.mxu1 %v8639_v0  ;;  %v8718_v63 = vld [vmem:[%s9254_s11 + $0x15a0] ss:$16 sps:$4 sm:$0xff]   ;;  %v8721_v0 = vld [vmem:[%s9254_s11 + $0x15a8] ss:$16 sps:$4 sm:$0xff]  }
 0x2f9   : > { %5541 = vmatpush1.bf16.msra.mxu0 %v8634_v35  ;;  %6033 = vmatpush1.bf16.msra.mxu1 %v8637_v2  ;;  %v8726_v35 = vld [vmem:[%s9254_s11 + $0x15c4] ss:$16 sps:$4 sm:$0xff]   ;;  %v8729_v2 = vld [vmem:[%s9254_s11 + $0x15cc] ss:$16 sps:$4 sm:$0xff]  }
 0x2fa   : > { %5551 = vmatprep.subr.bf16.mxu0 %v8642_v3  ;;  %6043 = vmatprep.subr.bf16.mxu1 %v8645_v51  ;;  %v8724_v3 = vld [vmem:[%s9254_s11 + $0x15c0] ss:$16 sps:$4 sm:$0xff]   ;;  %v8727_v51 = vld [vmem:[%s9254_s11 + $0x15c8] ss:$16 sps:$4 sm:$0xff]  }
 0x2fc   : > { %5543 = vmatmul.mubr.bf16.vlgmr.msra.gmra.mrb[0].mxu0 %v1273_v5  ;;  %6035 = vmatmul.mubr.bf16.vlgmr.msra.gmra.mrb[0].mxu1 %v1273_v5  ;;  %v8735_v5 = vld [vmem:[%s9254_s11 + $0x15ec] ss:$16 sps:$4 sm:$0xff]  }
 0x2fd   : > { %5552 = vmatpush1.bf16.msra.mxu0 %v8640_v6  ;;  %6044 = vmatpush1.bf16.msra.mxu1 %v8643_v61  ;;  %v8730_v6 = vld [vmem:[%s9254_s11 + $0x15e0] ss:$16 sps:$4 sm:$0xff]   ;;  %v8733_v61 = vld [vmem:[%s9254_s11 + $0x15e8] ss:$16 sps:$4 sm:$0xff]  }
 0x2fe   : > { %5553 = vmatprep.subr.bf16.mxu0 %v8648_v7  ;;  %6045 = vmatprep.subr.bf16.mxu1 %v8651_v8  ;;  %v8739_v7 = vld [vmem:[%s9254_s11 + $0x1604] ss:$16 sps:$4 sm:$0xff]   ;;  %v8742_v8 = vld [vmem:[%s9254_s11 + $0x160c] ss:$16 sps:$4 sm:$0xff]  }
 0x2ff   : > { %5583 = vmatprep.mubr.bf16.mxu0 %v10035_v9  ;;  %6075 = vmatprep.mubr.bf16.mxu1 %v10035_v9 }
 0x301   : > { %5554 = vmatpush1.bf16.msra.mxu0 %v8646_v10  ;;  %6046 = vmatpush1.bf16.msra.mxu1 %v8649_v62  ;;  %v10104_v10 = vrot.slane %v10020_v1, %v9315_v49  ;;  %v8737_v62 = vld [vmem:[%s9254_s11 + $0x1600] ss:$16 sps:$4 sm:$0xff]   ;;  %v8746_v1 = vld [vmem:[%s9254_s11 + $0x1628] ss:$16 sps:$4 sm:$0xff]  }
 0x302   : > { %5555 = vmatprep.subr.bf16.mxu0 %v8654_v11  ;;  %6047 = vmatprep.subr.bf16.mxu1 %v8657_v12  ;;  %v8740_v11 = vld [vmem:[%s9254_s11 + $0x1608] ss:$16 sps:$4 sm:$0xff]   ;;  %v8745_v12 = vld [vmem:[%s9254_s11 + $0x1624] ss:$16 sps:$4 sm:$0xff]   ;;  %v8743_v49 = vld [vmem:[%s9254_s11 + $0x1620] ss:$16 sps:$4 sm:$0xff]  }
 0x305   : > { %5556 = vmatpush1.bf16.msra.mxu0 %v8652_v14  ;;  %6048 = vmatpush1.bf16.msra.mxu1 %v8655_v16  ;;  %v8748_v14 = vld [vmem:[%s9254_s11 + $0x162c] ss:$16 sps:$4 sm:$0xff]   ;;  %v1276_v16 = vcombine.high %v10035_v9, %v10035_v9  ;;  %v8749_v9 = vld [vmem:[%s9254_s11 + $0x1640] ss:$16 sps:$4 sm:$0xff]  }
 0x306   : > { %5557 = vmatprep.subr.bf16.mxu0 %v8660_v52  ;;  %6049 = vmatprep.subr.bf16.mxu1 %v8663_v17  ;;  %v8751_v52 = vld [vmem:[%s9254_s11 + $0x1644] ss:$16 sps:$4 sm:$0xff]   ;;  %v8754_v17 = vld [vmem:[%s9254_s11 + $0x164c] ss:$16 sps:$4 sm:$0xff]  }
 0x309   : > { %5558 = vmatpush1.bf16.msra.mxu0 %v8658_v18  ;;  %6050 = vmatpush1.bf16.msra.mxu1 %v8661_v19  ;;  %v8752_v18 = vld [vmem:[%s9254_s11 + $0x1648] ss:$16 sps:$4 sm:$0xff]   ;;  %v8757_v19 = vld [vmem:[%s9254_s11 + $0x1664] ss:$16 sps:$4 sm:$0xff]  }
 0x30a   : > { %5559 = vmatprep.subr.bf16.mxu0 %v8666_v20  ;;  %6051 = vmatprep.subr.bf16.mxu1 %v8669_v22  ;;  %v8760_v20 = vld [vmem:[%s9254_s11 + $0x166c] ss:$16 sps:$4 sm:$0xff]   ;;  %v8755_v22 = vld [vmem:[%s9254_s11 + $0x1660] ss:$16 sps:$4 sm:$0xff]  }
 0x30d   : > { %5560 = vmatpush1.bf16.msra.mxu0 %v8664_v23  ;;  %6052 = vmatpush1.bf16.msra.mxu1 %v8667_v24  ;;  %v8758_v23 = vld [vmem:[%s9254_s11 + $0x1668] ss:$16 sps:$4 sm:$0xff]   ;;  %v8763_v24 = vld [vmem:[%s9254_s11 + $0x1684] ss:$16 sps:$4 sm:$0xff]  }
 0x30e   : > { %5561 = vmatprep.subr.bf16.mxu0 %v8672_v26  ;;  %6053 = vmatprep.subr.bf16.mxu1 %v8675_v27  ;;  %v8766_v26 = vld [vmem:[%s9254_s11 + $0x168c] ss:$16 sps:$4 sm:$0xff]   ;;  %v8761_v27 = vld [vmem:[%s9254_s11 + $0x1680] ss:$16 sps:$4 sm:$0xff]  }
 0x311   : > { %5562 = vmatpush1.bf16.msra.mxu0 %v8670_v28  ;;  %6054 = vmatpush1.bf16.msra.mxu1 %v8673_v29  ;;  %v8764_v28 = vld [vmem:[%s9254_s11 + $0x1688] ss:$16 sps:$4 sm:$0xff]   ;;  %v8769_v29 = vld [vmem:[%s9254_s11 + $0x16a4] ss:$16 sps:$4 sm:$0xff]  }
 0x312   : > { %5563 = vmatprep.subr.bf16.mxu0 %v8678_v30  ;;  %6055 = vmatprep.subr.bf16.mxu1 %v8681_v15  ;;  %v8772_v30 = vld [vmem:[%s9254_s11 + $0x16ac] ss:$16 sps:$4 sm:$0xff]   ;;  %v8767_v15 = vld [vmem:[%s9254_s11 + $0x16a0] ss:$16 sps:$4 sm:$0xff]  }
 0x315   : > { %5564 = vmatpush1.bf16.msra.mxu0 %v8676_v31  ;;  %6056 = vmatpush1.bf16.msra.mxu1 %v8679_v32  ;;  %v8770_v31 = vld [vmem:[%s9254_s11 + $0x16a8] ss:$16 sps:$4 sm:$0xff]   ;;  %v8775_v32 = vld [vmem:[%s9254_s11 + $0x16c4] ss:$16 sps:$4 sm:$0xff]  }
 0x316   : > { %5565 = vmatprep.subr.bf16.mxu0 %v8684_v33  ;;  %6057 = vmatprep.subr.bf16.mxu1 %v8687_v25  ;;  %v8778_v33 = vld [vmem:[%s9254_s11 + $0x16cc] ss:$16 sps:$4 sm:$0xff]   ;;  %v8773_v25 = vld [vmem:[%s9254_s11 + $0x16c0] ss:$16 sps:$4 sm:$0xff]  }
 0x319   : > { %5566 = vmatpush1.bf16.msra.mxu0 %v8682_v34  ;;  %6058 = vmatpush1.bf16.msra.mxu1 %v8685_v36  ;;  %v8776_v34 = vld [vmem:[%s9254_s11 + $0x16c8] ss:$16 sps:$4 sm:$0xff]   ;;  %v8781_v36 = vld [vmem:[%s9254_s11 + $0x16e4] ss:$16 sps:$4 sm:$0xff]  }
 0x31a   : > { %5567 = vmatprep.subr.bf16.mxu0 %v8690_v37  ;;  %6059 = vmatprep.subr.bf16.mxu1 %v8693_v39  ;;  %v8784_v37 = vld [vmem:[%s9254_s11 + $0x16ec] ss:$16 sps:$4 sm:$0xff]   ;;  %v8779_v39 = vld [vmem:[%s9254_s11 + $0x16e0] ss:$16 sps:$4 sm:$0xff]  }
 0x31d   : > { %5568 = vmatpush1.bf16.msra.mxu0 %v8688_v40  ;;  %6060 = vmatpush1.bf16.msra.mxu1 %v8691_v21  ;;  %v8782_v40 = vld [vmem:[%s9254_s11 + $0x16e8] ss:$16 sps:$4 sm:$0xff]   ;;  %v8787_v21 = vld [vmem:[%s9254_s11 + $0x1704] ss:$16 sps:$4 sm:$0xff]  }
 0x31e   : > { %5569 = vmatprep.subr.bf16.mxu0 %v8696_v41  ;;  %6061 = vmatprep.subr.bf16.mxu1 %v8699_v43  ;;  %v8790_v41 = vld [vmem:[%s9254_s11 + $0x170c] ss:$16 sps:$4 sm:$0xff]   ;;  %v8785_v43 = vld [vmem:[%s9254_s11 + $0x1700] ss:$16 sps:$4 sm:$0xff]  }
 0x321   : > { %5570 = vmatpush1.bf16.msra.mxu0 %v8694_v44  ;;  %6062 = vmatpush1.bf16.msra.mxu1 %v8697_v45  ;;  %v8788_v44 = vld [vmem:[%s9254_s11 + $0x1708] ss:$16 sps:$4 sm:$0xff]   ;;  %v8793_v45 = vld [vmem:[%s9254_s11 + $0x1724] ss:$16 sps:$4 sm:$0xff]  }
 0x322   : > { %5571 = vmatprep.subr.bf16.mxu0 %v8702_v46  ;;  %6063 = vmatprep.subr.bf16.mxu1 %v8705_v47  ;;  %v8796_v46 = vld [vmem:[%s9254_s11 + $0x172c] ss:$16 sps:$4 sm:$0xff]   ;;  %v8791_v47 = vld [vmem:[%s9254_s11 + $0x1720] ss:$16 sps:$4 sm:$0xff]  }
 0x325   : > { %5572 = vmatpush1.bf16.msra.mxu0 %v8700_v50  ;;  %6064 = vmatpush1.bf16.msra.mxu1 %v8703_v53  ;;  %v8794_v50 = vld [vmem:[%s9254_s11 + $0x1728] ss:$16 sps:$4 sm:$0xff]   ;;  %v8799_v53 = vld [vmem:[%s9254_s11 + $0x1744] ss:$16 sps:$4 sm:$0xff]  }
 0x326   : > { %5573 = vmatprep.subr.bf16.mxu0 %v8708_v54  ;;  %6065 = vmatprep.subr.bf16.mxu1 %v8711_v55  ;;  %v8802_v54 = vld [vmem:[%s9254_s11 + $0x174c] ss:$16 sps:$4 sm:$0xff]   ;;  %v8797_v55 = vld [vmem:[%s9254_s11 + $0x1740] ss:$16 sps:$4 sm:$0xff]  }
 0x329   : > { %5574 = vmatpush1.bf16.msra.mxu0 %v8706_v38  ;;  %6066 = vmatpush1.bf16.msra.mxu1 %v8709_v56  ;;  %v8800_v38 = vld [vmem:[%s9254_s11 + $0x1748] ss:$16 sps:$4 sm:$0xff]   ;;  %v8805_v56 = vld [vmem:[%s9254_s11 + $0x1764] ss:$16 sps:$4 sm:$0xff]  }
 0x32a   : > { %5575 = vmatprep.subr.bf16.mxu0 %v8714_v57  ;;  %6067 = vmatprep.subr.bf16.mxu1 %v8717_v58  ;;  %v8808_v57 = vld [vmem:[%s9254_s11 + $0x176c] ss:$16 sps:$4 sm:$0xff]   ;;  %v8803_v58 = vld [vmem:[%s9254_s11 + $0x1760] ss:$16 sps:$4 sm:$0xff]  }
 0x32d   : > { %5576 = vmatpush1.bf16.msra.mxu0 %v8712_v48  ;;  %6068 = vmatpush1.bf16.msra.mxu1 %v8715_v59  ;;  %v8806_v48 = vld [vmem:[%s9254_s11 + $0x1768] ss:$16 sps:$4 sm:$0xff]   ;;  %v8811_v59 = vld [vmem:[%s9254_s11 + $0x1784] ss:$16 sps:$4 sm:$0xff]  }
 0x32e   : > { %5577 = vmatprep.subr.bf16.mxu0 %v8720_v60  ;;  %6069 = vmatprep.subr.bf16.mxu1 %v8723_v13  ;;  %v8814_v60 = vld [vmem:[%s9254_s11 + $0x178c] ss:$16 sps:$4 sm:$0xff]   ;;  %v8809_v13 = vld [vmem:[%s9254_s11 + $0x1780] ss:$16 sps:$4 sm:$0xff]  }
 0x331   : > { %5578 = vmatpush1.bf16.msra.mxu0 %v8718_v63  ;;  %6070 = vmatpush1.bf16.msra.mxu1 %v8721_v0  ;;  %v8812_v63 = vld [vmem:[%s9254_s11 + $0x1788] ss:$16 sps:$4 sm:$0xff]   ;;  %v8817_v0 = vld [vmem:[%s9254_s11 + $0x17a4] ss:$16 sps:$4 sm:$0xff]  }
 0x332   : > { %5579 = vmatprep.subr.bf16.mxu0 %v8726_v35  ;;  %6071 = vmatprep.subr.bf16.mxu1 %v8729_v2  ;;  %v8820_v35 = vld [vmem:[%s9254_s11 + $0x17ac] ss:$16 sps:$4 sm:$0xff]   ;;  %v8815_v2 = vld [vmem:[%s9254_s11 + $0x17a0] ss:$16 sps:$4 sm:$0xff]  }
 0x335   : > { %5580 = vmatpush1.bf16.msra.mxu0 %v8724_v3  ;;  %6072 = vmatpush1.bf16.msra.mxu1 %v8727_v51  ;;  %v8818_v3 = vld [vmem:[%s9254_s11 + $0x17a8] ss:$16 sps:$4 sm:$0xff]   ;;  %v8823_v51 = vld [vmem:[%s9254_s11 + $0x17c4] ss:$16 sps:$4 sm:$0xff]  }
 0x336   : > { %5581 = vmatprep.subr.bf16.mxu0 %v8732_v4  ;;  %6073 = vmatprep.subr.bf16.mxu1 %v8735_v5  ;;  %v8826_v4 = vld [vmem:[%s9254_s11 + $0x17cc] ss:$16 sps:$4 sm:$0xff]   ;;  %v8821_v5 = vld [vmem:[%s9254_s11 + $0x17c0] ss:$16 sps:$4 sm:$0xff]  }
 0x339   : > { %5582 = vmatpush1.bf16.msra.mxu0 %v8730_v6  ;;  %6074 = vmatpush1.bf16.msra.mxu1 %v8733_v61  ;;  %v8824_v6 = vld [vmem:[%s9254_s11 + $0x17c8] ss:$16 sps:$4 sm:$0xff]   ;;  %v8829_v61 = vld [vmem:[%s9254_s11 + $0x17e4] ss:$16 sps:$4 sm:$0xff]  }
 0x33a   : > { %5592 = vmatprep.subr.bf16.mxu0 %v8739_v7  ;;  %6084 = vmatprep.subr.bf16.mxu1 %v8742_v8  ;;  %v8832_v7 = vld [vmem:[%s9254_s11 + $0x17ec] ss:$16 sps:$4 sm:$0xff]   ;;  %v8827_v8 = vld [vmem:[%s9254_s11 + $0x17e0] ss:$16 sps:$4 sm:$0xff]  }
 0x33c   : > { %5584 = vmatmul.mubr.bf16.vlgmr.msra.gmra.mrb[0].mxu0 %v10104_v10  ;;  %6076 = vmatmul.mubr.bf16.vlgmr.msra.gmra.mrb[0].mxu1 %v10104_v10 }
 0x33d   : > { %5593 = vmatpush1.bf16.msra.mxu0 %v8737_v62  ;;  %6085 = vmatpush1.bf16.msra.mxu1 %v8740_v11  ;;  %v8830_v62 = vld [vmem:[%s9254_s11 + $0x17e8] ss:$16 sps:$4 sm:$0xff]  }
 0x33e   : > { %5594 = vmatprep.subr.bf16.mxu0 %v8745_v12  ;;  %6086 = vmatprep.subr.bf16.mxu1 %v8748_v14  ;;  %v8833_v11 = vld [vmem:[%s10042_s9 + $0x40] sm:$0xff]   ;;  %v1274_v14 = vcombine.high %v10104_v10, %v10104_v10  ;;  %v8840_v10 = vld [vmem:[%s10042_s9 + $0x88] sm:$0xff]  }
 0x33f   : > { %5624 = vmatprep.mubr.bf16.mxu0 %v1276_v16  ;;  %6116 = vmatprep.mubr.bf16.mxu1 %v1276_v16  ;;  %v8834_v12 = vld [vmem:[%s10042_s9 + $0xc0] sm:$0xff]  }
 0x340   : > { %v8835_v16 = vld [vmem:[%s10042_s9] sm:$0xff]  }
 0x341   : > { %5595 = vmatpush1.bf16.msra.mxu0 %v8743_v49  ;;  %6087 = vmatpush1.bf16.msra.mxu1 %v8746_v1  ;;  %v8836_v49 = vld [vmem:[%s10042_s9 + $0x80] sm:$0xff]   ;;  %v8837_v1 = vld [vmem:[%s10042_s9 + $0x48] sm:$0xff]  }
 0x342   : > { %5596 = vmatprep.subr.bf16.mxu0 %v8751_v52  ;;  %6088 = vmatprep.subr.bf16.mxu1 %v8754_v17  ;;  %v8838_v52 = vld [vmem:[%s10042_s9 + $0xc8] sm:$0xff]  }
 0x343   : > { %v8839_v17 = vld [vmem:[%s10042_s9 + $0x8] sm:$0xff]  }
 0x345   : > { %5597 = vmatpush1.bf16.msra.mxu0 %v8749_v9  ;;  %6089 = vmatpush1.bf16.msra.mxu1 %v8752_v18  ;;  %v8841_v9 = vld [vmem:[%s10042_s9 + $0x50] sm:$0xff]  }
 0x346   : > { %5598 = vmatprep.subr.bf16.mxu0 %v8757_v19  ;;  %6090 = vmatprep.subr.bf16.mxu1 %v8760_v20  ;;  %v8842_v18 = vld [vmem:[%s10042_s9 + $0xd0] sm:$0xff]  }
 0x347   : > { %v8843_v19 = vld [vmem:[%s10042_s9 + $0x10] sm:$0xff]  }
 0x348   : > { %v8844_v20 = vld [vmem:[%s10042_s9 + $0x90] sm:$0xff]  }
 0x349   : > { %5599 = vmatpush1.bf16.msra.mxu0 %v8755_v22  ;;  %6091 = vmatpush1.bf16.msra.mxu1 %v8758_v23  ;;  %v8845_v22 = vld [vmem:[%s10042_s9 + $0x58] sm:$0xff]  }
 0x34a   : > { %5600 = vmatprep.subr.bf16.mxu0 %v8763_v24  ;;  %6092 = vmatprep.subr.bf16.mxu1 %v8766_v26  ;;  %v8846_v23 = vld [vmem:[%s10042_s9 + $0xd8] sm:$0xff]  }
 0x34b   : > { %v8847_v24 = vld [vmem:[%s10042_s9 + $0x18] sm:$0xff]  }
 0x34c   : > { %v8848_v26 = vld [vmem:[%s10042_s9 + $0x98] sm:$0xff]  }
 0x34d   : > { %5601 = vmatpush1.bf16.msra.mxu0 %v8761_v27  ;;  %6093 = vmatpush1.bf16.msra.mxu1 %v8764_v28  ;;  %v8849_v27 = vld [vmem:[%s10042_s9 + $0x60] sm:$0xff]  }
 0x34e   : > { %5602 = vmatprep.subr.bf16.mxu0 %v8769_v29  ;;  %6094 = vmatprep.subr.bf16.mxu1 %v8772_v30  ;;  %v8850_v28 = vld [vmem:[%s10042_s9 + $0xe0] sm:$0xff]  }
 0x34f   : > { %v8851_v29 = vld [vmem:[%s10042_s9 + $0x20] sm:$0xff]  }
 0x350   : > { %v8852_v30 = vld [vmem:[%s10042_s9 + $0xa0] sm:$0xff]  }
 0x351   : > { %5603 = vmatpush1.bf16.msra.mxu0 %v8767_v15  ;;  %6095 = vmatpush1.bf16.msra.mxu1 %v8770_v31  ;;  %v8853_v15 = vld [vmem:[%s10042_s9 + $0x68] sm:$0xff]  }
 0x352   : > { %5604 = vmatprep.subr.bf16.mxu0 %v8775_v32  ;;  %6096 = vmatprep.subr.bf16.mxu1 %v8778_v33  ;;  %v8854_v31 = vld [vmem:[%s10042_s9 + $0xe8] sm:$0xff]  }
 0x353   : > { %v8855_v32 = vld [vmem:[%s10042_s9 + $0x28] sm:$0xff]  }
 0x354   : > { %v8856_v33 = vld [vmem:[%s10042_s9 + $0xa8] sm:$0xff]  }
 0x355   : > { %5605 = vmatpush1.bf16.msra.mxu0 %v8773_v25  ;;  %6097 = vmatpush1.bf16.msra.mxu1 %v8776_v34  ;;  %v8857_v25 = vld [vmem:[%s10042_s9 + $0x70] sm:$0xff]  }
 0x356   : > { %5606 = vmatprep.subr.bf16.mxu0 %v8781_v36  ;;  %6098 = vmatprep.subr.bf16.mxu1 %v8784_v37  ;;  %v8858_v34 = vld [vmem:[%s10042_s9 + $0xf0] sm:$0xff]  }
 0x357   : > { %v8859_v36 = vld [vmem:[%s10042_s9 + $0x30] sm:$0xff]  }
 0x358   : > { %v8860_v37 = vld [vmem:[%s10042_s9 + $0xb0] sm:$0xff]  }
 0x359   : > { %5607 = vmatpush1.bf16.msra.mxu0 %v8779_v39  ;;  %6099 = vmatpush1.bf16.msra.mxu1 %v8782_v40  ;;  %v8861_v39 = vld [vmem:[%s10042_s9 + $0x78] sm:$0xff]  }
 0x35a   : > { %5608 = vmatprep.subr.bf16.mxu0 %v8787_v21  ;;  %6100 = vmatprep.subr.bf16.mxu1 %v8790_v41  ;;  %v8862_v40 = vld [vmem:[%s10042_s9 + $0xf8] sm:$0xff]  }
 0x35b   : > { %v8863_v21 = vld [vmem:[%s10042_s9 + $0x38] sm:$0xff]  }
 0x35c   : > { %v8864_v41 = vld [vmem:[%s10042_s9 + $0xb8] sm:$0xff]  }
 0x35d   : > { %5609 = vmatpush1.bf16.msra.mxu0 %v8785_v43  ;;  %6101 = vmatpush1.bf16.msra.mxu1 %v8788_v44  ;;  %v1109_v43 = vsub.s32 0, %v9307_v42  ;;  %v1117_v44 = vsub.s32 2, %v9307_v42 }
 0x35e   : > { %5610 = vmatprep.subr.bf16.mxu0 %v8793_v45  ;;  %6102 = vmatprep.subr.bf16.mxu1 %v8796_v46  ;;  %v1105_v45 = vld [vmem:[%s9262_s12] sm:$0xf]  ;;  %v1113_v46 = vsub.s32 1, %v9307_v42  ;;  %s8957_s12 = scalar_lea.vmem %s6513_s7, 128 }
 0x35f   : > { %p8958_p13 = scmp.ne.s32.totalorder %s6513_s7, %s8957_s12  ;;  %p8965_p11 = scmp.lt.s32.totalorder %s8963_s6, %s8957_s12 }
 0x361   : > { %5611 = vmatpush1.bf16.msra.mxu0 %v8791_v47  ;;  %6103 = vmatpush1.bf16.msra.mxu1 %v8794_v50  ;;  %v1121_v47 = vsub.s32 3, %v9307_v42  ;;  %v9038_v50 = vmov 1983009808   ;;  %p8959_p9 = pnand %p8958_p13, %p10285_p7  ;;  %p8966_p8 = por %p8965_p11, %p8964_p6 }
 0x362   : > { %5612 = vmatprep.subr.bf16.mxu0 %v8799_v53  ;;  %6104 = vmatprep.subr.bf16.mxu1 %v8802_v54  ;;  %v6136_v53 = vunpack.c.l.s4 %v9038_v50  ;;  %v1110_v54 = vrot.slane %v1105_v45, %v1109_v43 }
 0x363   : > { %p8960_p0 = pneg %p8959_p9 }
 0x365   : > { %5613 = vmatpush1.bf16.msra.mxu0 %v8797_v55  ;;  %6105 = vmatpush1.bf16.msra.mxu1 %v8800_v38  ;;  %v1118_v55 = vrot.slane %v1105_v45, %v1117_v44  ;;  %v1114_v38 = vrot.slane %v1105_v45, %v1113_v46  ;;  %p8967_p10 = pnand %p8966_p8, %p8960_p0 }
 0x366   : > { %5614 = vmatprep.subr.bf16.mxu0 %v8805_v56  ;;  %6106 = vmatprep.subr.bf16.mxu1 %v8808_v57  ;;  %v1122_v56 = vrot.slane %v1105_v45, %v1121_v47 }
 0x369   : > { %5615 = vmatpush1.bf16.msra.mxu0 %v8803_v58  ;;  %6107 = vmatpush1.bf16.msra.mxu1 %v8806_v48  ;;  %v6137_v48 = vunpack.c.0.s8 %v6136_v53 }
 0x36a   : > { %5616 = vmatprep.subr.bf16.mxu0 %v8811_v59  ;;  %6108 = vmatprep.subr.bf16.mxu1 %v8814_v60 }
 0x36d   : > { %5617 = vmatpush1.bf16.msra.mxu0 %v8809_v13  ;;  %6109 = vmatpush1.bf16.msra.mxu1 %v8812_v63 }
 0x36e   : > { %5618 = vmatprep.subr.bf16.mxu0 %v8817_v0  ;;  %6110 = vmatprep.subr.bf16.mxu1 %v8820_v35 }
 0x371   : > { %5619 = vmatpush1.bf16.msra.mxu0 %v8815_v2  ;;  %6111 = vmatpush1.bf16.msra.mxu1 %v8818_v3 }
 0x372   : > { %5620 = vmatprep.subr.bf16.mxu0 %v8823_v51  ;;  %6112 = vmatprep.subr.bf16.mxu1 %v8826_v4 }
 0x375   : > { %5621 = vmatpush1.bf16.msra.mxu0 %v8821_v5  ;;  %6113 = vmatpush1.bf16.msra.mxu1 %v8824_v6 }
 0x376   : > { %5622 = vmatprep.subr.bf16.mxu0 %v8829_v61  ;;  %6114 = vmatprep.subr.bf16.mxu1 %v8832_v7  ;;  %v6140_v7 = vsub.s32 %v6137_v48, %v9307_v42 }
 0x379   : > { %5623 = vmatpush1.bf16.msra.mxu0 %v8827_v8  ;;  %6115 = vmatpush1.bf16.msra.mxu1 %v8830_v62 }
 0x37a   : > { %7477 = vmatprep.subr.bf16.mxu0 %v8833_v11  ;;  %7499 = vmatprep.subr.bf16.mxu1 %v8834_v12 }
 0x37c   : > { %5625 = vmatmul.mubr.bf16.vlgmr.msra.gmra.mrb[0].mxu0 %v1274_v14  ;;  %6117 = vmatmul.mubr.bf16.vlgmr.msra.gmra.mrb[0].mxu1 %v1274_v14 }
 0x37d   : > { %7478 = vmatpush3.bf16.msra.mxu0 %v8835_v16  ;;  %7500 = vmatpush3.bf16.msra.mxu1 %v8836_v49 }
 0x37e   : > { %7479 = vmatprep.subr.bf16.mxu0 %v8837_v1  ;;  %7501 = vmatprep.subr.bf16.mxu1 %v8838_v52 }
 0x381   : > { %7480 = vmatpush3.bf16.msra.mxu0 %v8839_v17  ;;  %7502 = vmatpush3.bf16.msra.mxu1 %v8840_v10 }
 0x382   : > { %7481 = vmatprep.subr.bf16.mxu0 %v8841_v9  ;;  %7503 = vmatprep.subr.bf16.mxu1 %v8842_v18 }
 0x385   : > { %7482 = vmatpush3.bf16.msra.mxu0 %v8843_v19  ;;  %7504 = vmatpush3.bf16.msra.mxu1 %v8844_v20 }
 0x386   : > { %7483 = vmatprep.subr.bf16.mxu0 %v8845_v22  ;;  %7505 = vmatprep.subr.bf16.mxu1 %v8846_v23 }
 0x389   : > { %7484 = vmatpush3.bf16.msra.mxu0 %v8847_v24  ;;  %7506 = vmatpush3.bf16.msra.mxu1 %v8848_v26 }
 0x38a   : > { %7485 = vmatprep.subr.bf16.mxu0 %v8849_v27  ;;  %7507 = vmatprep.subr.bf16.mxu1 %v8850_v28 }
 0x38d   : > { %7486 = vmatpush3.bf16.msra.mxu0 %v8851_v29  ;;  %7508 = vmatpush3.bf16.msra.mxu1 %v8852_v30 }
 0x38e   : > { %7487 = vmatprep.subr.bf16.mxu0 %v8853_v15  ;;  %7509 = vmatprep.subr.bf16.mxu1 %v8854_v31 }
 0x391   : > { %7488 = vmatpush3.bf16.msra.mxu0 %v8855_v32  ;;  %7510 = vmatpush3.bf16.msra.mxu1 %v8856_v33 }
 0x392   : > { %7489 = vmatprep.subr.bf16.mxu0 %v8857_v25  ;;  %7511 = vmatprep.subr.bf16.mxu1 %v8858_v34 }
 0x395   : > { %7490 = vmatpush3.bf16.msra.mxu0 %v8859_v36  ;;  %7512 = vmatpush3.bf16.msra.mxu1 %v8860_v37 }
 0x396   : > { %7491 = vmatprep.subr.bf16.mxu0 %v8861_v39  ;;  %7513 = vmatprep.subr.bf16.mxu1 %v8862_v40 }
 0x399   : > { %7492 = vmatpush3.bf16.msra.mxu0 %v8863_v21  ;;  %7514 = vmatpush3.bf16.msra.mxu1 %v8864_v41 }
 0x44f   : > { %v5626_v57 = vpop.f32.mrb[0].mxu0  ;;  %v6118_v58 = vpop.f32.mrb[0].mxu1 }
 0x450   : > { %v7521_v59 = vadd.f32 %v5626_v57, %v1110_v54  ;;  %v7523_v60 = vadd.f32 %v6118_v58, %v1118_v55  ;;  %v5628_v13 = vpop.f32.mrb[1].mxu0  ;;  %v6120_v63 = vpop.f32.mrb[1].mxu1 }
 0x451   : > { %v7522_v0 = vadd.f32 %v5628_v13, %v1114_v38  ;;  %v7524_v35 = vadd.f32 %v6120_v63, %v1122_v56  ;;  %v5630_v2 = vpop.f32.mrb[2].mxu0  ;;  %v6122_v3 = vpop.f32.mrb[2].mxu1 }
 0x452   : > { %v6125_v51 = vmax.f32 %v7521_v59, 0.0  ;;  %v6127_v4 = vmax.f32 %v7523_v60, 0.0  ;;  %v5631_v5 = vpop.f32.mrb[3].mxu0  ;;  %v6123_v6 = vpop.f32.mrb[3].mxu1 }
 0x453   : > { %v6126_v61 = vmax.f32 %v7522_v0, 0.0  ;;  %v6128_v8 = vmax.f32 %v7524_v35, 0.0 }
 0x454   : > { %v6152_v16 = vpack.c.bf16 %v6125_v51, %v6125_v51  ;;  %v6154_v49 = vpack.c.bf16 %v6127_v4, %v6127_v4 }
 0x455   : > { %v6133_v62 = vcombine.low %v6125_v51, %v6126_v61  ;;  %v6153_v11 = vpack.c.bf16 %v6126_v61, %v6126_v61  ;;  %v6134_v12 = vcombine.low %v6127_v4, %v6128_v8  ;;  %v6155_v14 = vpack.c.bf16 %v6128_v8, %v6128_v8 }
 0x457   : > { %v6141_v1 = vrot.slane %v6133_v62, %v6140_v7  ;;  %v6148_v52 = vrot.slane %v6134_v12, %v6140_v7  ;;  %6444 = vmatprep.mubr.bf16.mxu0 %v6153_v11  ;;  %6484 = vmatprep.mubr.bf16.mxu1 %v6155_v14 }
 0x458   : > { %6445 = vmatmul.mubr.bf16.vlgmr.msra.gmra.mrb[4].mxu0 %v6152_v16  ;;  %6485 = vmatmul.mubr.bf16.vlgmr.msra.gmra.mrb[4].mxu1 %v6154_v49 }
 0x459   : > { %v6149_v17 = vcombine.low %v6141_v1, %v6148_v52 }
 0x45b   : > { %6151 = vst [vmem:[%s318_s2] sm:$0xff] %v6149_v17 }
 0x45c   : > { %8970 = shalt.err (!%p8967_p10)
}
 0x45d   : > { %s8971_s26 = scalar_lea.hbm %s10217_s27, 128  ;;  %s8975_s16 = scalar_lea.hbm %s10264_s4, 256 }
 0x45e   : > { %p8972_p4 = scmp.ne.s32.totalorder %s10217_s27, %s8971_s26  ;;  %p8976_p5 = scmp.lt.u32.totalorder %s10217_s27, %s10264_s4 }
 0x45f   : > { %p8977_p2 = scmp.lt.u32.totalorder %s8975_s16, %s8971_s26  ;;  %p8979_p13 = scmp.lt.u32.totalorder %s8971_s26, %s10217_s27 }
 0x460   : > { %p8973_p12 = pnand %p8972_p4, %p10285_p7 }
 0x461   : > { %p8978_p1 = por %p8977_p2, %p8976_p5 }
 0x462   : > { %p8974_p3 = pneg %p8973_p12 }
 0x463   : > { %p8980_p9 = por %p8979_p13, %p8978_p1 }
 0x465   : > { %p8981_p0 = pnand %p8980_p9, %p8974_p3 }
 0x467   : > { %8984 = shalt.err (!%p8981_p0)
}
 0x468   : > { %7621 = dma.vmem_to_hbm [thread:$0]  (%p10285_p7), %s6513_s7, 128, %s10217_s27, %s6494_s23  }
 0x469   : > { %p329_p6 = scmp.lt.s32.totalorder %s9091_s22, 1 }
 0x46b   : > { %s10294_s22 = smov (!%p329_p6, %s9091_s22), 1 }
 0x46c   : > { %s6667_s15 = sshll.u32 %s10294_s22, 1 }
 0x46d   : > { %s332_s2 = scalar_lea.vmem %s10265_s5, %s6667_s15 }
 0x52b   : > { %v7493_v42 = vpop.f32.mrb[4].mxu0  ;;  %v7515_v10 = vpop.f32.mrb[4].mxu1 }
 0x52c   : > { %v7494_v9 = vpop.f32.mrb[5].mxu0  ;;  %v7516_v18 = vpop.f32.mrb[5].mxu1 }
 0x52d   : > { %v7495_v19 = vadd.f32 %v7494_v9, %v7493_v42  ;;  %v7517_v20 = vadd.f32 %v7516_v18, %v7515_v10  ;;  %v7496_v22 = vpop.f32.mrb[6].mxu0  ;;  %v7518_v23 = vpop.f32.mrb[6].mxu1 }
 0x52e   : > { %v7497_v24 = vpop.f32.mrb[7].mxu0  ;;  %v7519_v26 = vpop.f32.mrb[7].mxu1 }
 0x52f   : > { %v6487_v27 = vadd.f32 %v7517_v20, %v7495_v19 }
 0x531   : > { %6492 = vst [vmem:[%s332_s2] sm:$0x3] %v6487_v27 }
 0x532 PF: > { %s6527_s29 = sand.u32 1, %s9015_s18   ;;  %p10286_p7 = scmp.ne.s32.totalorder %s10275_s30, 0 }
 0x533   : > { %p10287_p11 = scmp.ge.s32.totalorder %s9027_s21, 2  ;;  %s6528_s22 = scalar_lea.sflag [#allocation4], %s6527_s29 }
 0x535   : > { %p7634_p8 = pnand %p10287_p11, %p10286_p7 }
 0x537   : > { %9010 = dma.done.wait (!%p7634_p8), %s6528_s22, 128  }
 0x538   : > { %9012 = vsyncadd (!%p7634_p8), %s6528_s22, 4294967168  ;;  %s10288_s17 = sld [smem:[#allocation12_spill]]  ;;  %s10289_s20 = sld [smem:[#allocation13_spill]] }
 0x539   : > { %p22_p10 = scmp.ge.s32.totalorder %s9095_s24, 4   ;;  %s10290_s18 = smov %s9019_s19 }
 0x53a   : > { %s10292_s21 = smov %s9095_s24 }
 0x53b   :  { %24 = sbr.rel (!%p22_p10) target bundleno = 10 (0xa), region = 117 }
 0x53e   : > { %s10291_s19 = smov %s10288_s17 }
 0x542   :  { %6540 = vsyncpa [#allocation3], 1 }
 0x543   :  { %6542 = vsyncpa [#allocation3 + $0x1], 1 }
 0x544   :  { %6543 = vsyncpa [#allocation6], 1 }
 0x545   :  { %6545 = vsyncpa [#allocation6 + $0x1], 1 }
 0x546   :  { %6546 = vsyncpa [#allocation4], 1 }
 0x547   :  { %6548 = vsyncpa [#allocation4 + $0x1], 1 }

</bundles_post_ra>
